<compile_context>
chip_gen: v5e
topology: v5e:2x2
jax: 0.10.0
libtpu: 0.0.40
codegen_flags: <defaults>
</compile_context>

<pallas_src>
import functools

import jax
import jax.numpy as jnp
from jax.experimental import pallas as pl
from jax.experimental.pallas import tpu as pltpu

LANE = 128


def _ceil_to(x, m):
    return -(-x // m) * m


# ----------------------------------------------------------------------------
# Slab packing: collapse all parameter tensors into two contiguous VMEM slabs.
# ----------------------------------------------------------------------------
class _Packer:
    def __init__(self, row_align):
        self.row_align = row_align
        self.blocks = []
        self.off = {}          # name -> (row_offset, n_rows, n_cols)
        self.cur = 0

    def add(self, name, arr):
        arr = jnp.asarray(arr, jnp.float32)
        r, c = arr.shape
        assert c <= LANE
        rp = _ceil_to(r, self.row_align)
        blk = jnp.zeros((rp, LANE), jnp.float32).at[:r, :c].set(arr)
        self.blocks.append(blk)
        self.off[name] = (self.cur, r, c)
        self.cur += rp

    def finalize(self, dtype):
        return jnp.concatenate(self.blocks, axis=0).astype(dtype), self.off


def build_params(key, dimensions_layers, node_classes, edge_classes,
                 pos_classes, edge_pred_features):
    bbox_dim = 4
    m_hidden = dimensions_layers[-1]
    hidden = m_hidden
    polar_dim = edge_pred_features - 2 * node_classes
    assert polar_dim > 0
    out_pad = _ceil_to(edge_classes + pos_classes, LANE)
    d_dec = dimensions_layers[0]
    node_slab_w = _ceil_to(node_classes + bbox_dim + d_dec, LANE)
    assert out_pad >= edge_classes + pos_classes
    assert node_slab_w >= node_classes + bbox_dim + d_dec

    wpk = _Packer(row_align=16)   # bf16 sublane tile = 16
    vpk = _Packer(row_align=1)    # one (1,128) row per bias / LN vector

    keys = iter(jax.random.split(key, 64))

    def nrm(shape, scale=0.1):
        return scale * jax.random.normal(next(keys), shape, jnp.float32)

    enc_dims = list(zip(dimensions_layers[:-1], dimensions_layers[1:]))
    dec_dims = [(b, a) for (a, b) in reversed(enc_dims)]

    def add_sage(tag, i, d_in, d_out):
        wpk.add(f"{tag}{i}_wp", nrm((d_in, d_in)))
        wpk.add(f"{tag}{i}_ws", nrm((d_in, d_out)))
        wpk.add(f"{tag}{i}_wn", nrm((d_in, d_out)))
        vpk.add(f"{tag}{i}_bp", jnp.zeros((1, d_in)))
        vpk.add(f"{tag}{i}_b", nrm((1, d_out), 0.01))

    for i, (a, b) in enumerate(enc_dims):
        add_sage("enc", i, a, b)
    for i, (a, b) in enumerate(dec_dims):
        add_sage("dec", i, a, b)

    # node_pred + bbox heads fused into one stacked Linear
    wpk.add("node_w", jnp.concatenate(
        [nrm((m_hidden, node_classes)), nrm((m_hidden, bbox_dim))], axis=1))
    vpk.add("node_b", jnp.zeros((1, node_classes + bbox_dim)))
    vpk.add("g_node", jnp.ones((1, node_classes)))
    vpk.add("b_node", jnp.zeros((1, node_classes)))
    vpk.add("g_bbox", jnp.ones((1, bbox_dim)))
    vpk.add("b_bbox", jnp.zeros((1, bbox_dim)))

    # edge_pred + rel_pos heads: W1 stacked along columns, row-split by input
    # block (h / softmax(cls) / polar) so the gather is pushed through W1.
    d_edge_in = 2 * m_hidden + edge_pred_features
    w1 = jnp.concatenate([nrm((d_edge_in, hidden)), nrm((d_edge_in, hidden))],
                         axis=1)                              # (d_edge_in, 2*hid)
    hu = m_hidden + node_classes
    w1_u, w1_p, w1_v = w1[:hu], w1[hu:hu + polar_dim], w1[hu + polar_dim:]
    w1_uv = jnp.concatenate([w1_u, w1_v], axis=1)             # (hu, 4*hid)
    wpk.add("w1h_uv", w1_uv[:m_hidden])                       # rows acting on h
    wpk.add("w1c_uv", w1_uv[m_hidden:])                       # rows acting on cls
    wpk.add("w1_polar", w1_p)
    vpk.add("b1", jnp.zeros((1, 2 * hidden)))
    vpk.add("g_e", jnp.ones((1, hidden)))
    vpk.add("b_e", jnp.zeros((1, hidden)))
    vpk.add("g_r", jnp.ones((1, hidden)))
    vpk.add("b_r", jnp.zeros((1, hidden)))

    # block-diagonal W2 stored as two lane-dense (hidden, out_pad) blocks
    w2_e = jnp.zeros((hidden, out_pad)).at[:, :edge_classes].set(
        nrm((hidden, edge_classes)))
    w2_r = jnp.zeros((hidden, out_pad)).at[
        :, edge_classes:edge_classes + pos_classes].set(nrm((hidden, pos_classes)))
    wpk.add("w2_e", w2_e)
    wpk.add("w2_r", w2_r)
    vpk.add("b2", jnp.zeros((1, out_pad)))

    w_slab, w_off = wpk.finalize(jnp.bfloat16)
    v_slab, v_off = vpk.finalize(jnp.float32)

    cfg = dict(n_enc=len(enc_dims), n_dec=len(dec_dims),
               node_classes=node_classes, bbox_dim=bbox_dim, hidden=hidden,
               m_hidden=m_hidden, edge_classes=edge_classes,
               pos_classes=pos_classes, polar_dim=polar_dim, out_pad=out_pad,
               d_dec=d_dec, node_slab_w=node_slab_w, w_off=w_off, v_off=v_off)
    return w_slab, v_slab, cfg


# ----------------------------------------------------------------------------
# Fused forward kernel
# ----------------------------------------------------------------------------
def make_e2e_kernel(cfg):
    w_off, v_off = cfg["w_off"], cfg["v_off"]
    nc, bb = cfg["node_classes"], cfg["bbox_dim"]
    hid = cfg["hidden"]

    def kernel(h_ref, adj_ref, eidx_ref, polar_ref, w_ref, v_ref,
               nodes_out_ref, edges_out_ref):
        vecs = v_ref[...]                       # whole f32 bias/LN slab (~2 vregs)

        def W(name):                            # bf16 weight window (ref slice)
            r, nr, ncol = w_off[name]
            return w_ref[r:r + nr, 0:ncol]

        def V(name):                            # f32 (1, w) bias / LN row
            r, _, ncol = v_off[name]
            return vecs[r:r + 1, 0:ncol]

        def mm(a, w):                           # bf16 MXU, f32 accumulate
            return jnp.dot(a.astype(jnp.bfloat16), w,
                           preferred_element_type=jnp.float32)

        def layer_norm(y, g, b):
            mu = jnp.mean(y, axis=-1, keepdims=True)
            var = jnp.mean(jnp.square(y - mu), axis=-1, keepdims=True)
            return (y - mu) * jax.lax.rsqrt(var + 1e-5) * g + b

        def sage(x, adj, tag, i):
            # DGL SAGEConv(aggregator='pool', activation=relu)
            pooled = jnp.maximum(mm(x, W(f"{tag}{i}_wp")) + V(f"{tag}{i}_bp"), 0.0)
            # Masked max over in-neighbors. Exact: pooled >= 0 post-ReLU, so
            # max(adj * pooled) equals the neighbor max; zero-in-degree rows
            # naturally give the 0 fill.
            neigh = jnp.max(adj[:, :, None] * pooled[None, :, :], axis=1)
            z = (mm(x, W(f"{tag}{i}_ws")) + mm(neigh, W(f"{tag}{i}_wn"))
                 + V(f"{tag}{i}_b"))
            return jnp.maximum(z, 0.0)

        adjs = adj_ref[...]
        adj_enc, adj_full = adjs[0], adjs[1]

        # ---------------- encoder over the edge-dropped graph ----------------
        x = h_ref[...]
        for i in range(cfg["n_enc"]):
            x = sage(x, adj_enc, "enc", i)
        h_enc = x
        n_nodes = h_enc.shape[0]

        # -------- node heads: node_pred + bbox as one stacked matmul ---------
        yh = mm(h_enc, W("node_w")) + V("node_b")
        node_pred = layer_norm(yh[:, :nc], V("g_node"), V("b_node"))
        bbox_pred = layer_norm(yh[:, nc:nc + bb], V("g_bbox"), V("b_bbox"))

        # softmax of class logits; divide moved onto the EUP reciprocal slot
        m = jnp.max(node_pred, axis=-1, keepdims=True)
        ex = jnp.exp(node_pred - m)
        cls_soft = ex * pl.reciprocal(jnp.sum(ex, axis=-1, keepdims=True),
                                      approx=True)

        # -------- edge heads: W1 pushed through the per-edge gather ----------
        # p[n] = [h_enc[n] | softmax(cls)[n]] @ [W1_u | W1_v]  (node granularity)
        p = mm(h_enc, W("w1h_uv")) + mm(cls_soft, W("w1c_uv"))   # (N, 4*hid)
        p_u, p_v = p[:, :2 * hid], p[:, 2 * hid:]
        # exact index gather: iota one-hot select-sum (no f32 matmul gather)
        eidx = eidx_ref[...]                                      # (E, 2) int32
        n_edges = eidx.shape[0]
        node_iota = jax.lax.broadcasted_iota(jnp.int32, (n_edges, n_nodes), 1)
        sel_u = (node_iota == eidx[:, 0:1]).astype(jnp.float32)[:, :, None]
        sel_v = (node_iota == eidx[:, 1:2]).astype(jnp.float32)[:, :, None]
        y = (jnp.sum(sel_u * p_u[None, :, :], axis=1)
             + jnp.sum(sel_v * p_v[None, :, :], axis=1)
             + mm(polar_ref[...], W("w1_polar")) + V("b1"))       # (E, 2*hid)
        a_e = jnp.maximum(layer_norm(y[:, :hid], V("g_e"), V("b_e")), 0.0)
        a_r = jnp.maximum(layer_norm(y[:, hid:], V("g_r"), V("b_r")), 0.0)
        # TODO(synk): nn.Dropout runs with eval (identity) semantics.
        # block-diagonal W2 as two lane-dense matmuls (no activation concat)
        edges_out_ref[...] = mm(a_e, W("w2_e")) + mm(a_r, W("w2_r")) + V("b2")

        # ---------------- decoder over the original (un-dropped) graph -------
        x = h_enc
        for i in range(cfg["n_dec"]):
            x = sage(x, adj_full, "dec", i)

        # lane-dense node output slab: [node_pred | bbox | h_dec | 0-pad]
        pad = cfg["node_slab_w"] - (nc + bb + cfg["d_dec"])
        parts = [node_pred, bbox_pred, x]
        if pad:
            parts.append(jnp.zeros((n_nodes, pad), jnp.float32))
        nodes_out_ref[...] = jnp.concatenate(parts, axis=-1)

    return kernel


# ----------------------------------------------------------------------------
# Wrapper: one VMEM-resident pallas_call (6 input DMAs, 2 output DMAs)
# ----------------------------------------------------------------------------
def e2e_forward(cfg, w_slab, v_slab, h, adj_pair, edge_idx, polar):
    n_nodes = h.shape[0]
    n_edges = polar.shape[0]
    kernel = make_e2e_kernel(cfg)
    vmem = pl.BlockSpec(memory_space=pltpu.MemorySpace.VMEM)

    nodes_slab, edges_slab = pl.pallas_call(
        kernel,
        out_shape=(
            jax.ShapeDtypeStruct((n_nodes, cfg["node_slab_w"]), jnp.float32),
            jax.ShapeDtypeStruct((n_edges, cfg["out_pad"]), jnp.float32)),
        in_specs=[vmem] * 6,
        out_specs=(vmem, vmem),
    )(h, adj_pair, edge_idx, polar, w_slab, v_slab)

    nc, bb = cfg["node_classes"], cfg["bbox_dim"]
    ce, cp = cfg["edge_classes"], cfg["pos_classes"]
    node_pred = nodes_slab[:, :nc]
    bbox_pred = nodes_slab[:, nc:nc + bb]
    h_dec = nodes_slab[:, nc + bb:nc + bb + cfg["d_dec"]]
    edges_pred = edges_slab[:, :ce]
    discrete_pos = edges_slab[:, ce:ce + cp]
    return node_pred, edges_pred, h_dec, bbox_pred, discrete_pos


# ----------------------------------------------------------------------------
if __name__ == "__main__":
    key = jax.random.PRNGKey(0)

    dimensions_layers = [32, 16]
    node_classes, edge_classes, pos_classes = 5, 2, 9
    edge_pred_features = 14
    polar_dim = edge_pred_features - 2 * node_classes   # = 4
    drop_rate = 0.3
    n_nodes = 16

    k_graph, k_h, k_polar, k_drop, k_params = jax.random.split(key, 5)

    # ---- deterministic small graph ----
    ring_src = jnp.arange(n_nodes, dtype=jnp.int32)
    ring_dst = (ring_src + 1) % n_nodes
    extra_src = (jnp.arange(8, dtype=jnp.int32) * 3) % n_nodes
    extra_dst = (jnp.arange(8, dtype=jnp.int32) * 5 + 2) % n_nodes
    added = jax.random.randint(k_graph, (2, 8), 0, n_nodes, dtype=jnp.int32)
    edge_src = jnp.concatenate([ring_src, extra_src, added[0]])
    edge_dst = jnp.concatenate([ring_dst, extra_dst, added[1]])
    n_edges = int(edge_src.shape[0])                     # 32
    # edata['label']: 1 for "real" edges, 0 for "added" edges
    edge_label = jnp.concatenate(
        [jnp.ones(24, jnp.int32), jnp.zeros(8, jnp.int32)])

    # drop_edge: only real edges may be dropped (bernoulli(drop_rate))
    drop_mask = jax.random.bernoulli(k_drop, drop_rate, (n_edges,)) & (edge_label == 1)
    keep = jnp.logical_not(drop_mask).astype(jnp.float32)

    adj_full = jnp.zeros((n_nodes, n_nodes), jnp.float32).at[edge_dst, edge_src].max(
        jnp.ones((n_edges,), jnp.float32))
    adj_enc = jnp.zeros((n_nodes, n_nodes), jnp.float32).at[edge_dst, edge_src].max(keep)
    adj_pair = jnp.stack([adj_enc, adj_full], axis=0)            # (2, N, N) one DMA
    edge_idx = jnp.stack([edge_src, edge_dst], axis=1).astype(jnp.int32)  # (E, 2)

    # ---- inputs ----
    h = jax.random.normal(k_h, (n_nodes, dimensions_layers[0]), jnp.float32)
    polar = jax.random.normal(k_polar, (n_edges, polar_dim), jnp.float32)

    # ---- parameters packed into two slabs ----
    w_slab, v_slab, cfg = build_params(
        k_params, dimensions_layers, node_classes, edge_classes, pos_classes,
        edge_pred_features)

    # ---- run ----
    fwd = jax.jit(functools.partial(e2e_forward, cfg))
    outs = jax.block_until_ready(fwd(w_slab, v_slab, h, adj_pair, edge_idx, polar))

    node_pred, edges_pred, h_dec, bbox_pred, discrete_pos = outs
    assert node_pred.shape == (n_nodes, node_classes)
    assert edges_pred.shape == (n_edges, edge_classes)
    assert h_dec.shape == (n_nodes, dimensions_layers[0])
    assert bbox_pred.shape == (n_nodes, 4)
    assert discrete_pos.shape == (n_edges, pos_classes)
    assert all(bool(jnp.all(jnp.isfinite(o))) for o in outs)

    print("KERNEL_OK")
</pallas_src>

<mosaic_0001>
module attributes {stable_mosaic.version = 11 : i64} {
  func.func @kernel(%arg0: memref<16x32xf32, #tpu.memory_space<vmem>>, %arg1: memref<2x16x16xf32, #tpu.memory_space<vmem>>, %arg2: memref<32x2xi32, #tpu.memory_space<vmem>>, %arg3: memref<32x4xf32, #tpu.memory_space<vmem>>, %arg4: memref<240x128xbf16, #tpu.memory_space<vmem>>, %arg5: memref<15x128xf32, #tpu.memory_space<vmem>>, %arg6: memref<16x128xf32, #tpu.memory_space<vmem>>, %arg7: memref<32x128xf32, #tpu.memory_space<vmem>>) attributes {dimension_semantics = [], scalar_prefetch = 0 : i64, scratch_operands = 0 : i64, tpu.core_type = #tpu.core_type<tc>} {
    %c0 = arith.constant 0 : index
    %c0_0 = arith.constant 0 : index
    %0 = vector.load %arg5[%c0, %c0_0] : memref<15x128xf32, #tpu.memory_space<vmem>>, vector<15x128xf32>
    %c0_1 = arith.constant 0 : index
    %c0_2 = arith.constant 0 : index
    %c0_3 = arith.constant 0 : index
    %1 = vector.load %arg1[%c0_1, %c0_2, %c0_3] : memref<2x16x16xf32, #tpu.memory_space<vmem>>, vector<2x16x16xf32>
    %2 = vector.extract_strided_slice %1 {offsets = [0, 0, 0], sizes = [1, 16, 16], strides = [1, 1, 1]} : vector<2x16x16xf32> to vector<1x16x16xf32>
    %3 = vector.shape_cast %2 : vector<1x16x16xf32> to vector<16x16xf32>
    %4 = vector.extract_strided_slice %1 {offsets = [1, 0, 0], sizes = [1, 16, 16], strides = [1, 1, 1]} : vector<2x16x16xf32> to vector<1x16x16xf32>
    %5 = vector.shape_cast %4 : vector<1x16x16xf32> to vector<16x16xf32>
    %c0_4 = arith.constant 0 : index
    %c0_5 = arith.constant 0 : index
    %6 = vector.load %arg0[%c0_4, %c0_5] : memref<16x32xf32, #tpu.memory_space<vmem>>, vector<16x32xf32>
    %c0_6 = arith.constant 0 : index
    %c0_7 = arith.constant 0 : index
    %7 = vector.load %arg4[%c0_6, %c0_7] : memref<240x128xbf16, #tpu.memory_space<vmem>>, vector<32x32xbf16>
    %8 = arith.truncf %6 : vector<16x32xf32> to vector<16x32xbf16>
    %cst = arith.constant dense<0.000000e+00> : vector<16x32xf32>
    %9 = tpu.matmul %8, %7, %cst {dimension_numbers = #tpu.dot_dimension_numbers<[1], [0], [0], [1], [0, 0, 1, 1], [], []>} : vector<16x32xbf16>, vector<32x32xbf16>, vector<16x32xf32> -> vector<16x32xf32>
    %10 = vector.extract_strided_slice %0 {offsets = [0, 0], sizes = [1, 32], strides = [1, 1]} : vector<15x128xf32> to vector<1x32xf32>
    %11 = vector.broadcast %10 : vector<1x32xf32> to vector<16x32xf32>
    %12 = arith.addf %9, %11 : vector<16x32xf32>
    %cst_8 = arith.constant 0.000000e+00 : f32
    %13 = vector.broadcast %cst_8 : f32 to vector<16x32xf32>
    %14 = arith.maximumf %12, %13 : vector<16x32xf32>
    %15 = vector.shape_cast %3 : vector<16x16xf32> to vector<16x16x1xf32>
    %16 = vector.shape_cast %14 : vector<16x32xf32> to vector<1x16x32xf32>
    %17 = vector.broadcast %15 : vector<16x16x1xf32> to vector<16x16x32xf32>
    %18 = vector.broadcast %16 : vector<1x16x32xf32> to vector<16x16x32xf32>
    %19 = arith.mulf %17, %18 : vector<16x16x32xf32>
    %cst_9 = arith.constant dense<0xFF800000> : vector<16x32xf32>
    %20 = vector.multi_reduction <maximumf>, %19, %cst_9 [1] : vector<16x16x32xf32> to vector<16x32xf32>
    %c32 = arith.constant 32 : index
    %c0_10 = arith.constant 0 : index
    %21 = vector.load %arg4[%c32, %c0_10] : memref<240x128xbf16, #tpu.memory_space<vmem>>, vector<32x16xbf16>
    %22 = arith.truncf %6 : vector<16x32xf32> to vector<16x32xbf16>
    %cst_11 = arith.constant dense<0.000000e+00> : vector<16x16xf32>
    %23 = tpu.matmul %22, %21, %cst_11 {dimension_numbers = #tpu.dot_dimension_numbers<[1], [0], [0], [1], [0, 0, 1, 1], [], []>} : vector<16x32xbf16>, vector<32x16xbf16>, vector<16x16xf32> -> vector<16x16xf32>
    %c64 = arith.constant 64 : index
    %c0_12 = arith.constant 0 : index
    %24 = vector.load %arg4[%c64, %c0_12] : memref<240x128xbf16, #tpu.memory_space<vmem>>, vector<32x16xbf16>
    %25 = arith.truncf %20 : vector<16x32xf32> to vector<16x32xbf16>
    %cst_13 = arith.constant dense<0.000000e+00> : vector<16x16xf32>
    %26 = tpu.matmul %25, %24, %cst_13 {dimension_numbers = #tpu.dot_dimension_numbers<[1], [0], [0], [1], [0, 0, 1, 1], [], []>} : vector<16x32xbf16>, vector<32x16xbf16>, vector<16x16xf32> -> vector<16x16xf32>
    %27 = arith.addf %23, %26 : vector<16x16xf32>
    %28 = vector.extract_strided_slice %0 {offsets = [1, 0], sizes = [1, 16], strides = [1, 1]} : vector<15x128xf32> to vector<1x16xf32>
    %29 = vector.broadcast %28 : vector<1x16xf32> to vector<16x16xf32>
    %30 = arith.addf %27, %29 : vector<16x16xf32>
    %cst_14 = arith.constant 0.000000e+00 : f32
    %31 = vector.broadcast %cst_14 : f32 to vector<16x16xf32>
    %32 = arith.maximumf %30, %31 : vector<16x16xf32>
    %c144 = arith.constant 144 : index
    %c0_15 = arith.constant 0 : index
    %33 = vector.load %arg4[%c144, %c0_15] : memref<240x128xbf16, #tpu.memory_space<vmem>>, vector<16x9xbf16>
    %34 = arith.truncf %32 : vector<16x16xf32> to vector<16x16xbf16>
    %cst_16 = arith.constant dense<0.000000e+00> : vector<16x9xf32>
    %35 = tpu.matmul %34, %33, %cst_16 {dimension_numbers = #tpu.dot_dimension_numbers<[1], [0], [0], [1], [0, 0, 1, 1], [], []>} : vector<16x16xbf16>, vector<16x9xbf16>, vector<16x9xf32> -> vector<16x9xf32>
    %36 = vector.extract_strided_slice %0 {offsets = [4, 0], sizes = [1, 9], strides = [1, 1]} : vector<15x128xf32> to vector<1x9xf32>
    %37 = vector.broadcast %36 : vector<1x9xf32> to vector<16x9xf32>
    %38 = arith.addf %35, %37 : vector<16x9xf32>
    %39 = vector.extract_strided_slice %38 {offsets = [0, 0], sizes = [16, 5], strides = [1, 1]} : vector<16x9xf32> to vector<16x5xf32>
    %40 = vector.extract_strided_slice %0 {offsets = [5, 0], sizes = [1, 5], strides = [1, 1]} : vector<15x128xf32> to vector<1x5xf32>
    %41 = vector.extract_strided_slice %0 {offsets = [6, 0], sizes = [1, 5], strides = [1, 1]} : vector<15x128xf32> to vector<1x5xf32>
    %cst_17 = arith.constant dense<0.000000e+00> : vector<16xf32>
    %42 = vector.multi_reduction <add>, %39, %cst_17 [1] : vector<16x5xf32> to vector<16xf32>
    %43 = vector.shape_cast %42 : vector<16xf32> to vector<16x1xf32>
    %cst_18 = arith.constant 5.000000e+00 : f32
    %44 = vector.broadcast %cst_18 : f32 to vector<16x1xf32>
    %45 = arith.divf %43, %44 : vector<16x1xf32>
    %46 = vector.broadcast %45 : vector<16x1xf32> to vector<16x5xf32>
    %47 = arith.subf %39, %46 : vector<16x5xf32>
    %48 = arith.mulf %47, %47 : vector<16x5xf32>
    %cst_19 = arith.constant dense<0.000000e+00> : vector<16xf32>
    %49 = vector.multi_reduction <add>, %48, %cst_19 [1] : vector<16x5xf32> to vector<16xf32>
    %50 = vector.shape_cast %49 : vector<16xf32> to vector<16x1xf32>
    %cst_20 = arith.constant 5.000000e+00 : f32
    %51 = vector.broadcast %cst_20 : f32 to vector<16x1xf32>
    %52 = arith.divf %50, %51 : vector<16x1xf32>
    %53 = vector.broadcast %45 : vector<16x1xf32> to vector<16x5xf32>
    %54 = arith.subf %39, %53 : vector<16x5xf32>
    %cst_21 = arith.constant 9.99999974E-6 : f32
    %55 = vector.broadcast %cst_21 : f32 to vector<16x1xf32>
    %56 = arith.addf %52, %55 : vector<16x1xf32>
    %57 = math.rsqrt %56 : vector<16x1xf32>
    %58 = vector.broadcast %57 : vector<16x1xf32> to vector<16x5xf32>
    %59 = arith.mulf %54, %58 : vector<16x5xf32>
    %60 = vector.broadcast %40 : vector<1x5xf32> to vector<16x5xf32>
    %61 = arith.mulf %59, %60 : vector<16x5xf32>
    %62 = vector.broadcast %41 : vector<1x5xf32> to vector<16x5xf32>
    %63 = arith.addf %61, %62 : vector<16x5xf32>
    %64 = vector.extract_strided_slice %38 {offsets = [0, 5], sizes = [16, 4], strides = [1, 1]} : vector<16x9xf32> to vector<16x4xf32>
    %65 = vector.extract_strided_slice %0 {offsets = [7, 0], sizes = [1, 4], strides = [1, 1]} : vector<15x128xf32> to vector<1x4xf32>
    %66 = vector.extract_strided_slice %0 {offsets = [8, 0], sizes = [1, 4], strides = [1, 1]} : vector<15x128xf32> to vector<1x4xf32>
    %cst_22 = arith.constant dense<0.000000e+00> : vector<16xf32>
    %67 = vector.multi_reduction <add>, %64, %cst_22 [1] : vector<16x4xf32> to vector<16xf32>
    %68 = vector.shape_cast %67 : vector<16xf32> to vector<16x1xf32>
    %cst_23 = arith.constant 4.000000e+00 : f32
    %69 = vector.broadcast %cst_23 : f32 to vector<16x1xf32>
    %70 = arith.divf %68, %69 : vector<16x1xf32>
    %71 = vector.broadcast %70 : vector<16x1xf32> to vector<16x4xf32>
    %72 = arith.subf %64, %71 : vector<16x4xf32>
    %73 = arith.mulf %72, %72 : vector<16x4xf32>
    %cst_24 = arith.constant dense<0.000000e+00> : vector<16xf32>
    %74 = vector.multi_reduction <add>, %73, %cst_24 [1] : vector<16x4xf32> to vector<16xf32>
    %75 = vector.shape_cast %74 : vector<16xf32> to vector<16x1xf32>
    %cst_25 = arith.constant 4.000000e+00 : f32
    %76 = vector.broadcast %cst_25 : f32 to vector<16x1xf32>
    %77 = arith.divf %75, %76 : vector<16x1xf32>
    %78 = vector.broadcast %70 : vector<16x1xf32> to vector<16x4xf32>
    %79 = arith.subf %64, %78 : vector<16x4xf32>
    %cst_26 = arith.constant 9.99999974E-6 : f32
    %80 = vector.broadcast %cst_26 : f32 to vector<16x1xf32>
    %81 = arith.addf %77, %80 : vector<16x1xf32>
    %82 = math.rsqrt %81 : vector<16x1xf32>
    %83 = vector.broadcast %82 : vector<16x1xf32> to vector<16x4xf32>
    %84 = arith.mulf %79, %83 : vector<16x4xf32>
    %85 = vector.broadcast %65 : vector<1x4xf32> to vector<16x4xf32>
    %86 = arith.mulf %84, %85 : vector<16x4xf32>
    %87 = vector.broadcast %66 : vector<1x4xf32> to vector<16x4xf32>
    %88 = arith.addf %86, %87 : vector<16x4xf32>
    %cst_27 = arith.constant dense<0xFF800000> : vector<16xf32>
    %89 = vector.multi_reduction <maximumf>, %63, %cst_27 [1] : vector<16x5xf32> to vector<16xf32>
    %90 = vector.shape_cast %89 : vector<16xf32> to vector<16x1xf32>
    %91 = vector.broadcast %90 : vector<16x1xf32> to vector<16x5xf32>
    %92 = arith.subf %63, %91 : vector<16x5xf32>
    %93 = math.exp %92 : vector<16x5xf32>
    %cst_28 = arith.constant dense<0.000000e+00> : vector<16xf32>
    %94 = vector.multi_reduction <add>, %93, %cst_28 [1] : vector<16x5xf32> to vector<16xf32>
    %95 = vector.shape_cast %94 : vector<16xf32> to vector<16x1xf32>
    %96 = tpu.reciprocal %95 {approx = true} : vector<16x1xf32> -> vector<16x1xf32>
    %97 = vector.broadcast %96 : vector<16x1xf32> to vector<16x5xf32>
    %98 = arith.mulf %93, %97 : vector<16x5xf32>
    %c160 = arith.constant 160 : index
    %c0_29 = arith.constant 0 : index
    %99 = vector.load %arg4[%c160, %c0_29] : memref<240x128xbf16, #tpu.memory_space<vmem>>, vector<16x64xbf16>
    %100 = arith.truncf %32 : vector<16x16xf32> to vector<16x16xbf16>
    %cst_30 = arith.constant dense<0.000000e+00> : vector<16x64xf32>
    %101 = tpu.matmul %100, %99, %cst_30 {dimension_numbers = #tpu.dot_dimension_numbers<[1], [0], [0], [1], [0, 0, 1, 1], [], []>} : vector<16x16xbf16>, vector<16x64xbf16>, vector<16x64xf32> -> vector<16x64xf32>
    %c176 = arith.constant 176 : index
    %c0_31 = arith.constant 0 : index
    %102 = vector.load %arg4[%c176, %c0_31] : memref<240x128xbf16, #tpu.memory_space<vmem>>, vector<5x64xbf16>
    %103 = arith.truncf %98 : vector<16x5xf32> to vector<16x5xbf16>
    %cst_32 = arith.constant dense<0.000000e+00> : vector<16x64xf32>
    %104 = tpu.matmul %103, %102, %cst_32 {dimension_numbers = #tpu.dot_dimension_numbers<[1], [0], [0], [1], [0, 0, 1, 1], [], []>} : vector<16x5xbf16>, vector<5x64xbf16>, vector<16x64xf32> -> vector<16x64xf32>
    %105 = arith.addf %101, %104 : vector<16x64xf32>
    %106 = vector.extract_strided_slice %105 {offsets = [0, 0], sizes = [16, 32], strides = [1, 1]} : vector<16x64xf32> to vector<16x32xf32>
    %107 = vector.extract_strided_slice %105 {offsets = [0, 32], sizes = [16, 32], strides = [1, 1]} : vector<16x64xf32> to vector<16x32xf32>
    %c0_33 = arith.constant 0 : index
    %c0_34 = arith.constant 0 : index
    %108 = vector.load %arg2[%c0_33, %c0_34] : memref<32x2xi32, #tpu.memory_space<vmem>>, vector<32x2xi32>
    %109 = tpu.iota {dimensions = array<i32: 1>} : vector<32x16xi32>
    %110 = vector.extract_strided_slice %108 {offsets = [0, 0], sizes = [32, 1], strides = [1, 1]} : vector<32x2xi32> to vector<32x1xi32>
    %111 = vector.broadcast %110 : vector<32x1xi32> to vector<32x16xi32>
    %112 = arith.cmpi eq, %109, %111 : vector<32x16xi32>
    %113 = arith.extui %112 : vector<32x16xi1> to vector<32x16xi32>
    %114 = arith.sitofp %113 : vector<32x16xi32> to vector<32x16xf32>
    %115 = vector.shape_cast %114 : vector<32x16xf32> to vector<32x16x1xf32>
    %116 = vector.extract_strided_slice %108 {offsets = [0, 1], sizes = [32, 1], strides = [1, 1]} : vector<32x2xi32> to vector<32x1xi32>
    %117 = vector.broadcast %116 : vector<32x1xi32> to vector<32x16xi32>
    %118 = arith.cmpi eq, %109, %117 : vector<32x16xi32>
    %119 = arith.extui %118 : vector<32x16xi1> to vector<32x16xi32>
    %120 = arith.sitofp %119 : vector<32x16xi32> to vector<32x16xf32>
    %121 = vector.shape_cast %120 : vector<32x16xf32> to vector<32x16x1xf32>
    %122 = vector.shape_cast %106 : vector<16x32xf32> to vector<1x16x32xf32>
    %123 = vector.broadcast %115 : vector<32x16x1xf32> to vector<32x16x32xf32>
    %124 = vector.broadcast %122 : vector<1x16x32xf32> to vector<32x16x32xf32>
    %125 = arith.mulf %123, %124 : vector<32x16x32xf32>
    %cst_35 = arith.constant dense<0.000000e+00> : vector<32x32xf32>
    %126 = vector.multi_reduction <add>, %125, %cst_35 [1] : vector<32x16x32xf32> to vector<32x32xf32>
    %127 = vector.shape_cast %107 : vector<16x32xf32> to vector<1x16x32xf32>
    %128 = vector.broadcast %121 : vector<32x16x1xf32> to vector<32x16x32xf32>
    %129 = vector.broadcast %127 : vector<1x16x32xf32> to vector<32x16x32xf32>
    %130 = arith.mulf %128, %129 : vector<32x16x32xf32>
    %cst_36 = arith.constant dense<0.000000e+00> : vector<32x32xf32>
    %131 = vector.multi_reduction <add>, %130, %cst_36 [1] : vector<32x16x32xf32> to vector<32x32xf32>
    %132 = arith.addf %126, %131 : vector<32x32xf32>
    %c0_37 = arith.constant 0 : index
    %c0_38 = arith.constant 0 : index
    %133 = vector.load %arg3[%c0_37, %c0_38] : memref<32x4xf32, #tpu.memory_space<vmem>>, vector<32x4xf32>
    %c192 = arith.constant 192 : index
    %c0_39 = arith.constant 0 : index
    %134 = vector.load %arg4[%c192, %c0_39] : memref<240x128xbf16, #tpu.memory_space<vmem>>, vector<4x32xbf16>
    %135 = arith.truncf %133 : vector<32x4xf32> to vector<32x4xbf16>
    %cst_40 = arith.constant dense<0.000000e+00> : vector<32x32xf32>
    %136 = tpu.matmul %135, %134, %cst_40 {dimension_numbers = #tpu.dot_dimension_numbers<[1], [0], [0], [1], [0, 0, 1, 1], [], []>} : vector<32x4xbf16>, vector<4x32xbf16>, vector<32x32xf32> -> vector<32x32xf32>
    %137 = arith.addf %132, %136 : vector<32x32xf32>
    %138 = vector.extract_strided_slice %0 {offsets = [9, 0], sizes = [1, 32], strides = [1, 1]} : vector<15x128xf32> to vector<1x32xf32>
    %139 = vector.broadcast %138 : vector<1x32xf32> to vector<32x32xf32>
    %140 = arith.addf %137, %139 : vector<32x32xf32>
    %141 = vector.extract_strided_slice %140 {offsets = [0, 0], sizes = [32, 16], strides = [1, 1]} : vector<32x32xf32> to vector<32x16xf32>
    %142 = vector.extract_strided_slice %0 {offsets = [10, 0], sizes = [1, 16], strides = [1, 1]} : vector<15x128xf32> to vector<1x16xf32>
    %143 = vector.extract_strided_slice %0 {offsets = [11, 0], sizes = [1, 16], strides = [1, 1]} : vector<15x128xf32> to vector<1x16xf32>
    %cst_41 = arith.constant dense<0.000000e+00> : vector<32xf32>
    %144 = vector.multi_reduction <add>, %141, %cst_41 [1] : vector<32x16xf32> to vector<32xf32>
    %145 = vector.shape_cast %144 : vector<32xf32> to vector<32x1xf32>
    %cst_42 = arith.constant 1.600000e+01 : f32
    %146 = vector.broadcast %cst_42 : f32 to vector<32x1xf32>
    %147 = arith.divf %145, %146 : vector<32x1xf32>
    %148 = vector.broadcast %147 : vector<32x1xf32> to vector<32x16xf32>
    %149 = arith.subf %141, %148 : vector<32x16xf32>
    %150 = arith.mulf %149, %149 : vector<32x16xf32>
    %cst_43 = arith.constant dense<0.000000e+00> : vector<32xf32>
    %151 = vector.multi_reduction <add>, %150, %cst_43 [1] : vector<32x16xf32> to vector<32xf32>
    %152 = vector.shape_cast %151 : vector<32xf32> to vector<32x1xf32>
    %cst_44 = arith.constant 1.600000e+01 : f32
    %153 = vector.broadcast %cst_44 : f32 to vector<32x1xf32>
    %154 = arith.divf %152, %153 : vector<32x1xf32>
    %155 = vector.broadcast %147 : vector<32x1xf32> to vector<32x16xf32>
    %156 = arith.subf %141, %155 : vector<32x16xf32>
    %cst_45 = arith.constant 9.99999974E-6 : f32
    %157 = vector.broadcast %cst_45 : f32 to vector<32x1xf32>
    %158 = arith.addf %154, %157 : vector<32x1xf32>
    %159 = math.rsqrt %158 : vector<32x1xf32>
    %160 = vector.broadcast %159 : vector<32x1xf32> to vector<32x16xf32>
    %161 = arith.mulf %156, %160 : vector<32x16xf32>
    %162 = vector.broadcast %142 : vector<1x16xf32> to vector<32x16xf32>
    %163 = arith.mulf %161, %162 : vector<32x16xf32>
    %164 = vector.broadcast %143 : vector<1x16xf32> to vector<32x16xf32>
    %165 = arith.addf %163, %164 : vector<32x16xf32>
    %cst_46 = arith.constant 0.000000e+00 : f32
    %166 = vector.broadcast %cst_46 : f32 to vector<32x16xf32>
    %167 = arith.maximumf %165, %166 : vector<32x16xf32>
    %168 = vector.extract_strided_slice %140 {offsets = [0, 16], sizes = [32, 16], strides = [1, 1]} : vector<32x32xf32> to vector<32x16xf32>
    %169 = vector.extract_strided_slice %0 {offsets = [12, 0], sizes = [1, 16], strides = [1, 1]} : vector<15x128xf32> to vector<1x16xf32>
    %170 = vector.extract_strided_slice %0 {offsets = [13, 0], sizes = [1, 16], strides = [1, 1]} : vector<15x128xf32> to vector<1x16xf32>
    %cst_47 = arith.constant dense<0.000000e+00> : vector<32xf32>
    %171 = vector.multi_reduction <add>, %168, %cst_47 [1] : vector<32x16xf32> to vector<32xf32>
    %172 = vector.shape_cast %171 : vector<32xf32> to vector<32x1xf32>
    %cst_48 = arith.constant 1.600000e+01 : f32
    %173 = vector.broadcast %cst_48 : f32 to vector<32x1xf32>
    %174 = arith.divf %172, %173 : vector<32x1xf32>
    %175 = vector.broadcast %174 : vector<32x1xf32> to vector<32x16xf32>
    %176 = arith.subf %168, %175 : vector<32x16xf32>
    %177 = arith.mulf %176, %176 : vector<32x16xf32>
    %cst_49 = arith.constant dense<0.000000e+00> : vector<32xf32>
    %178 = vector.multi_reduction <add>, %177, %cst_49 [1] : vector<32x16xf32> to vector<32xf32>
    %179 = vector.shape_cast %178 : vector<32xf32> to vector<32x1xf32>
    %cst_50 = arith.constant 1.600000e+01 : f32
    %180 = vector.broadcast %cst_50 : f32 to vector<32x1xf32>
    %181 = arith.divf %179, %180 : vector<32x1xf32>
    %182 = vector.broadcast %174 : vector<32x1xf32> to vector<32x16xf32>
    %183 = arith.subf %168, %182 : vector<32x16xf32>
    %cst_51 = arith.constant 9.99999974E-6 : f32
    %184 = vector.broadcast %cst_51 : f32 to vector<32x1xf32>
    %185 = arith.addf %181, %184 : vector<32x1xf32>
    %186 = math.rsqrt %185 : vector<32x1xf32>
    %187 = vector.broadcast %186 : vector<32x1xf32> to vector<32x16xf32>
    %188 = arith.mulf %183, %187 : vector<32x16xf32>
    %189 = vector.broadcast %169 : vector<1x16xf32> to vector<32x16xf32>
    %190 = arith.mulf %188, %189 : vector<32x16xf32>
    %191 = vector.broadcast %170 : vector<1x16xf32> to vector<32x16xf32>
    %192 = arith.addf %190, %191 : vector<32x16xf32>
    %cst_52 = arith.constant 0.000000e+00 : f32
    %193 = vector.broadcast %cst_52 : f32 to vector<32x16xf32>
    %194 = arith.maximumf %192, %193 : vector<32x16xf32>
    %c208 = arith.constant 208 : index
    %c0_53 = arith.constant 0 : index
    %195 = vector.load %arg4[%c208, %c0_53] : memref<240x128xbf16, #tpu.memory_space<vmem>>, vector<16x128xbf16>
    %196 = arith.truncf %167 : vector<32x16xf32> to vector<32x16xbf16>
    %cst_54 = arith.constant dense<0.000000e+00> : vector<32x128xf32>
    %197 = tpu.matmul %196, %195, %cst_54 {dimension_numbers = #tpu.dot_dimension_numbers<[1], [0], [0], [1], [0, 0, 1, 1], [], []>} : vector<32x16xbf16>, vector<16x128xbf16>, vector<32x128xf32> -> vector<32x128xf32>
    %c224 = arith.constant 224 : index
    %c0_55 = arith.constant 0 : index
    %198 = vector.load %arg4[%c224, %c0_55] : memref<240x128xbf16, #tpu.memory_space<vmem>>, vector<16x128xbf16>
    %199 = arith.truncf %194 : vector<32x16xf32> to vector<32x16xbf16>
    %cst_56 = arith.constant dense<0.000000e+00> : vector<32x128xf32>
    %200 = tpu.matmul %199, %198, %cst_56 {dimension_numbers = #tpu.dot_dimension_numbers<[1], [0], [0], [1], [0, 0, 1, 1], [], []>} : vector<32x16xbf16>, vector<16x128xbf16>, vector<32x128xf32> -> vector<32x128xf32>
    %201 = arith.addf %197, %200 : vector<32x128xf32>
    %202 = vector.extract_strided_slice %0 {offsets = [14, 0], sizes = [1, 128], strides = [1, 1]} : vector<15x128xf32> to vector<1x128xf32>
    %203 = vector.broadcast %202 : vector<1x128xf32> to vector<32x128xf32>
    %204 = arith.addf %201, %203 : vector<32x128xf32>
    %c0_57 = arith.constant 0 : index
    %c0_58 = arith.constant 0 : index
    %205 = vector.load %arg7[%c0_57, %c0_58] : memref<32x128xf32, #tpu.memory_space<vmem>>, vector<32x128xf32>
    tpu.vector_store %arg7[%c0_57, %c0_58], %204 {strides = array<i32>} : memref<32x128xf32, #tpu.memory_space<vmem>>, vector<32x128xf32>,
    %c96 = arith.constant 96 : index
    %c0_59 = arith.constant 0 : index
    %206 = vector.load %arg4[%c96, %c0_59] : memref<240x128xbf16, #tpu.memory_space<vmem>>, vector<16x16xbf16>
    %207 = arith.truncf %32 : vector<16x16xf32> to vector<16x16xbf16>
    %cst_60 = arith.constant dense<0.000000e+00> : vector<16x16xf32>
    %208 = tpu.matmul %207, %206, %cst_60 {dimension_numbers = #tpu.dot_dimension_numbers<[1], [0], [0], [1], [0, 0, 1, 1], [], []>} : vector<16x16xbf16>, vector<16x16xbf16>, vector<16x16xf32> -> vector<16x16xf32>
    %209 = vector.extract_strided_slice %0 {offsets = [2, 0], sizes = [1, 16], strides = [1, 1]} : vector<15x128xf32> to vector<1x16xf32>
    %210 = vector.broadcast %209 : vector<1x16xf32> to vector<16x16xf32>
    %211 = arith.addf %208, %210 : vector<16x16xf32>
    %cst_61 = arith.constant 0.000000e+00 : f32
    %212 = vector.broadcast %cst_61 : f32 to vector<16x16xf32>
    %213 = arith.maximumf %211, %212 : vector<16x16xf32>
    %214 = vector.shape_cast %5 : vector<16x16xf32> to vector<16x16x1xf32>
    %215 = vector.shape_cast %213 : vector<16x16xf32> to vector<1x16x16xf32>
    %216 = vector.broadcast %214 : vector<16x16x1xf32> to vector<16x16x16xf32>
    %217 = vector.broadcast %215 : vector<1x16x16xf32> to vector<16x16x16xf32>
    %218 = arith.mulf %216, %217 : vector<16x16x16xf32>
    %cst_62 = arith.constant dense<0xFF800000> : vector<16x16xf32>
    %219 = vector.multi_reduction <maximumf>, %218, %cst_62 [1] : vector<16x16x16xf32> to vector<16x16xf32>
    %c112 = arith.constant 112 : index
    %c0_63 = arith.constant 0 : index
    %220 = vector.load %arg4[%c112, %c0_63] : memref<240x128xbf16, #tpu.memory_space<vmem>>, vector<16x32xbf16>
    %221 = arith.truncf %32 : vector<16x16xf32> to vector<16x16xbf16>
    %cst_64 = arith.constant dense<0.000000e+00> : vector<16x32xf32>
    %222 = tpu.matmul %221, %220, %cst_64 {dimension_numbers = #tpu.dot_dimension_numbers<[1], [0], [0], [1], [0, 0, 1, 1], [], []>} : vector<16x16xbf16>, vector<16x32xbf16>, vector<16x32xf32> -> vector<16x32xf32>
    %c128 = arith.constant 128 : index
    %c0_65 = arith.constant 0 : index
    %223 = vector.load %arg4[%c128, %c0_65] : memref<240x128xbf16, #tpu.memory_space<vmem>>, vector<16x32xbf16>
    %224 = arith.truncf %219 : vector<16x16xf32> to vector<16x16xbf16>
    %cst_66 = arith.constant dense<0.000000e+00> : vector<16x32xf32>
    %225 = tpu.matmul %224, %223, %cst_66 {dimension_numbers = #tpu.dot_dimension_numbers<[1], [0], [0], [1], [0, 0, 1, 1], [], []>} : vector<16x16xbf16>, vector<16x32xbf16>, vector<16x32xf32> -> vector<16x32xf32>
    %226 = arith.addf %222, %225 : vector<16x32xf32>
    %227 = vector.extract_strided_slice %0 {offsets = [3, 0], sizes = [1, 32], strides = [1, 1]} : vector<15x128xf32> to vector<1x32xf32>
    %228 = vector.broadcast %227 : vector<1x32xf32> to vector<16x32xf32>
    %229 = arith.addf %226, %228 : vector<16x32xf32>
    %cst_67 = arith.constant 0.000000e+00 : f32
    %230 = vector.broadcast %cst_67 : f32 to vector<16x32xf32>
    %231 = arith.maximumf %229, %230 : vector<16x32xf32>
    %cst_68 = arith.constant 0.000000e+00 : f32
    %232 = vector.broadcast %cst_68 : f32 to vector<16x87xf32>
    %233 = tpu.concatenate %63, %88, %231, %232 in 1 : vector<16x5xf32>, vector<16x4xf32>, vector<16x32xf32>, vector<16x87xf32> -> vector<16x128xf32>
    %c0_69 = arith.constant 0 : index
    %c0_70 = arith.constant 0 : index
    %234 = vector.load %arg6[%c0_69, %c0_70] : memref<16x128xf32, #tpu.memory_space<vmem>>, vector<16x128xf32>
    tpu.vector_store %arg6[%c0_69, %c0_70], %233 {strides = array<i32>} : memref<16x128xf32, #tpu.memory_space<vmem>>, vector<16x128xf32>,
    return
  }
}

</mosaic_0001>

<bundles_post_ra>
// kernel: e2e_forward.1
= control target key start
LH: loop header
LB: loop body
LE: loop exit
PB: predicated region body
PF: predicated region fallthrough
CT: control target
= control target key end

     0   :  { %13 = vsyncpa [#allocation3], 0  ;;  %s5370_s27 = smov [#allocation2]   ;;  %s5371_s29 = smov 64   ;;  %s8376_s0 = inlined_call_operand.vmem [shape: f32[16,32], index: 0, kind: input, shape index: {}]   ;;  %s8377_s1 = inlined_call_operand.vmem [shape: f32[2,16,16], index: 1, kind: input, shape index: {}]   ;;  %s8378_s2 = inlined_call_operand.vmem [shape: s32[32,2], index: 2, kind: input, shape index: {}]   ;;  %s8379_s3 = inlined_call_operand.vmem [shape: f32[32,4], index: 3, kind: input, shape index: {}]   ;;  %s8380_s4 = inlined_call_operand.hbm [shape: bf16[240,128], index: 4, kind: input, shape index: {}]   ;;  %s8381_s5 = inlined_call_operand.vmem [shape: f32[15,128], index: 5, kind: input, shape index: {}]   ;;  %s8382_s6 = inlined_call_operand.vmem [shape: f32[16,128], index: 6, kind: output, shape index: {0}]   ;;  %s8383_s7 = inlined_call_operand.vmem [shape: f32[32,128], index: 7, kind: output, shape index: {1}]  }
   0x1   :  { %s26_s26 = sshll.u32 %s8380_s4, 4  ;;  %s28_s28 = sshll.u32 %s5370_s27, 4  ;;  %s27_s26 = int_to_ptr.hbm [resolvable:$true] %s26_s26  ;;  %s29_s28 = int_to_ptr.vmem [resolvable:$true] %s28_s28 }
   0x2   :  { %s5372_s30 = smov 4  }
   0x3   :  { %34 = dma.hbm_to_vmem [thread:$0]  %s27_s26, 1920, %s29_s28, [#allocation3], %s5371_s29, %s5371_s29, %s5372_s30  }
   0x4   :  { %5368 = dma.done.wait [#allocation3], 1920  }
   0x5   :  { %5369 = vsyncadd [#allocation3], 4294965376  ;;  %v89_v0 = vlaneseq  ;;  %v4884_v3 = vld [vmem:[#allocation2 + $0x8] sm:$0xff]  ;;  %v44_v4 = vld [vmem:[%s8377_s1] sm:$0xff]  ;;  %vm68_vm0 = vcmask 261120   ;;  %vm807_vm1 = vcmask 1041408  }
   0x6   :  { %v101_v5 = vperm.slane %v44_v4, 1  ;;  %v114_v6 = vperm.slane %v44_v4, 2  ;;  %78 = vmatpush.bf16.msra.mxu0 %v4884_v3  ;;  %v4883_v7 = vld [vmem:[#allocation2] sm:$0xff]  ;;  %v49_v9 = vld [vmem:[%s8376_s0 + $0x8] sm:$0xff]  ;;  %v88_v10 = vperm.slane %v44_v4, 0  ;;  %v166_v12 = vperm.slane %v44_v4, 6 }
   0x7   :  { %v5430_v1 = vshrl.u32 %v89_v0, 7  ;;  %v48_v8 = vld [vmem:[%s8376_s0] sm:$0xff]  ;;  %v45_v13 = vld [vmem:[%s8377_s1 + $0x8] sm:$0xff]  ;;  %v127_v15 = vperm.slane %v44_v4, 3  ;;  %v153_v16 = vperm.slane %v44_v4, 5  ;;  %v140_v17 = vperm.slane %v44_v4, 4 }
   0x8   :  { %v5447_v11 = vpack.c.bf16 %v49_v9, %v48_v8  ;;  %v231_v14 = vperm.slane %v45_v13, 3  ;;  %v205_v18 = vperm.slane %v45_v13, 1  ;;  %v179_v19 = vperm.slane %v44_v4, 7  ;;  %v5479_v42 = vld [vmem:[%s8381_s5] sm:$0xff]  ;;  %s5375_s24 = smov 5   ;;  %s5380_s12 = smov 16  }
   0x9   :  { %8563 = vst [vmem:[#allocation5_spill] sm:$0xff] %v5430_v1  ;;  %4913 = vset.pattern.permute.xlu1 %v5430_v1  ;;  %v5434_v2 = vadd.s32 8, %v5430_v1  ;;  %4914 = vset.pattern.permute.xlu2 %v5430_v1  ;;  %v192_v20 = vperm.slane %v45_v13, 0  ;;  %v218_v21 = vperm.slane %v45_v13, 2  ;;  %v270_v22 = vperm.slane %v45_v13, 6  ;;  %s5382_s16 = smov 96  }
   0xa   :  { %79 = vmatpush.bf16.msra.mxu0 %v4883_v7  ;;  %v244_v23 = vperm.slane %v45_v13, 4  ;;  %v257_v24 = vperm.slane %v45_v13, 5  ;;  %v283_v25 = vperm.slane %v45_v13, 7  ;;  %v55_v46 = vperm.slane %v5479_v42, 0  ;;  %s5383_s23 = smov 112   ;;  %s5385_s30 = smov 9  }
   0xb   :  { %8564 = vst [vmem:[#allocation6_spill] sm:$0xff] %v5434_v2  ;;  %4912 = vset.pattern.permute.xlu0 %v5434_v2  ;;  %vm528_vm2 = vcmask 1041409   ;;  %vm530_vm3 = vcmask 1042434   ;;  %vm532_vm4 = vcmask 1043459   ;;  %vm534_vm5 = vcmask 1044484  }
   0xc   :  { %vm536_vm6 = vcmask 1045509   ;;  %vm8385_vm7 = vcmask 1046534   ;;  %vm8384_vm8 = vcmask 1047559   ;;  %vm704_vm9 = vcmask 31744  }
   0xd   :  { %4816 = vmatmul.msk.bf16.vlgmr.msra.gmra.mxu0 %vm68_vm0, %v5447_v11  ;;  %vm620_vm10 = vcmask 130048   ;;  %vm638_vm11 = vcmask 39936  }
  0x11   :  { %106 = vperm.xlu1 %4913, %v101_v5   ;;  %119 = vperm.xlu2 %4914, %v114_v6  }
  0x13   :  { %99 = vperm.xlu0 %4912, %v88_v10  }
  0x19   :  { %4915 = vset.pattern.permute.xlu1 %v5434_v2  ;;  %4917 = vset.pattern.permute.xlu2 %v5434_v2 }
  0x1b   :  { %177 = vperm.xlu0 %4912, %v166_v12  }
  0x21   :  { %112 = vperm.xlu1 %4915, %v101_v5   ;;  %125 = vperm.xlu2 %4917, %v114_v6  }
  0x23   :  { %242 = vperm.xlu0 %4912, %v231_v14  }
  0x29   :  { %4916 = vset.pattern.permute.xlu1 %v5430_v1  ;;  %138 = vperm.xlu2 %4917, %v127_v15  }
  0x2b   :  { %4924 = vset.pattern.permute.xlu0 %v5430_v1 }
  0x31   :  { %132 = vperm.xlu1 %4916, %v127_v15   ;;  %4919 = vset.pattern.permute.xlu2 %v5430_v1 }
  0x33   :  { %93 = vperm.xlu0 %4924, %v88_v10  }
  0x39   :  { %4918 = vset.pattern.permute.xlu1 %v5434_v2  ;;  %158 = vperm.xlu2 %4919, %v153_v16  }
  0x3b   :  { %145 = vperm.xlu0 %4924, %v140_v17  }
  0x41   :  { %151 = vperm.xlu1 %4918, %v140_v17   ;;  %171 = vperm.xlu2 %4919, %v166_v12  }
  0x43   :  { %210 = vperm.xlu0 %4924, %v205_v18  }
  0x49   :  { %164 = vperm.xlu1 %4918, %v153_v16   ;;  %4921 = vset.pattern.permute.xlu2 %v5434_v2 }
  0x4b   :  { %275 = vperm.xlu0 %4924, %v270_v22  }
  0x51   :  { %4920 = vset.pattern.permute.xlu1 %v5430_v1  ;;  %190 = vperm.xlu2 %4921, %v179_v19  }
  0x59   :  { %184 = vperm.xlu1 %4920, %v179_v19   ;;  %203 = vperm.xlu2 %4921, %v192_v20  }
  0x61   :  { %197 = vperm.xlu1 %4920, %v192_v20   ;;  %4923 = vset.pattern.permute.xlu2 %v5430_v1 }
  0x69   :  { %4922 = vset.pattern.permute.xlu1 %v5434_v2  ;;  %223 = vperm.xlu2 %4923, %v218_v21  }
  0x6b   :  { %v120_v26 = vpop.permute.xlu2 %119 }
  0x71   :  { %216 = vperm.xlu1 %4922, %v205_v18   ;;  %236 = vperm.xlu2 %4923, %v231_v14  }
  0x79   :  { %229 = vperm.xlu1 %4922, %v218_v21   ;;  %4926 = vset.pattern.permute.xlu2 %v5434_v2 }
  0x7b   :  { %v126_v28 = vpop.permute.xlu2 %125 }
  0x81   :  { %4925 = vset.pattern.permute.xlu1 %v5430_v1  ;;  %255 = vperm.xlu2 %4926, %v244_v23  }
  0x83   :  { %v107_v27 = vpop.permute.xlu1 %106  ;;  %v139_v30 = vpop.permute.xlu2 %138 }
  0x85   :  { %v100_v35 = vpop.permute.xlu0 %99 }
  0x89   :  { %249 = vperm.xlu1 %4925, %v244_v23   ;;  %268 = vperm.xlu2 %4926, %v257_v24  }
  0x8a   :  { %v81_v40 = vpop.f32.mrf.mxu0 }
  0x8b   :  { %v82_v49 = vadd.f32 %v81_v40, %v55_v46 }
  0x8d   :  { %v178_v38 = vpop.permute.xlu0 %177  ;;  %v5484_v52 = vmax.f32 %v82_v49, 0.0 }
  0x8f   :  { %v300_v55 = vmul.f32 %v120_v26, %v5484_v52  ;;  %v298_v61 = vmul.f32 %v107_v27, %v5484_v52 }
  0x91   :  { %262 = vperm.xlu1 %4925, %v257_v24   ;;  %4928 = vset.pattern.permute.xlu2 %v5430_v1  ;;  %v346_v62 = vsel %vm68_vm0, %v300_v55, -inf  ;;  %v337_v10 = vsel %vm68_vm0, %v298_v61, -inf  ;;  %v4885_v61 = vld [vmem:[#allocation2 + $0x10] sm:$0xff] }
  0x92   :  { %v83_v45 = vpop.f32.mrf.mxu0 }
  0x93   :  { %v113_v29 = vpop.permute.xlu1 %112  ;;  %v159_v32 = vpop.permute.xlu2 %158  ;;  %v84_v47 = vadd.f32 %v83_v45, %v55_v46 }
  0x94   :  { %v306_v20 = vmul.f32 %v159_v32, %v5484_v52 }
  0x95   :  { %v243_v43 = vpop.permute.xlu0 %242  ;;  %v5482_v50 = vmax.f32 %v84_v47, 0.0 }
  0x97   :  { %v301_v54 = vmul.f32 %v126_v28, %v5482_v50  ;;  %v299_v57 = vmul.f32 %v113_v29, %v5482_v50  ;;  %v309_v60 = vmul.f32 %v178_v38, %v5482_v50  ;;  %v303_v8 = vmul.f32 %v139_v30, %v5482_v50 }
  0x98   :  { %v297_v13 = vmul.f32 %v100_v35, %v5482_v50  ;;  %v319_v21 = vmul.f32 %v243_v43, %v5482_v50  ;;  %v4886_v35 = vld [vmem:[#allocation2 + $0x18] sm:$0xff] }
  0x99   :  { %4927 = vset.pattern.permute.xlu1 %v5434_v2  ;;  %288 = vperm.xlu2 %4928, %v283_v25   ;;  %v347_v58 = vsel %vm68_vm0, %v301_v54, -inf  ;;  %v338_v5 = vsel %vm68_vm0, %v299_v57, -inf  ;;  %v383_v7 = vsel %vm68_vm0, %v309_v60, -inf  ;;  %v356_v18 = vsel %vm68_vm0, %v303_v8, -inf }
  0x9a   :  { %v348_v4 = vmax.f32 %v346_v62, %v347_v58  ;;  %v339_v14 = vmax.f32 %v337_v10, %v338_v5  ;;  %v329_v23 = vsel %vm68_vm0, %v297_v13, -inf  ;;  %v428_v38 = vsel %vm68_vm0, %v319_v21, -inf  ;;  %597 = vmatpush.bf16.msra.mxu2 %v4886_v35 }
  0x9b   :  { %v172_v34 = vpop.permute.xlu2 %171 }
  0x9c   :  { %v308_v59 = vmul.f32 %v172_v34, %v5484_v52  ;;  %v349_v16 = vrot.slane %v348_v4, 4  ;;  %v340_v24 = vrot.slane %v339_v14, 4 }
  0x9e   :  { %v382_v6 = vsel %vm68_vm0, %v308_v59, -inf  ;;  %v5508_v27 = vmax.f32 %v348_v4, %v349_v16  ;;  %v5514_v40 = vmax.f32 %v339_v14, %v340_v24  ;;  %598 = vmatpush.bf16.msra.mxu2 %v4885_v61 }
  0x9f   :  { %v384_v17 = vmax.f32 %v382_v6, %v383_v7 }
  0xa0   :  { %v351_v46 = vrot.slane %v5508_v27, 2 }
  0xa1   :  { %281 = vperm.xlu1 %4927, %v270_v22   ;;  %v385_v28 = vrot.slane %v384_v17, 4  ;;  %4834 = vmatmul.msk.bf16.vlgmr.msra.gmra.mxu2 %vm68_vm0, %v5447_v11 }
  0xa3   :  { %v133_v31 = vpop.permute.xlu1 %132  ;;  %v5519_v47 = vmax.f32 %v384_v17, %v385_v28 }
  0xa4   :  { %v302_v9 = vmul.f32 %v133_v31, %v5484_v52  ;;  %v373_v31 = vsel %vm68_vm0, %v306_v20, -inf }
  0xa5   :  { %v94_v53 = vpop.permute.xlu0 %93 }
  0xa6   :  { %v296_v12 = vmul.f32 %v94_v53, %v5484_v52  ;;  %v355_v19 = vsel %vm68_vm0, %v302_v9, -inf }
  0xa7   :  { %v357_v29 = vmax.f32 %v355_v19, %v356_v18 }
  0xa8   :  { %v328_v22 = vsel %vm68_vm0, %v296_v12, -inf }
  0xa9   :  { %294 = vperm.xlu1 %4927, %v283_v25   ;;  %v330_v30 = vmax.f32 %v328_v22, %v329_v23  ;;  %v387_v22 = vrot.slane %v5519_v47, 2 }
  0xab   :  { %v5472_v37 = vpop.permute.xlu2 %190  ;;  %v331_v58 = vrot.slane %v330_v30, 4 }
  0xac   :  { %v311_v10 = vmul.f32 %v5472_v37, %v5482_v50 }
  0xad   :  { %v146_v63 = vpop.permute.xlu0 %145 }
  0xae   :  { %v304_v55 = vmul.f32 %v146_v63, %v5484_v52 }
  0xb0   :  { %v364_v7 = vsel %vm68_vm0, %v304_v55, -inf }
  0xb3   :  { %v5468_v33 = vpop.permute.xlu1 %151  ;;  %v204_v41 = vpop.permute.xlu2 %203 }
  0xb4   :  { %v313_v49 = vmul.f32 %v204_v41, %v5482_v50  ;;  %v305_v54 = vmul.f32 %v5468_v33, %v5482_v50 }
  0xb5   :  { %v211_v25 = vpop.permute.xlu0 %210 }
  0xb6   :  { %v314_v32 = vmul.f32 %v211_v25, %v5484_v52  ;;  %v365_v6 = vsel %vm68_vm0, %v305_v54, -inf  ;;  %v4888_v25 = vld [vmem:[#allocation2 + $0x28] sm:$0xff] }
  0xb7   :  { %v366_v19 = vmax.f32 %v364_v7, %v365_v6  ;;  %571 = vmatpush.bf16.msra.mxu1 %v4888_v25 }
  0xb8   :  { %v409_v41 = vsel %vm68_vm0, %v314_v32, -inf }
  0xbb   :  { %v5470_v36 = vpop.permute.xlu1 %164 }
  0xc3   :  { %v224_v48 = vpop.permute.xlu2 %223 }
  0xc4   :  { %v316_v43 = vmul.f32 %v224_v48, %v5484_v52  ;;  %v307_v48 = vmul.f32 %v5470_v36, %v5482_v50  ;;  %v401_v36 = vsel %vm68_vm0, %v313_v49, -inf  ;;  %v367_v49 = vrot.slane %v366_v19, 4 }
  0xc6   :  { %v374_v8 = vsel %vm68_vm0, %v307_v48, -inf }
  0xc7   :  { %v375_v20 = vmax.f32 %v373_v31, %v374_v8 }
  0xcb   :  { %v5474_v39 = vpop.permute.xlu1 %184  ;;  %v237_v56 = vpop.permute.xlu2 %236 }
  0xcc   :  { %v318_v59 = vmul.f32 %v237_v56, %v5484_v52  ;;  %v310_v12 = vmul.f32 %v5474_v39, %v5484_v52  ;;  %v342_v39 = vrot.slane %v5514_v40, 2 }
  0xce   :  { %v427_v13 = vsel %vm68_vm0, %v318_v59, -inf  ;;  %v391_v28 = vsel %vm68_vm0, %v310_v12, -inf }
  0xcf   :  { %v429_v23 = vmax.f32 %v427_v13, %v428_v38  ;;  %v343_v38 = vmax.f32 %v5514_v40, %v342_v39  ;;  %v2603_v13 = vld [vmem:[#allocation2 + $0x60] sm:$0x3] }
  0xd1   :  { %v430_v55 = vrot.slane %v429_v23, 4 }
  0xd3   :  { %v198_v44 = vpop.permute.xlu1 %197  ;;  %v431_v40 = vmax.f32 %v429_v23, %v430_v55 }
  0xd4   :  { %v312_v53 = vmul.f32 %v198_v44, %v5484_v52  ;;  %v418_v44 = vsel %vm68_vm0, %v316_v43, -inf  ;;  %v4887_v43 = vld [vmem:[#allocation2 + $0x20] sm:$0xff] }
  0xd5   :  { %572 = vmatpush.bf16.msra.mxu1 %v4887_v43 }
  0xd6   :  { %v400_v4 = vsel %vm68_vm0, %v312_v53, -inf  ;;  %v376_v53 = vrot.slane %v375_v20, 4 }
  0xd7   :  { %v402_v16 = vmax.f32 %v400_v4, %v401_v36 }
  0xd9   :  { %v403_v31 = vrot.slane %v402_v16, 4 }
  0xdb   :  { %v256_v15 = vpop.permute.xlu2 %255 }
  0xdc   :  { %v321_v33 = vmul.f32 %v256_v15, %v5482_v50  ;;  %v332_v15 = vmax.f32 %v330_v30, %v331_v58 }
  0xde   :  { %v437_v17 = vsel %vm68_vm0, %v321_v33, -inf  ;;  %v333_v32 = vrot.slane %v332_v15, 2 }
  0xe3   :  { %v217_v51 = vpop.permute.xlu1 %216  ;;  %v269_v57 = vpop.permute.xlu2 %268 }
  0xe4   :  { %v315_v34 = vmul.f32 %v217_v51, %v5482_v50  ;;  %v358_v51 = vrot.slane %v357_v29, 4  ;;  %v323_v56 = vmul.f32 %v269_v57, %v5482_v50  ;;  %v5560_v57 = vmax.f32 %v5519_v47, %v387_v22 }
  0xe6   :  { %v410_v60 = vsel %vm68_vm0, %v315_v34, -inf  ;;  %v446_v21 = vsel %vm68_vm0, %v323_v56, -inf  ;;  %v359_v11 = vmax.f32 %v357_v29, %v358_v51  ;;  %v334_v51 = vmax.f32 %v332_v15, %v333_v32 }
  0xe7   :  { %v411_v9 = vmax.f32 %v409_v41, %v410_v60  ;;  %v404_v60 = vmax.f32 %v402_v16, %v403_v31  ;;  %v276_v41 = vpop.permute.xlu0 %275  ;;  %v432_v15 = vrot.slane %v431_v40, 2 }
  0xe8   :  { %v360_v29 = vrot.slane %v359_v11, 2  ;;  %v324_v4 = vmul.f32 %v276_v41, %v5484_v52 }
  0xe9   :  { %v412_v24 = vrot.slane %v411_v9, 4  ;;  %v405_v6 = vrot.slane %v404_v60, 2 }
  0xea   :  { %v361_v56 = vmax.f32 %v359_v11, %v360_v29  ;;  %v433_v11 = vmax.f32 %v431_v40, %v432_v15 }
  0xeb   :  { %v230_v3 = vpop.permute.xlu1 %229  ;;  %v413_v48 = vmax.f32 %v411_v9, %v412_v24  ;;  %v406_v39 = vmax.f32 %v404_v60, %v405_v6 }
  0xec   :  { %v317_v45 = vmul.f32 %v230_v3, %v5482_v50  ;;  %v434_v41 = vrot.slane %v433_v11, 1 }
  0xee   :  { %v419_v62 = vsel %vm68_vm0, %v317_v45, -inf  ;;  %v352_v45 = vmax.f32 %v5508_v27, %v351_v46  ;;  %v368_v27 = vmax.f32 %v366_v19, %v367_v49  ;;  %v377_v46 = vmax.f32 %v375_v20, %v376_v53 }
  0xef   :  { %v420_v14 = vmax.f32 %v418_v44, %v419_v62  ;;  %v344_v62 = vrot.slane %v343_v38, 1  ;;  %v454_v20 = vsel %vm68_vm0, %v324_v4, -inf }
  0xf0   :  { %v353_v44 = vrot.slane %v352_v45, 1  ;;  %v369_v9 = vrot.slane %v368_v27, 2 }
  0xf1   :  { %v421_v30 = vrot.slane %v420_v14, 4 }
  0xf2   :  { %v354_v25 = vmax.f32 %v352_v45, %v353_v44 }
  0xf3   :  { %v422_v58 = vmax.f32 %v420_v14, %v421_v30  ;;  %v289_v23 = vpop.permute.xlu2 %288 }
  0xf4   :  { %v326_v53 = vmul.f32 %v289_v23, %v5484_v52 }
  0xf5   :  { %v423_v36 = vrot.slane %v422_v58, 2 }
  0xfb   :  { %v250_v26 = vpop.permute.xlu1 %249 }
  0xfc   :  { %v320_v63 = vmul.f32 %v250_v26, %v5484_v52  ;;  %v392_v26 = vsel %vm68_vm0, %v311_v10, -inf  ;;  %v378_v10 = vrot.slane %v377_v46, 2 }
  0xfd   :  { %v393_v54 = vmax.f32 %v391_v28, %v392_v26  ;;  %v370_v28 = vmax.f32 %v368_v27, %v369_v9 }
  0xfe   :  { %v436_v18 = vsel %vm68_vm0, %v320_v63, -inf  ;;  %v414_v63 = vrot.slane %v413_v48, 2  ;;  %v379_v30 = vmax.f32 %v377_v46, %v378_v10  ;;  %v482_v10 = vpack.c.bf16 %v354_v25, %v354_v25 }
  0xff   :  { %v438_v34 = vmax.f32 %v436_v18, %v437_v17  ;;  %v394_v33 = vrot.slane %v393_v54, 4  ;;  %v2613_v17 = vsel %vm807_vm1, %v2603_v13, 0  ;;  %v424_v18 = vmax.f32 %v422_v58, %v423_v36 }
 0x100   :  { %v415_v16 = vmax.f32 %v413_v48, %v414_v63  ;;  %2622 = vmatpush.bf16.msrb.mxu1 %v2613_v17  ;;  %v371_v45 = vrot.slane %v370_v28, 1  ;;  %v380_v29 = vrot.slane %v379_v30, 1 }
 0x101   :  { %v439_v59 = vrot.slane %v438_v34, 4  ;;  %v395_v14 = vmax.f32 %v393_v54, %v394_v33  ;;  %v425_v43 = vrot.slane %v424_v18, 1 }
 0x102   :  { %v416_v32 = vrot.slane %v415_v16, 1  ;;  %v381_v6 = vmax.f32 %v379_v30, %v380_v29 }
 0x103   :  { %v263_v3 = vpop.permute.xlu1 %262  ;;  %v440_v47 = vmax.f32 %v438_v34, %v439_v59  ;;  %v396_v34 = vrot.slane %v395_v14, 2  ;;  %v426_v27 = vmax.f32 %v424_v18, %v425_v43 }
 0x104   :  { %v322_v5 = vmul.f32 %v263_v3, %v5484_v52  ;;  %v389_v3 = vrot.slane %v5560_v57, 1 }
 0x105   :  { %v441_v19 = vrot.slane %v440_v47, 2  ;;  %v397_v60 = vmax.f32 %v395_v14, %v396_v34  ;;  %v490_v13 = vpack.c.bf16 %v426_v27, %v426_v27 }
 0x106   :  { %v445_v37 = vsel %vm68_vm0, %v322_v5, -inf  ;;  %v335_v5 = vrot.slane %v334_v51, 1  ;;  %v390_v25 = vmax.f32 %v5560_v57, %v389_v3 }
 0x107   :  { %v447_v35 = vmax.f32 %v445_v37, %v446_v21  ;;  %v345_v37 = vmax.f32 %v343_v38, %v344_v62  ;;  %v442_v49 = vmax.f32 %v440_v47, %v441_v19  ;;  %v407_v38 = vrot.slane %v406_v39, 1 }
 0x108   :  { %v336_v26 = vmax.f32 %v334_v51, %v335_v5  ;;  %v463_v62 = vsel %vm68_vm0, %v326_v53, -inf  ;;  %v372_v5 = vmax.f32 %v370_v28, %v371_v45 }
 0x109   :  { %v448_v61 = vrot.slane %v447_v35, 4  ;;  %v481_v54 = vpack.c.bf16 %v345_v37, %v345_v37  ;;  %v443_v46 = vrot.slane %v442_v49, 1  ;;  %v408_v33 = vmax.f32 %v406_v39, %v407_v38 }
 0x10a   :  { %v480_v59 = vpack.c.bf16 %v336_v26, %v336_v26  ;;  %v485_v37 = vpack.c.bf16 %v381_v6, %v381_v6  ;;  %v522_v26 = vunpack.c.l.b16 %v490_v13  ;;  %v2600_v6 = vld [vmem:[%s8379_s3 + $0x8] sm:$0xff]  ;;  %v4894_v13 = vld [vmem:[#allocation2 + $0x38] sm:$0xff] }
 0x10b   :  { %v449_v7 = vmax.f32 %v447_v35, %v448_v61  ;;  %v362_v35 = vrot.slane %v361_v56, 1  ;;  %v417_v61 = vmax.f32 %v415_v16, %v416_v32  ;;  %v444_v14 = vmax.f32 %v442_v49, %v443_v46 }
 0x10c   :  { %v512_v4 = vunpack.c.l.b16 %v480_v59  ;;  %v488_v15 = vpack.c.bf16 %v408_v33, %v408_v33  ;;  %v435_v16 = vmax.f32 %v433_v11, %v434_v41  ;;  %v517_v53 = vunpack.c.l.b16 %v485_v37 }
 0x10d   :  { %v450_v22 = vrot.slane %v449_v7, 2  ;;  %v363_v47 = vmax.f32 %v361_v56, %v362_v35  ;;  %v492_v28 = vpack.c.bf16 %v444_v14, %v444_v14  ;;  %v4893_v14 = vld [vmem:[#allocation2 + $0x30] sm:$0xff] }
 0x10e   :  { %v520_v30 = vunpack.c.l.b16 %v488_v15  ;;  %v491_v34 = vpack.c.bf16 %v435_v16, %v435_v16 }
 0x10f   :  { %v451_v55 = vmax.f32 %v449_v7, %v450_v22  ;;  %v489_v7 = vpack.c.bf16 %v417_v61, %v417_v61  ;;  %v483_v19 = vpack.c.bf16 %v363_v47, %v363_v47 }
 0x110   :  { %v523_v3 = vunpack.c.l.b16 %v491_v34 }
 0x111   :  { %v452_v40 = vrot.slane %v451_v55, 1  ;;  %v521_v39 = vunpack.c.l.b16 %v489_v7  ;;  %v2601_v7 = vld [vmem:[%s8379_s3 + $0x10] sm:$0xff] }
 0x113   :  { %v282_v8 = vpop.permute.xlu1 %281  ;;  %v453_v17 = vmax.f32 %v451_v55, %v452_v40 }
 0x114   :  { %v325_v12 = vmul.f32 %v282_v8, %v5482_v50 }
 0x115   :  { %v493_v11 = vpack.c.bf16 %v453_v17, %v453_v17 }
 0x116   :  { %v455_v21 = vsel %vm68_vm0, %v325_v12, -inf  ;;  %v513_v12 = vunpack.c.l.b16 %v481_v54  ;;  %v542_v54 = vsel %vm528_vm2, %v521_v39, %v520_v30 }
 0x117   :  { %v456_v24 = vmax.f32 %v454_v20, %v455_v21  ;;  %v484_v20 = vpack.c.bf16 %v372_v5, %v372_v5  ;;  %v543_v57 = vsel %vm530_vm3, %v522_v26, %v542_v54  ;;  %v525_v59 = vunpack.c.l.b16 %v493_v11  ;;  %v2599_v5 = vld [vmem:[%s8379_s3] sm:$0xff]  ;;  %v5652_v54 = vld [vmem:[%s8378_s2 + $0x18] sm:$0xff] }
 0x118   :  { %v529_v56 = vsel %vm528_vm2, %v513_v12, %v512_v4  ;;  %v544_v27 = vsel %vm532_vm4, %v523_v3, %v543_v57  ;;  %v4890_v12 = vld [vmem:[#allocation2 + $0x50] sm:$0xff]  ;;  %v5665_v57 = vand.u32 127, %v89_v0 }
 0x119   :  { %v457_v31 = vrot.slane %v456_v24, 4  ;;  %v516_v35 = vunpack.c.l.b16 %v484_v20  ;;  %841 = vmatpush.bf16.msrb.mxu0 %v4890_v12 }
 0x11b   :  { %v458_v48 = vmax.f32 %v456_v24, %v457_v31  ;;  %v295_v58 = vpop.permute.xlu1 %294  ;;  %v514_v24 = vunpack.c.l.b16 %v482_v10  ;;  %v515_v31 = vunpack.c.l.b16 %v483_v19  ;;  %v4889_v10 = vld [vmem:[#allocation2 + $0x48] sm:$0xff] }
 0x11c   :  { %v327_v51 = vmul.f32 %v295_v58, %v5482_v50  ;;  %v398_v50 = vrot.slane %v397_v60, 1  ;;  %v524_v58 = vunpack.c.l.b16 %v492_v28  ;;  %631 = vmatpush.bf16.msra.mxu3 %v4889_v10  ;;  %v5373_v28 = vmov 0  }
 0x11d   :  { %v459_v44 = vrot.slane %v458_v48, 2  ;;  %v531_v49 = vsel %vm530_vm3, %v514_v24, %v529_v56  ;;  %4273 = vmatpush.bf16.msra.mxu0 %v4893_v14  ;;  %v613_v24 = vperm.slane %v5479_v42, 4  ;;  %4929 = vset.pattern.permute.xlu0 %v5373_v28 }
 0x11e   :  { %v464_v52 = vsel %vm68_vm0, %v327_v51, -inf  ;;  %v399_v23 = vmax.f32 %v397_v60, %v398_v50  ;;  %v533_v29 = vsel %vm532_vm4, %v515_v31, %v531_v49  ;;  %v2604_v50 = vpack.c.bf16 %v2600_v6, %v2599_v5  ;;  %4931 = vset.pattern.permute.xlu1 %v5373_v28  ;;  %4930 = vset.pattern.permute.xlu2 %v5373_v28  ;;  %v5622_v31 = vld [vmem:[%s8381_s5 + $0x8] sm:$0x7f] }
 0x11f   :  { %v460_v63 = vmax.f32 %v458_v48, %v459_v44  ;;  %v465_v36 = vmax.f32 %v463_v62, %v464_v52  ;;  %v486_v48 = vpack.c.bf16 %v390_v25, %v390_v25  ;;  %v535_v60 = vsel %vm534_vm5, %v516_v35, %v533_v29 }
 0x120   :  { %v487_v55 = vpack.c.bf16 %v399_v23, %v399_v23  ;;  %v537_v44 = vsel %vm536_vm6, %v517_v53, %v535_v60  ;;  %v545_v62 = vsel %vm534_vm5, %v524_v58, %v544_v27  ;;  %v771_v35 = vperm.slane %v5622_v31, 0  ;;  %v5646_v53 = vld [vmem:[%s8378_s2 + $0x8] sm:$0xff] }
 0x121   :  { %v461_v8 = vrot.slane %v460_v63, 1  ;;  %v466_v9 = vrot.slane %v465_v36, 4  ;;  %v518_v46 = vunpack.c.l.b16 %v486_v48  ;;  %v546_v33 = vsel %vm536_vm6, %v525_v59, %v545_v62 }
 0x122   :  { %v519_v61 = vunpack.c.l.b16 %v487_v55 }
 0x123   :  { %v467_v18 = vmax.f32 %v465_v36, %v466_v9  ;;  %v462_v21 = vmax.f32 %v460_v63, %v461_v8  ;;  %v539_v40 = vsel %vm8385_vm7, %v518_v46, %v537_v44  ;;  %v2602_v8 = vld [vmem:[%s8379_s3 + $0x18] sm:$0xff]  ;;  %s5374_s3 = smov 123  }
 0x124   :  { %v541_v36 = vsel %vm8384_vm8, %v519_v61, %v539_v40  ;;  %v2605_v9 = vpack.c.bf16 %v2602_v8, %v2601_v7  ;;  %v600_v15 = vpop.f32.mrf.mxu2 }
 0x125   :  { %v468_v22 = vrot.slane %v467_v18, 2  ;;  %v494_v43 = vpack.c.bf16 %v462_v21, %v462_v21 }
 0x127   :  { %v469_v32 = vmax.f32 %v467_v18, %v468_v22  ;;  %v526_v51 = vunpack.c.l.b16 %v494_v43  ;;  %v605_v18 = vperm.slane %v5479_v42, 1  ;;  %v5628_v43 = vld [vmem:[%s8378_s2 + $0x10] sm:$0xff] }
 0x129   :  { %v470_v38 = vrot.slane %v469_v32, 1  ;;  %v547_v63 = vsel %vm8385_vm7, %v526_v51, %v546_v33 }
 0x12b   :  { %v471_v45 = vmax.f32 %v469_v32, %v470_v38  ;;  %v764_v32 = vperm.slane %v5479_v42, 7  ;;  %v5636_v42 = vld [vmem:[%s8378_s2] sm:$0xff] }
 0x12c   :  { %v602_v19 = vpop.f32.mrf.mxu2 }
 0x12d   :  { %v495_v41 = vpack.c.bf16 %v471_v45, %v471_v45  ;;  %766 = vrot.lane.b32.xlu1 %v764_v32, %s5375_s24  ;;  %v5376_v45 = vmov 0.0  }
 0x12f   :  { %v527_v52 = vunpack.c.l.b16 %v495_v41 }
 0x131   :  { %v548_v47 = vsel %vm8384_vm8, %v527_v52, %v547_v63 }
 0x132   :  { %v549_v4 = vpack.c.b16 %v548_v47, %v541_v36 }
 0x134   :  { %4825 = vmatmul.msk.bf16.vlgmr.msra.gmra.mxu1 %vm68_vm0, %v549_v4 }
 0x135   :  { %4769 = vmatpush.bf16.msra.mxu1 %v4894_v13  ;;  %773 = vrot.lane.b32.xlu1 %v771_v35, %s5375_s24 }
 0x13d   :  { %861 = vperm.xlu1 %4931, %v5628_v43  }
 0x144   :  { %4854 = vmatmul.msk.bf16.vlgmr.msrb.gmra.mxu1 %vm704_vm9, %v2604_v50 }
 0x145   :  { %4949 = vset.pattern.permute.xlu1 %v5434_v2 }
 0x154   :  { %4855 = vmatmul.msk.bf16.gmra.mxu1 %vm704_vm9, %v2605_v9 }
 0x19f   :  { %v5658_v55 = vpop.permute.xlu1 %766 }
 0x1a0   :  { %8565 = vst [vmem:[#allocation7_spill] sm:$0xff] %v5658_v55 }
 0x1a7   :  { %v5668_v59 = vpop.permute.xlu1 %773 }
 0x1a8   :  { %8566 = vst [vmem:[#allocation8_spill] sm:$0xff] %v5668_v59 }
 0x1af   :  { %v862_v63 = vpop.permute.xlu1 %861 }
 0x1b0   :  { %vm868_vm14 = vcmp.eq.s32.totalorder %v5665_v57, %v862_v63 }
 0x1b1   :  { %v574_v16 = vpop.f32.mrf.mxu1  ;;  %v4848_v50 = vsel %vm868_vm14, 1.0, %v5376_v45 }
 0x1b2   :  { %v601_v17 = vadd.f32 %v600_v15, %v574_v16  ;;  %v1138_v8 = vperm.slane %v4848_v50, 4  ;;  %v1151_v9 = vperm.slane %v4848_v50, 5  ;;  %v1112_v32 = vperm.slane %v4848_v50, 2 }
 0x1b3   :  { %v1125_v35 = vperm.slane %v4848_v50, 3 }
 0x1b4   :  { %v606_v20 = vadd.f32 %v605_v18, %v601_v17  ;;  %v5036_v15 = vpack.i.bf16 %v1151_v9, %v1138_v8 }
 0x1b6   :  { %v608_v39 = vmax.f32 %v606_v20, 0.0 }
 0x1b9   :  { %v576_v56 = vpop.f32.mrf.mxu1 }
 0x1ba   :  { %v603_v21 = vadd.f32 %v602_v19, %v576_v56 }
 0x1bc   :  { %v607_v37 = vadd.f32 %v605_v18, %v603_v21 }
 0x1be   :  { %v609_v22 = vmax.f32 %v607_v37, 0.0  ;;  %v1086_v37 = vperm.slane %v4848_v50, 0 }
 0x1c0   :  { %v612_v23 = vpack.c.bf16 %v609_v22, %v608_v39  ;;  %v1099_v39 = vperm.slane %v4848_v50, 1 }
 0x1c2   :  { %4839 = vmatmul.msk.bf16.vlgmr.msra.gmra.mxu3 %vm620_vm10, %v612_v23  ;;  %4845 = vmatmul.msk.bf16.vlgmr.msrb.gmra.mxu0 %vm620_vm10, %v612_v23  ;;  %v5687_v22 = vpack.i.bf16 %v1099_v39, %v1086_v37 }
 0x1c3   :  { %4882 = vmatmul.msk.bf16.vlgmr.msra.gmra.mxu1 %vm620_vm10, %v612_v23 }
 0x1d2   :  { %4872 = vmatmul.msk.bf16.vlgmr.msra.gmra.mxu0 %vm620_vm10, %v612_v23 }
 0x245   :  { %v633_v25 = vpop.f32.mrf.mxu3 }
 0x246   :  { %v5610_v26 = vadd.f32 %v633_v25, %v613_v24 }
 0x248   :  { %698 = vrot.lane.b32.xlu2 %v5610_v26, %s5374_s3  ;;  %v639_v49 = vsel %vm638_vm11, %v5610_v26, 0.0 }
 0x24d   :  { %v635_v30 = vpop.f32.mrf.mxu3 }
 0x24e   :  { %v5614_v34 = vadd.f32 %v635_v30, %v613_v24 }
 0x250   :  { %v642_v11 = vsel %vm638_vm11, %v5614_v34, 0.0 }
 0x251   :  { %643 = vadd.xlane.f32.xlu0 %v642_v11 }
 0x265   :  { %700 = vrot.lane.b32.xlu0 %v5614_v34, %s5374_s3 }
 0x26d   :  { %855 = vperm.xlu0 %4929, %v5636_v42  }
 0x271   :  { %640 = vadd.xlane.f32.xlu2 %v639_v49  ;;  %v5021_v49 = vpack.i.bf16 %v1125_v35, %v1112_v32 }
 0x275   :  { %4938 = vset.pattern.permute.xlu0 %v5434_v2 }
 0x289   :  { %858 = vperm.xlu2 %4930, %v5646_v53  }
 0x291   :  { %864 = vperm.xlu2 %4930, %v5652_v54  }
 0x299   :  { %4932 = vset.pattern.permute.xlu2 %v5430_v1 }
 0x2a2   :  { %v5662_v58 = vpop.permute.xlu2 %698 }
 0x2c4   :  { %v5656_v38 = vpop.xlane.xlu0 %643 }
 0x2d7   :  { %v5660_v48 = vpop.permute.xlu0 %700 }
 0x2df   :  { %v856_v3 = vpop.permute.xlu0 %855 }
 0x2e0   :  { %vm866_vm12 = vcmp.eq.s32.totalorder %v5665_v57, %v856_v3  ;;  %v1164_v3 = vperm.slane %v4848_v50, 6 }
 0x2e1   :  { %v4846_v29 = vsel %vm866_vm12, 1.0, %v5376_v45 }
 0x2e2   :  { %v904_v51 = vperm.slane %v4846_v29, 2  ;;  %v917_v60 = vperm.slane %v4846_v29, 3  ;;  %v878_v41 = vperm.slane %v4846_v29, 0  ;;  %v891_v61 = vperm.slane %v4846_v29, 1 }
 0x2e3   :  { %v956_v44 = vperm.slane %v4846_v29, 6  ;;  %v969_v27 = vperm.slane %v4846_v29, 7  ;;  %v930_v33 = vperm.slane %v4846_v29, 4  ;;  %v943_v40 = vperm.slane %v4846_v29, 5 }
 0x2e4   :  { %v5671_v46 = vpop.xlane.xlu2 %640  ;;  %v4950_v62 = vpack.i.bf16 %v917_v60, %v904_v51  ;;  %v4939_v52 = vpack.i.bf16 %v891_v61, %v878_v41  ;;  %v1177_v29 = vperm.slane %v4848_v50, 7 }
 0x2e5   :  { %v5673_v0 = vpack.i.bf16 %v969_v27, %v956_v44  ;;  %v4960_v47 = vpack.i.bf16 %v943_v40, %v930_v33  ;;  %v5378_v33 = vmov 5.0  }
 0x2e6   :  { %4951 = vperm.xlu1 %4949, %v4950_v62   ;;  %4940 = vperm.xlu0 %4938, %v4939_v52   ;;  %v5048_v51 = vpack.i.bf16 %v1177_v29, %v1164_v3  ;;  %5297 = vrcp.f32 %v5378_v33 }
 0x2e7   :  { %4934 = vperm.xlu2 %4932, %v4939_v52   ;;  %v5377_v52 = vmov 1  }
 0x2ec   :  { %v859_v36 = vpop.permute.xlu2 %858  ;;  %v5298_v40 = vpop.eup %5297 }
 0x2ed   :  { %vm867_vm13 = vcmp.eq.s32.totalorder %v5665_v57, %v859_v36  ;;  %v646_v63 = vmul.f32 5.0, %v5298_v40  ;;  %vm650_vm12 = vweird.f32 %v5298_v40 }
 0x2ee   :  { %v4847_v4 = vsel %vm867_vm13, 1.0, %v5376_v45  ;;  %4961 = vperm.xlu1 %4949, %v4960_v47  }
 0x2ef   :  { %4945 = vperm.xlu2 %4932, %v4950_v62   ;;  %v1008_v5 = vperm.slane %v4847_v4, 2  ;;  %v1021_v6 = vperm.slane %v4847_v4, 3  ;;  %v982_v13 = vperm.slane %v4847_v4, 0  ;;  %v995_v14 = vperm.slane %v4847_v4, 1 }
 0x2f0   :  { %v1034_v23 = vperm.slane %v4847_v4, 4  ;;  %v1047_v24 = vperm.slane %v4847_v4, 5  ;;  %v1060_v28 = vperm.slane %v4847_v4, 6  ;;  %v1073_v30 = vperm.slane %v4847_v4, 7 }
 0x2f1   :  { %v4987_v7 = vpack.i.bf16 %v1021_v6, %v1008_v5  ;;  %v4972_v20 = vpack.i.bf16 %v995_v14, %v982_v13  ;;  %v647_v36 = vsub.f32 1.0, %v646_v63  ;;  %v708_v14 = vsel %vm704_vm9, %v5660_v48, 0.0 }
 0x2f2   :  { %v4999_v25 = vpack.i.bf16 %v1047_v24, %v1034_v23  ;;  %v5009_v11 = vpack.i.bf16 %v1073_v30, %v1060_v28 }
 0x2f3   :  { %4988 = vperm.xlu0 %4938, %v4987_v7  }
 0x2f4   :  { %v865_v10 = vpop.permute.xlu2 %864 }
 0x2f5   :  { %vm869_vm15 = vcmp.eq.s32.totalorder %v5665_v57, %v865_v10 }
 0x2f6   :  { %4971 = vset.pattern.permute.xlu1 %v5430_v1  ;;  %v4849_v12 = vsel %vm869_vm15, 1.0, %v5376_v45 }
 0x2f7   :  { %4956 = vperm.xlu2 %4932, %v4960_v47   ;;  %v1268_v16 = vperm.slane %v4849_v12, 6  ;;  %v1281_v17 = vperm.slane %v4849_v12, 7  ;;  %v1216_v18 = vperm.slane %v4849_v12, 2  ;;  %v1229_v19 = vperm.slane %v4849_v12, 3 }
 0x2f8   :  { %v1190_v60 = vperm.slane %v4849_v12, 0  ;;  %v1203_v41 = vperm.slane %v4849_v12, 1  ;;  %v1242_v44 = vperm.slane %v4849_v12, 4  ;;  %v1255_v27 = vperm.slane %v4849_v12, 5 }
 0x2f9   :  { %v5080_v56 = vpack.i.bf16 %v1281_v17, %v1268_v16  ;;  %v5682_v21 = vpack.i.bf16 %v1229_v19, %v1216_v18  ;;  %v648_v47 = vmul.f32 %v5298_v40, %v647_v36 }
 0x2fa   :  { %v5058_v61 = vpack.i.bf16 %v1203_v41, %v1190_v60  ;;  %v5070_v62 = vpack.i.bf16 %v1255_v27, %v1242_v44 }
 0x2fb   :  { %5037 = vperm.xlu0 %4938, %v5036_v15   ;;  %v649_v4 = vadd.f32 %v5298_v40, %v648_v47 }
 0x2fd   :  { %v5699_v5 = vsel %vm650_vm12, %v5298_v40, %v649_v4 }
 0x2fe   :  { %4973 = vperm.xlu1 %4971, %v4972_v20   ;;  %v652_v6 = vmul.f32 %v5699_v5, %v5671_v46  ;;  %v653_v8 = vmul.f32 %v5699_v5, %v5656_v38 }
 0x2ff   :  { %4965 = vset.pattern.permute.xlu2 %v5434_v2 }
 0x300   :  { %v5704_v50 = vsub.f32 %v5610_v26, %v652_v6  ;;  %v5718_v46 = vsub.f32 %v5614_v34, %v653_v8 }
 0x303   :  { %5086 = vperm.xlu0 %4938, %v5080_v56  }
 0x306   :  { %4983 = vperm.xlu1 %4971, %v4987_v7   ;;  %v705_v7 = vsel %vm704_vm9, %v5662_v58, 0.0  ;;  %v657_v58 = vmul.f32 %v5718_v46, %v5718_v46 }
 0x307   :  { %4967 = vperm.xlu2 %4965, %v5673_v0  }
 0x308   :  { %v661_v38 = vsel %vm638_vm11, %v657_v58, 0.0 }
 0x30e   :  { %4998 = vset.pattern.permute.xlu1 %v5434_v2 }
 0x30f   :  { %4978 = vperm.xlu2 %4965, %v4972_v20  }
 0x316   :  { %5000 = vperm.xlu1 %4998, %v4999_v25  }
 0x317   :  { %4992 = vset.pattern.permute.xlu2 %v5430_v1 }
 0x31e   :  { %5010 = vperm.xlu1 %4998, %v5009_v11  }
 0x31f   :  { %4994 = vperm.xlu2 %4992, %v4999_v25  }
 0x326   :  { %5020 = vset.pattern.permute.xlu1 %v5430_v1 }
 0x327   :  { %5005 = vperm.xlu2 %4992, %v5009_v11   ;;  %v5379_v11 = vmov 4.0  }
 0x328   :  { %5299 = vrcp.f32 %v5379_v11 }
 0x32e   :  { %5022 = vperm.xlu1 %5020, %v5021_v49   ;;  %v5300_v35 = vpop.eup %5299 }
 0x32f   :  { %5014 = vset.pattern.permute.xlu2 %v5434_v2  ;;  %v712_v29 = vmul.f32 4.0, %v5300_v35  ;;  %vm716_vm13 = vweird.f32 %v5300_v35 }
 0x336   :  { %5032 = vperm.xlu1 %5020, %v5036_v15  }
 0x337   :  { %5016 = vperm.xlu2 %5014, %v5687_v22  }
 0x33e   :  { %5047 = vset.pattern.permute.xlu1 %v5434_v2 }
 0x33f   :  { %5027 = vperm.xlu2 %5014, %v5021_v49  }
 0x341   :  { %v5712_v9 = vpop.permute.xlu2 %4934 }
 0x346   :  { %5049 = vperm.xlu1 %5047, %v5048_v51  }
 0x347   :  { %5041 = vset.pattern.permute.xlu2 %v5430_v1 }
 0x349   :  { %v5722_v13 = vpop.permute.xlu2 %4945 }
 0x34e   :  { %5059 = vperm.xlu1 %5047, %v5058_v61  }
 0x34f   :  { %5043 = vperm.xlu2 %5041, %v5048_v51   ;;  %v713_v51 = vsub.f32 1.0, %v712_v29 }
 0x351   :  { %v5729_v16 = vpop.permute.xlu2 %4956  ;;  %v714_v41 = vmul.f32 %v5300_v35, %v713_v51 }
 0x353   :  { %v715_v44 = vadd.f32 %v5300_v35, %v714_v41 }
 0x355   :  { %v5771_v27 = vsel %vm716_vm13, %v5300_v35, %v715_v44 }
 0x356   :  { %5069 = vset.pattern.permute.xlu1 %v5430_v1  ;;  %8581 = vst [vmem:[#allocation23_spill] sm:$0xff] %v5771_v27 }
 0x357   :  { %5054 = vperm.xlu2 %5041, %v5058_v61  }
 0x358   :  { %v5714_v10 = vpop.permute.xlu1 %4951 }
 0x359   :  { %8567 = vst [vmem:[#allocation9_spill] sm:$0xff] %v5714_v10 }
 0x35e   :  { %5071 = vperm.xlu1 %5069, %v5070_v62  }
 0x35f   :  { %5063 = vset.pattern.permute.xlu2 %v5434_v2 }
 0x360   :  { %v5727_v15 = vpop.permute.xlu1 %4961 }
 0x361   :  { %8568 = vst [vmem:[#allocation10_spill] sm:$0xff] %v5727_v15  ;;  %v5733_v18 = vpop.permute.xlu2 %4967 }
 0x366   :  { %5081 = vperm.xlu1 %5069, %v5080_v56  }
 0x367   :  { %5065 = vperm.xlu2 %5063, %v5682_v21  }
 0x369   :  { %v5738_v56 = vpop.permute.xlu2 %4978 }
 0x36a   :  { %8569 = vst [vmem:[#allocation11_spill] sm:$0xff] %v5738_v56 }
 0x36e   :  { %5091 = vset.pattern.permute.xlu1 %v5377_v52 }
 0x36f   :  { %5076 = vperm.xlu2 %5063, %v5070_v62  }
 0x370   :  { %v5731_v17 = vpop.permute.xlu1 %4973 }
 0x377   :  { %5090 = vset.pattern.permute.xlu2 %v5377_v52 }
 0x378   :  { %1295 = vperm.xlu2 %5090, %v5636_v42   ;;  %v656_v42 = vmul.f32 %v5704_v50, %v5704_v50  ;;  %v5735_v19 = vpop.permute.xlu1 %4983 }
 0x379   :  { %v5743_v48 = vpop.permute.xlu2 %4994 }
 0x37a   :  { %v658_v12 = vsel %vm638_vm11, %v656_v42, 0.0 }
 0x381   :  { %v5747_v39 = vpop.permute.xlu2 %5005 }
 0x388   :  { %v5740_v20 = vpop.permute.xlu1 %5000 }
 0x389   :  { %8570 = vst [vmem:[#allocation12_spill] sm:$0xff] %v5740_v20 }
 0x390   :  { %706 = vadd.xlane.f32.xlu1 %v705_v7  ;;  %v5745_v37 = vpop.permute.xlu1 %5010 }
 0x391   :  { %8571 = vst [vmem:[#allocation13_spill] sm:$0xff] %v5745_v37  ;;  %v5751_v24 = vpop.permute.xlu2 %5016 }
 0x398   :  { %659 = vadd.xlane.f32.xlu1 %v658_v12 }
 0x399   :  { %v5755_v28 = vpop.permute.xlu2 %5027 }
 0x39a   :  { %8574 = vst [vmem:[#allocation16_spill] sm:$0xff] %v5755_v28 }
 0x3a0   :  { %709 = vadd.xlane.f32.xlu1 %v708_v14  ;;  %v5749_v23 = vpop.permute.xlu1 %5022 }
 0x3a1   :  { %662 = vadd.xlane.f32.xlu2 %v661_v38  ;;  %8572 = vst [vmem:[#allocation14_spill] sm:$0xff] %v5749_v23  ;;  %v8648_v23 = vunpack.i.l.bf16 %v5712_v9 }
 0x3a8   :  { %v5753_v25 = vpop.permute.xlu1 %5032 }
 0x3a9   :  { %8573 = vst [vmem:[#allocation15_spill] sm:$0xff] %v5753_v25  ;;  %v5759_v30 = vpop.permute.xlu2 %5043 }
 0x3aa   :  { %8576 = vst [vmem:[#allocation18_spill] sm:$0xff] %v5759_v30 }
 0x3b1   :  { %v5763_v49 = vpop.permute.xlu2 %5054 }
 0x3b2   :  { %8578 = vst [vmem:[#allocation20_spill] sm:$0xff] %v5763_v49 }
 0x3b9   :  { %1301 = vperm.xlu2 %5090, %v5628_v43   ;;  %v5757_v43 = vpop.permute.xlu1 %5049 }
 0x3ba   :  { %8575 = vst [vmem:[#allocation17_spill] sm:$0xff] %v5757_v43 }
 0x3c1   :  { %5092 = vset.pattern.permute.xlu2 %v5434_v2  ;;  %v5761_v32 = vpop.permute.xlu1 %5059  ;;  %v5767_v60 = vpop.permute.xlu2 %5065 }
 0x3c2   :  { %8577 = vst [vmem:[#allocation19_spill] sm:$0xff] %v5761_v32  ;;  %v8652_v32 = vunpack.i.l.bf16 %v5722_v13 }
 0x3c9   :  { %v5773_v62 = vpop.permute.xlu2 %5076 }
 0x3ca   :  { %8582 = vst [vmem:[#allocation24_spill] sm:$0xff] %v5773_v62 }
 0x3d0   :  { %v5765_v3 = vpop.permute.xlu1 %5071 }
 0x3d1   :  { %8579 = vst [vmem:[#allocation21_spill] sm:$0xff] %v5765_v3 }
 0x3d2   :  { %v1296_v36 = vpop.permute.xlu2 %1295 }
 0x3d8   :  { %v5769_v61 = vpop.permute.xlu1 %5081 }
 0x3d9   :  { %8580 = vst [vmem:[#allocation22_spill] sm:$0xff] %v5769_v61 }
 0x403   :  { %v707_v52 = vpop.xlane.xlu1 %706 }
 0x404   :  { %v718_v33 = vmul.f32 %v5771_v27, %v707_v52 }
 0x406   :  { %v5777_v40 = vsub.f32 %v5610_v26, %v718_v33 }
 0x408   :  { %8583 = vst [vmem:[#allocation25_spill] sm:$0xff] %v5777_v40  ;;  %v722_v63 = vmul.f32 %v5777_v40, %v5777_v40 }
 0x40a   :  { %726 = vrot.lane.b32.xlu1 %v722_v63, %s5374_s3 }
 0x40b   :  { %v660_v47 = vpop.xlane.xlu1 %659 }
 0x40c   :  { %v664_v4 = vmul.f32 %v660_v47, %v5699_v5 }
 0x40e   :  { %v666_v6 = vadd.f32 1e-05, %v664_v4  ;;  %v5795_v4 = vld [vmem:[%s8381_s5] sm:$0xff] }
 0x410   :  { %5301 = vrsqrt.f32 %v666_v6  ;;  %vm674_vm15 = vweird.f32 %v666_v6 }
 0x413   :  { %v710_v7 = vpop.xlane.xlu1 %709 }
 0x414   :  { %v719_v42 = vmul.f32 %v5771_v27, %v710_v7  ;;  %v663_v8 = vpop.xlane.xlu2 %662  ;;  %v690_v7 = vperm.slane %v5795_v4, 5 }
 0x415   :  { %v665_v12 = vmul.f32 %v663_v8, %v5699_v5 }
 0x416   :  { %v5302_v58 = vpop.eup %5301  ;;  %v5786_v26 = vsub.f32 %v5614_v34, %v719_v42 }
 0x417   :  { %v669_v14 = vmul.f32 %v5302_v58, %v666_v6  ;;  %v667_v38 = vadd.f32 1e-05, %v665_v12  ;;  %vm675_vm14 = vweird.f32 %v5302_v58  ;;  %v693_v12 = vperm.slane %v5795_v4, 6 }
 0x418   :  { %8584 = vst [vmem:[#allocation26_spill] sm:$0xff] %v5786_v26  ;;  %v723_v11 = vmul.f32 %v5786_v26, %v5786_v26  ;;  %vm676_vm12 = vmor %vm674_vm15, %vm675_vm14  ;;  %vm1306_vm14 = vcmp.eq.s32.totalorder %v5665_v57, %v1296_v36 }
 0x419   :  { %v670_v35 = vmul.f32 %v5302_v58, %v669_v14  ;;  %5303 = vrsqrt.f32 %v667_v38  ;;  %vm684_vm8 = vweird.f32 %v667_v38 }
 0x41a   :  { %728 = vrot.lane.b32.xlu0 %v723_v11, %s5374_s3 }
 0x41b   :  { %v671_v29 = vmul.f32 0.5, %v670_v35  ;;  %v4850_v35 = vsel %vm1306_vm14, 1.0, %v5376_v45 }
 0x41c   :  { %v1331_v36 = vperm.slane %v4850_v35, 1 }
 0x41d   :  { %v672_v51 = vsub.f32 1.5, %v671_v29 }
 0x41f   :  { %v5304_v41 = vpop.eup %5303  ;;  %v673_v44 = vmul.f32 %v5302_v58, %v672_v51  ;;  %v1383_v51 = vperm.slane %v4850_v35, 5 }
 0x420   :  { %v679_v52 = vmul.f32 %v5304_v41, %v667_v38  ;;  %vm685_vm13 = vweird.f32 %v5304_v41  ;;  %v1370_v38 = vperm.slane %v4850_v35, 4 }
 0x421   :  { %v677_v34 = vsel %vm676_vm12, %v5302_v58, %v673_v44  ;;  %vm686_vm7 = vmor %vm684_vm8, %vm685_vm13  ;;  %v1344_v44 = vperm.slane %v4850_v35, 2  ;;  %vm8835_vm12 = vcmask 1047559  }
 0x422   :  { %v680_v5 = vmul.f32 %v5304_v41, %v679_v52  ;;  %v688_v47 = vmul.f32 %v677_v34, %v5704_v50  ;;  %v1357_v52 = vperm.slane %v4850_v35, 3  ;;  %vm8839_vm14 = vmmov %vm8835_vm12 }
 0x424   :  { %v681_v33 = vmul.f32 0.5, %v680_v5  ;;  %v691_v6 = vmul.f32 %v690_v7, %v688_v47  ;;  %v5099_v34 = vpack.i.bf16 %v1357_v52, %v1344_v44 }
 0x426   :  { %v682_v63 = vsub.f32 1.5, %v681_v33  ;;  %v5801_v50 = vadd.f32 %v693_v12, %v691_v6  ;;  %v5814_v33 = vpop.permute.xlu0 %4940 }
 0x428   :  { %v683_v42 = vmul.f32 %v5304_v41, %v682_v63  ;;  %8585 = vst [vmem:[#allocation27_spill] sm:$0xff] %v5801_v50  ;;  %v778_v29 = vsel %vm638_vm11, %v5801_v50, -inf  ;;  %v1302_v63 = vpop.permute.xlu2 %1301 }
 0x42a   :  { %v687_v8 = vsel %vm686_vm7, %v5304_v41, %v683_v42  ;;  %v5114_v41 = vpack.i.bf16 %v1383_v51, %v1370_v38  ;;  %vm1308_vm7 = vcmp.eq.s32.totalorder %v5665_v57, %v1302_v63 }
 0x42b   :  { %v689_v58 = vmul.f32 %v687_v8, %v5718_v46  ;;  %v1318_v46 = vperm.slane %v4850_v35, 0 }
 0x42c   :  { %5115 = vperm.xlu0 %4938, %v5114_v41  }
 0x42d   :  { %v692_v14 = vmul.f32 %v690_v7, %v689_v58  ;;  %v5811_v5 = vpack.i.bf16 %v1331_v36, %v1318_v46  ;;  %v4852_v7 = vsel %vm1308_vm7, 1.0, %v5376_v45 }
 0x42e   :  { %v5818_v47 = vpop.permute.xlu0 %4988  ;;  %v1526_v8 = vperm.slane %v4852_v7, 0  ;;  %v1539_v6 = vperm.slane %v4852_v7, 1  ;;  %v1565_v58 = vperm.slane %v4852_v7, 3  ;;  %v1578_v38 = vperm.slane %v4852_v7, 4 }
 0x42f   :  { %v5803_v11 = vadd.f32 %v693_v12, %v692_v14  ;;  %5094 = vperm.xlu2 %5092, %v5811_v5   ;;  %v1552_v12 = vperm.slane %v4852_v7, 2  ;;  %v1604_v14 = vperm.slane %v4852_v7, 6  ;;  %v1591_v51 = vperm.slane %v4852_v7, 5 }
 0x431   :  { %8586 = vst [vmem:[#allocation28_spill] sm:$0xff] %v5803_v11  ;;  %v5824_v46 = vpack.i.bf16 %v1565_v58, %v1552_v12 }
 0x434   :  { %779 = vmax.xlane.f32.xlu1 %v778_v29  ;;  %v1617_v29 = vperm.slane %v4852_v7, 7 }
 0x436   :  { %v5828_v36 = vpack.i.bf16 %v1617_v29, %v1604_v14  ;;  %v5830_v44 = vpop.permute.xlu0 %5037 }
 0x437   :  { %5105 = vperm.xlu2 %5092, %v5099_v34  }
 0x43e   :  { %v5832_v52 = vpop.permute.xlu0 %5086 }
 0x43f   :  { %5119 = vset.pattern.permute.xlu2 %v5430_v1  ;;  %8587 = vst [vmem:[#allocation29_spill] sm:$0xff] %v5832_v52 }
 0x44d   :  { %1298 = vperm.xlu1 %5091, %v5646_v53   ;;  %v1396_v53 = vperm.slane %v4850_v35, 6 }
 0x455   :  { %1304 = vperm.xlu1 %5091, %v5652_v54   ;;  %v1409_v54 = vperm.slane %v4850_v35, 7  ;;  %v5826_v35 = vpack.i.bf16 %v1591_v51, %v1578_v38 }
 0x457   :  { %v5120_v42 = vpack.i.bf16 %v1409_v54, %v1396_v53 }
 0x459   :  { %5121 = vperm.xlu2 %5119, %v5120_v42  }
 0x45d   :  { %5098 = vset.pattern.permute.xlu1 %v5430_v1 }
 0x465   :  { %5100 = vperm.xlu1 %5098, %v5099_v34  }
 0x46d   :  { %5110 = vperm.xlu1 %5098, %v5114_v41   ;;  %v5822_v41 = vpack.i.bf16 %v1539_v6, %v1526_v8 }
 0x475   :  { %5125 = vset.pattern.permute.xlu1 %v5434_v2 }
 0x47c   :  { %v5835_v53 = vpop.permute.xlu1 %726 }
 0x47d   :  { %5127 = vperm.xlu1 %5125, %v5120_v42  }
 0x48c   :  { %v729_v34 = vpop.permute.xlu0 %728 }
 0x48d   :  { %v735_v63 = vsel %vm704_vm9, %v729_v34, 0.0 }
 0x48e   :  { %736 = vadd.xlane.f32.xlu0 %v735_v63 }
 0x4a7   :  { %v780_v54 = vpop.xlane.xlu1 %779 }
 0x4a8   :  { %v784_v7 = vsub.f32 %v5801_v50, %v780_v54 }
 0x4aa   :  { %v786_v8 = vmul.f32 1.442695, %v784_v7 }
 0x4ac   :  { %5305 = vpow2.f32 %v786_v8 }
 0x4b2   :  { %v5838_v6 = vpop.eup %5305 }
 0x4b3   :  { %v790_v12 = vsel %vm638_vm11, %v5838_v6, 0.0 }
 0x4b4   :  { %791 = vadd.xlane.f32.xlu0 %v790_v12 }
 0x4bf   :  { %v1299_v42 = vpop.permute.xlu1 %1298 }
 0x4c0   :  { %vm1307_vm8 = vcmp.eq.s32.totalorder %v5665_v57, %v1299_v42 }
 0x4c1   :  { %v4851_v58 = vsel %vm1307_vm8, 1.0, %v5376_v45  ;;  %vm8844_vm8 = vmmov %vm8835_vm12 }
 0x4c2   :  { %v1422_v14 = vperm.slane %v4851_v58, 0  ;;  %v1435_v29 = vperm.slane %v4851_v58, 1  ;;  %v1500_v38 = vperm.slane %v4851_v58, 6  ;;  %v1513_v51 = vperm.slane %v4851_v58, 7 }
 0x4c3   :  { %v1474_v34 = vperm.slane %v4851_v58, 4  ;;  %v1487_v63 = vperm.slane %v4851_v58, 5 }
 0x4c4   :  { %v5136_v54 = vpack.i.bf16 %v1435_v29, %v1422_v14  ;;  %v5163_v8 = vpack.i.bf16 %v1513_v51, %v1500_v38  ;;  %v5887_v38 = vpop.permute.xlu2 %5094 }
 0x4c5   :  { %v5844_v7 = vpack.i.bf16 %v1487_v63, %v1474_v34 }
 0x4c6   :  { %5137 = vperm.xlu1 %5125, %v5136_v54   ;;  %5132 = vperm.xlu2 %5119, %v5136_v54  }
 0x4c7   :  { %v1305_v50 = vpop.permute.xlu1 %1304 }
 0x4c8   :  { %vm1309_vm15 = vcmp.eq.s32.totalorder %v5665_v57, %v1305_v50  ;;  %5164 = vperm.xlu0 %4938, %v5163_v8  }
 0x4c9   :  { %v4853_v12 = vsel %vm1309_vm15, 1.0, %v5376_v45  ;;  %v1461_v45 = vperm.slane %v4851_v58, 3 }
 0x4ca   :  { %v1643_v42 = vperm.slane %v4853_v12, 1  ;;  %v1656_v59 = vperm.slane %v4853_v12, 2  ;;  %v1708_v26 = vperm.slane %v4853_v12, 6  ;;  %v1721_v55 = vperm.slane %v4853_v12, 7 }
 0x4cb   :  { %v1669_v40 = vperm.slane %v4853_v12, 3  ;;  %v1682_v27 = vperm.slane %v4853_v12, 4  ;;  %v1695_v61 = vperm.slane %v4853_v12, 5 }
 0x4cc   :  { %v5212_v14 = vpack.i.bf16 %v1656_v59, %v1643_v42  ;;  %v5854_v57 = vpack.i.bf16 %v1721_v55, %v1708_v26  ;;  %v1448_v55 = vperm.slane %v4851_v58, 2  ;;  %v5893_v51 = vpop.permute.xlu2 %5105 }
 0x4cd   :  { %v5848_v3 = vpack.i.bf16 %v1669_v40, %v1656_v59  ;;  %v5852_v29 = vpack.i.bf16 %v1695_v61, %v1682_v27  ;;  %v781_v59 = vsel %vm638_vm11, %v5803_v11, -inf  ;;  %v5877_v27 = vld [vmem:[%s8377_s1 + $0x10] sm:$0xff] }
 0x4ce   :  { %5147 = vset.pattern.permute.xlu1 %v5430_v1  ;;  %5141 = vset.pattern.permute.xlu2 %v5434_v2  ;;  %8588 = vst [vmem:[#allocation30_spill] sm:$0xff] %v5877_v27  ;;  %v4308_v50 = vperm.slane %v5877_v27, 2  ;;  %v8396_v58 = vperm.slane %v5877_v27, 0 }
 0x4d0   :  { %5213 = vperm.xlu0 %4938, %v5212_v14  }
 0x4d4   :  { %v5901_v34 = vpop.permute.xlu2 %5121 }
 0x4d6   :  { %5149 = vperm.xlu1 %5147, %v5844_v7  }
 0x4d8   :  { %5217 = vset.pattern.permute.xlu0 %v5430_v1 }
 0x4de   :  { %5159 = vperm.xlu1 %5147, %v5163_v8  }
 0x4e0   :  { %5219 = vperm.xlu0 %5217, %v5673_v0   ;;  %v5238_v0 = vpack.i.bf16 %v1461_v45, %v1448_v55 }
 0x4e6   :  { %5174 = vset.pattern.permute.xlu1 %v5434_v2 }
 0x4e8   :  { %5224 = vperm.xlu0 %5217, %v5687_v22   ;;  %v1630_v22 = vperm.slane %v4853_v12, 0 }
 0x4ea   :  { %v5207_v61 = vpack.i.bf16 %v1643_v42, %v1630_v22  ;;  %v5255_v26 = vpack.i.bf16 %v1669_v40, %v1630_v22  ;;  %v4295_v40 = vperm.slane %v5877_v27, 1 }
 0x4ee   :  { %5176 = vperm.xlu1 %5174, %v5822_v41  }
 0x4ef   :  { %782 = vmax.xlane.f32.xlu2 %v781_v59 }
 0x4f0   :  { %5229 = vperm.xlu0 %5217, %v5682_v21   ;;  %v3801_v21 = vperm.slane %v5622_v31, 5 }
 0x4f6   :  { %5186 = vperm.xlu1 %5174, %v5824_v46  }
 0x4f8   :  { %5234 = vperm.xlu0 %5217, %v5811_v5   ;;  %v732_v5 = vsel %vm704_vm9, %v5835_v53, 0.0  ;;  %v5899_v53 = vld [vmem:[%s8377_s1 + $0x18] sm:$0xff]  ;;  %vm808_vm9 = vcmask 1042432  }
 0x4f9   :  { %8589 = vst [vmem:[#allocation31_spill] sm:$0xff] %v5899_v53  ;;  %v4399_v63 = vperm.slane %v5899_v53, 1  ;;  %v4412_v14 = vperm.slane %v5899_v53, 2  ;;  %v8397_v45 = vperm.slane %v5899_v53, 3 }
 0x4fe   :  { %5196 = vset.pattern.permute.xlu1 %v5430_v1 }
 0x500   :  { %5239 = vperm.xlu0 %5217, %v5238_v0  }
 0x506   :  { %5198 = vperm.xlu1 %5196, %v5828_v36  }
 0x507   :  { %5143 = vperm.xlu2 %5141, %v5238_v0   ;;  %v5381_v0 = vmov 65535  }
 0x508   :  { %5244 = vperm.xlu0 %5217, %v5826_v35   ;;  %v809_v22 = vsel %vm807_vm1, 4294967295, %v5381_v0  ;;  %vm2150_vm1 = vcmask 523520  }
 0x50e   :  { %5208 = vperm.xlu1 %5196, %v5207_v61   ;;  %v810_v61 = vsel %vm808_vm9, %v809_v22, 0  ;;  %vm8848_vm9 = vmmov %vm8844_vm8 }
 0x510   :  { %5271 = vperm.xlu0 %5217, %v5854_v57  }
 0x516   :  { %5254 = vset.pattern.permute.xlu1 %v5434_v2 }
 0x518   :  { %3803 = vrot.lane.b32.xlu0 %v3801_v21, %s5380_s12 }
 0x51e   :  { %5256 = vperm.xlu1 %5254, %v5255_v26  }
 0x520   :  { %4313 = vperm.xlu0 %5217, %v4308_v50   ;;  %v5906_v54 = vpop.permute.xlu2 %5132 }
 0x526   :  { %5266 = vperm.xlu1 %5254, %v5852_v29  }
 0x52e   :  { %5281 = vset.pattern.permute.xlu1 %v5430_v1 }
 0x530   :  { %733 = vadd.xlane.f32.xlu2 %v732_v5 }
 0x536   :  { %4287 = vperm.xlu1 %5281, %v8396_v58  }
 0x53e   :  { %5283 = vset.pattern.permute.xlu1 %v5434_v2 }
 0x546   :  { %4306 = vperm.xlu1 %5283, %v4295_v40  }
 0x54e   :  { %5284 = vset.pattern.permute.xlu1 %v5430_v1 }
 0x556   :  { %4404 = vperm.xlu1 %5284, %v4399_v63  }
 0x55e   :  { %5286 = vset.pattern.permute.xlu1 %v5434_v2 }
 0x562   :  { %v783_v8 = vpop.xlane.xlu2 %782 }
 0x563   :  { %v785_v12 = vsub.f32 %v5803_v11, %v783_v8 }
 0x565   :  { %v788_v42 = vmul.f32 1.442695, %v785_v12 }
 0x566   :  { %4319 = vperm.xlu1 %5286, %v4308_v50  }
 0x567   :  { %5307 = vpow2.f32 %v788_v42 }
 0x56d   :  { %v5308_v59 = vpop.eup %5307 }
 0x56e   :  { %4423 = vperm.xlu1 %5286, %v4412_v14   ;;  %v793_v55 = vsel %vm638_vm11, %v5308_v59, 0.0 }
 0x56f   :  { %794 = vadd.xlane.f32.xlu2 %v793_v55 }
 0x576   :  { %5288 = vset.pattern.permute.xlu1 %v5430_v1 }
 0x57e   :  { %4430 = vperm.xlu1 %5288, %v8397_v45  }
 0x587   :  { %5154 = vperm.xlu2 %5141, %v5844_v7   ;;  %v802_v7 = vld [vmem:[#allocation2 + $0x58] sm:$0x7] }
 0x588   :  { %v812_v21 = vand.u32 %v810_v61, %v802_v7 }
 0x58a   :  { %821 = vmatpush.bf16.msrb.mxu3 %v812_v21 }
 0x58f   :  { %5168 = vset.pattern.permute.xlu2 %v5430_v1 }
 0x597   :  { %5170 = vperm.xlu2 %5168, %v5822_v41   ;;  %v5926_v41 = vpop.permute.xlu0 %5115 }
 0x598   :  { %8590 = vst [vmem:[#allocation32_spill] sm:$0xff] %v5926_v41 }
 0x59f   :  { %5181 = vperm.xlu2 %5168, %v5824_v46   ;;  %v5929_v46 = vpop.permute.xlu1 %5100 }
 0x5a7   :  { %5190 = vset.pattern.permute.xlu2 %v5434_v2 }
 0x5af   :  { %5192 = vperm.xlu2 %5190, %v5826_v35   ;;  %v5931_v35 = vpop.permute.xlu2 %5143 }
 0x5b0   :  { %8591 = vst [vmem:[#allocation33_spill] sm:$0xff] %v5931_v35 }
 0x5b7   :  { %5203 = vperm.xlu2 %5190, %v5828_v36   ;;  %v5933_v36 = vpop.xlane.xlu0 %736  ;;  %v5936_v26 = vpop.xlane.xlu2 %733  ;;  %v8642_v49 = vld [vmem:[#allocation33_spill] sm:$0xff] }
 0x5b8   :  { %8592 = vst [vmem:[#allocation34_spill] sm:$0xff] %v5933_v36 }
 0x5b9   :  { %8593 = vst [vmem:[#allocation35_spill] sm:$0xff] %v5936_v26 }
 0x5bf   :  { %5248 = vset.pattern.permute.xlu2 %v5430_v1  ;;  %v792_v50 = vpop.xlane.xlu0 %791 }
 0x5c0   :  { %5309 = vrcp.f32 %v792_v50 }
 0x5c6   :  { %v5310_v12 = vpop.eup %5309 }
 0x5c7   :  { %5250 = vperm.xlu2 %5248, %v5848_v3   ;;  %v5938_v3 = vpop.permute.xlu1 %5110  ;;  %v798_v55 = vmul.f32 %v5310_v12, %v5838_v6  ;;  %v8399_v12 = vperm.slane %v5877_v27, 3  ;;  %v5997_v36 = vpop.permute.xlu0 %5164  ;;  %v4259_v27 = vperm.slane %v5795_v4, 2 }
 0x5c8   :  { %8608 = vst [vmem:[#allocation50_spill] sm:$0xff] %v5997_v36 }
 0x5cf   :  { %5261 = vperm.xlu2 %5248, %v5852_v29   ;;  %v3764_v29 = vperm.slane %v5622_v31, 4  ;;  %v5942_v8 = vpop.permute.xlu1 %5127  ;;  %v8395_v31 = vperm.slane %v5899_v53, 0 }
 0x5d0   :  { %8594 = vst [vmem:[#allocation36_spill] sm:$0xff] %v5942_v8 }
 0x5d7   :  { %5275 = vset.pattern.permute.xlu2 %v5434_v2  ;;  %v5947_v7 = vpop.permute.xlu1 %5137 }
 0x5d8   :  { %8595 = vst [vmem:[#allocation37_spill] sm:$0xff] %v5947_v7 }
 0x5df   :  { %5277 = vperm.xlu2 %5275, %v5854_v57   ;;  %v5953_v57 = vpop.permute.xlu1 %5149 }
 0x5e0   :  { %8596 = vst [vmem:[#allocation38_spill] sm:$0xff] %v5953_v57 }
 0x5e2   :  { %v795_v5 = vpop.xlane.xlu2 %794 }
 0x5e3   :  { %5311 = vrcp.f32 %v795_v5 }
 0x5e7   :  { %5282 = vset.pattern.permute.xlu2 %v5430_v1  ;;  %v5959_v21 = vpop.permute.xlu1 %5159 }
 0x5e8   :  { %3766 = vrot.lane.b32.xlu2 %v3764_v29, %s5380_s12  ;;  %8598 = vst [vmem:[#allocation40_spill] sm:$0xff] %v5959_v21 }
 0x5e9   :  { %v5312_v42 = vpop.eup %5311 }
 0x5ea   :  { %v799_v0 = vmul.f32 %v5312_v42, %v5308_v59  ;;  %v5957_v61 = vpop.permute.xlu2 %5154 }
 0x5eb   :  { %8597 = vst [vmem:[#allocation39_spill] sm:$0xff] %v5957_v61 }
 0x5ec   :  { %v803_v22 = vpack.c.bf16 %v799_v0, %v798_v55  ;;  %v843_v55 = vpop.f32.mrf.mxu0 }
 0x5ee   :  { %4840 = vmatmul.msk.bf16.vlgmr.msrb.gmra.mxu3 %vm638_vm11, %v803_v22 }
 0x5ef   :  { %v5964_v59 = vpop.permute.xlu1 %5176 }
 0x5f0   :  { %4300 = vperm.xlu2 %5282, %v4295_v40   ;;  %8600 = vst [vmem:[#allocation42_spill] sm:$0xff] %v5964_v59 }
 0x5f2   :  { %v5962_v6 = vpop.permute.xlu2 %5170 }
 0x5f3   :  { %8599 = vst [vmem:[#allocation41_spill] sm:$0xff] %v5962_v6 }
 0x5f4   :  { %v5987_v22 = vpop.f32.mrf.mxu0 }
 0x5f7   :  { %v5971_v50 = vpop.permute.xlu1 %5186  ;;  %v8640_v62 = vld [vmem:[#allocation42_spill] sm:$0xff] }
 0x5f8   :  { %4391 = vperm.xlu2 %5282, %v8395_v31   ;;  %8602 = vst [vmem:[#allocation44_spill] sm:$0xff] %v5971_v50 }
 0x5fa   :  { %v5968_v40 = vpop.permute.xlu2 %5181 }
 0x5fb   :  { %8601 = vst [vmem:[#allocation43_spill] sm:$0xff] %v5968_v40  ;;  %v6006_v40 = vpop.permute.xlu0 %5213 }
 0x5fc   :  { %v4275_v58 = vpop.f32.mrf.mxu0 }
 0x5fd   :  { %v4276_v53 = vadd.f32 %v4275_v58, %v4259_v27 }
 0x5ff   :  { %v5975_v29 = vpop.permute.xlu1 %5198  ;;  %v6008_v61 = vmax.f32 %v4276_v53, 0.0 }
 0x600   :  { %5285 = vset.pattern.permute.xlu2 %v5434_v2 }
 0x601   :  { %8612 = vst [vmem:[#allocation54_spill] sm:$0xff] %v6008_v61 }
 0x604   :  { %v4277_v26 = vpop.f32.mrf.mxu0 }
 0x608   :  { %4410 = vperm.xlu2 %5285, %v4399_v63   ;;  %v5982_v63 = vpop.permute.xlu1 %5208 }
 0x609   :  { %v5973_v5 = vpop.permute.xlu2 %5192 }
 0x60a   :  { %8603 = vst [vmem:[#allocation45_spill] sm:$0xff] %v5973_v5 }
 0x610   :  { %5287 = vset.pattern.permute.xlu2 %v5430_v1  ;;  %v5989_v31 = vpop.permute.xlu1 %5256 }
 0x611   :  { %v5978_v42 = vpop.permute.xlu2 %5203  ;;  %8605 = vst [vmem:[#allocation47_spill] sm:$0xff] %v5989_v31  ;;  %v8647_v41 = vld [vmem:[#allocation45_spill] sm:$0xff] }
 0x612   :  { %8604 = vst [vmem:[#allocation46_spill] sm:$0xff] %v5978_v42  ;;  %v5195_v8 = vunpack.i.h.bf16 %v8647_v41 }
 0x618   :  { %4417 = vperm.xlu2 %5287, %v4412_v14   ;;  %v5993_v45 = vpop.permute.xlu1 %5266  ;;  %v8643_v30 = vld [vmem:[#allocation47_spill] sm:$0xff] }
 0x619   :  { %8606 = vst [vmem:[#allocation48_spill] sm:$0xff] %v5993_v45  ;;  %v8649_v56 = vld [vmem:[#allocation46_spill] sm:$0xff] }
 0x620   :  { %4326 = vperm.xlu2 %5287, %v8399_v12   ;;  %v5999_v12 = vpop.permute.xlu1 %4287 }
 0x621   :  { %v5984_v0 = vpop.permute.xlu2 %5250  ;;  %8609 = vst [vmem:[#allocation51_spill] sm:$0xff] %v5999_v12 }
 0x628   :  { %5289 = vset.pattern.permute.xlu2 %v5434_v2  ;;  %v4278_v2 = vadd.f32 %v4277_v26, %v4259_v27  ;;  %v4307_v42 = vpop.permute.xlu1 %4306  ;;  %v5220_v26 = vpop.permute.xlu0 %5219 }
 0x629   :  { %v5991_v14 = vpop.permute.xlu2 %5261  ;;  %v5222_v21 = vunpack.i.h.bf16 %v5220_v26 }
 0x62a   :  { %v6004_v5 = vmax.f32 %v4278_v2, 0.0 }
 0x62c   :  { %8611 = vst [vmem:[#allocation53_spill] sm:$0xff] %v6004_v5 }
 0x630   :  { %v5225_v27 = vpop.permute.xlu0 %5224  ;;  %v4405_v2 = vpop.permute.xlu1 %4404 }
 0x631   :  { %v5227_v57 = vunpack.i.h.bf16 %v5225_v27 }
 0x638   :  { %v5230_v50 = vpop.permute.xlu0 %5229 }
 0x639   :  { %v5995_v11 = vpop.permute.xlu2 %5277 }
 0x63a   :  { %8607 = vst [vmem:[#allocation49_spill] sm:$0xff] %v5995_v11  ;;  %v4493_v11 = vmul.f32 %v4307_v42, %v6004_v5 }
 0x63c   :  { %v4532_v12 = vsel %vm620_vm10, %v4493_v11, -inf }
 0x642   :  { %v6002_v1 = vpop.permute.xlu2 %3766 }
 0x643   :  { %8610 = vst [vmem:[#allocation52_spill] sm:$0xff] %v6002_v1  ;;  %v4508_v1 = vmul.f32 %v4405_v2, %v6008_v61 }
 0x645   :  { %v4603_v59 = vsel %vm620_vm10, %v4508_v1, -inf }
 0x64a   :  { %v4301_v45 = vpop.permute.xlu2 %4300 }
 0x64b   :  { %v4492_v31 = vmul.f32 %v4301_v45, %v6008_v61 }
 0x64d   :  { %v4531_v4 = vsel %vm620_vm10, %v4492_v31, -inf  ;;  %v6024_v31 = vpop.permute.xlu0 %5234 }
 0x64e   :  { %v6014_v35 = vmax.f32 %v4531_v4, %v4532_v12  ;;  %v5237_v28 = vunpack.i.h.bf16 %v6024_v31 }
 0x650   :  { %8613 = vst [vmem:[#allocation55_spill] sm:$0xff] %v6014_v35  ;;  %v5221_v35 = vunpack.i.l.bf16 %v5220_v26 }
 0x652   :  { %v6016_v58 = vpop.permute.xlu2 %4391 }
 0x653   :  { %8614 = vst [vmem:[#allocation56_spill] sm:$0xff] %v6016_v58  ;;  %v6028_v58 = vpop.permute.xlu1 %4319 }
 0x654   :  { %8616 = vst [vmem:[#allocation58_spill] sm:$0xff] %v6028_v58 }
 0x662   :  { %v4411_v53 = vpop.permute.xlu2 %4410 }
 0x663   :  { %v4509_v42 = vmul.f32 %v4411_v53, %v6004_v5  ;;  %v5226_v53 = vunpack.i.l.bf16 %v5225_v27  ;;  %v4424_v27 = vpop.permute.xlu1 %4423 }
 0x665   :  { %v4604_v45 = vsel %vm620_vm10, %v4509_v42, -inf  ;;  %v6036_v42 = vpop.permute.xlu0 %5239 }
 0x666   :  { %v6022_v11 = vmax.f32 %v4603_v59, %v4604_v45  ;;  %8618 = vst [vmem:[#allocation60_spill] sm:$0xff] %v6036_v42  ;;  %v5232_v45 = vunpack.i.h.bf16 %v5230_v50  ;;  %v5241_v25 = vunpack.i.l.bf16 %v6036_v42 }
 0x668   :  { %8615 = vst [vmem:[#allocation57_spill] sm:$0xff] %v6022_v11 }
 0x671   :  { %v823_v12 = vpop.f32.mrf.mxu3 }
 0x672   :  { %v6026_v4 = vadd.f32 %v843_v55, %v823_v12  ;;  %v5231_v12 = vunpack.i.l.bf16 %v5230_v50  ;;  %v4418_v11 = vpop.permute.xlu2 %4417  ;;  %v5253_v50 = vunpack.i.h.bf16 %v5984_v0 }
 0x673   :  { %v4510_v58 = vmul.f32 %v4418_v11, %v6008_v61 }
 0x674   :  { %v6031_v2 = vmul.f32 %v5221_v35, %v6026_v4  ;;  %v6034_v1 = vmul.f32 %v5222_v21, %v6026_v4  ;;  %v6039_v59 = vmul.f32 %v5226_v53, %v6026_v4  ;;  %v6042_v55 = vmul.f32 %v5227_v57, %v6026_v4 }
 0x675   :  { %v6045_v26 = vmul.f32 %v5231_v12, %v6026_v4  ;;  %v6048_v35 = vmul.f32 %v5232_v45, %v6026_v4  ;;  %v4511_v21 = vmul.f32 %v4424_v27, %v6004_v5  ;;  %v5264_v5 = vunpack.i.h.bf16 %v5991_v14 }
 0x676   :  { %8617 = vst [vmem:[#allocation59_spill] sm:$0xff] %v6034_v1  ;;  %v5245_v1 = vpop.permute.xlu0 %5244 }
 0x677   :  { %8619 = vst [vmem:[#allocation61_spill] sm:$0xff] %v6042_v55  ;;  %v4613_v45 = vsel %vm620_vm10, %v4511_v21, -inf  ;;  %v5200_v21 = vunpack.i.l.bf16 %v5975_v29  ;;  %v5247_v27 = vunpack.i.h.bf16 %v5245_v1  ;;  %v5246_v11 = vunpack.i.l.bf16 %v5245_v1 }
 0x678   :  { %8620 = vst [vmem:[#allocation62_spill] sm:$0xff] %v6045_v26  ;;  %v5172_v26 = vunpack.i.l.bf16 %v5962_v6  ;;  %v8650_v6 = vld [vmem:[#allocation49_spill] sm:$0xff] }
 0x679   :  { %8621 = vst [vmem:[#allocation63_spill] sm:$0xff] %v6048_v35  ;;  %v4612_v35 = vsel %vm620_vm10, %v4510_v58, -inf  ;;  %v5201_v58 = vunpack.i.h.bf16 %v5975_v29  ;;  %v5263_v29 = vunpack.i.l.bf16 %v5991_v14  ;;  %v2126_v52 = vmul.f32 %v5246_v11, %v6026_v4 }
 0x67a   :  { %v6062_v61 = vmax.f32 %v4612_v35, %v4613_v45  ;;  %v5211_v35 = vunpack.i.h.bf16 %v5982_v63  ;;  %v5210_v45 = vunpack.i.l.bf16 %v5982_v63  ;;  %v2118_v12 = vmul.f32 %v5172_v26, %v6026_v4 }
 0x67b   :  { %v2128_v1 = vmul.f32 %v5247_v27, %v6026_v4  ;;  %v2130_v20 = vmul.f32 %v5200_v21, %v6026_v4  ;;  %v2132_v63 = vmul.f32 %v5201_v58, %v6026_v4  ;;  %v2142_v10 = vmul.f32 %v5263_v29, %v6026_v4 }
 0x67c   :  { %8622 = vst [vmem:[#allocation64_spill] sm:$0xff] %v6062_v61  ;;  %v5252_v61 = vunpack.i.l.bf16 %v5984_v0  ;;  %v2136_v15 = vmul.f32 %v5211_v35, %v6026_v4  ;;  %v2140_v0 = vmul.f32 %v5253_v50, %v6026_v4  ;;  %v2144_v14 = vmul.f32 %v5264_v5, %v6026_v4 }
 0x67d   :  { %v6111_v21 = vsel %vm2150_vm1, %v2118_v12, 0.0  ;;  %v6120_v50 = vsel %vm2150_vm1, %v2128_v1, 0.0  ;;  %v6123_v5 = vsel %vm2150_vm1, %v2130_v20, 0.0  ;;  %v825_v12 = vpop.f32.mrf.mxu3  ;;  %v6142_v20 = vsel %vm2150_vm1, %v2142_v10, 0.0 }
 0x67e   :  { %v5272_v53 = vpop.permute.xlu0 %5271  ;;  %v2138_v26 = vmul.f32 %v5252_v61, %v6026_v4  ;;  %v6117_v61 = vsel %vm2150_vm1, %v2126_v52, 0.0  ;;  %v6133_v58 = vsel %vm2150_vm1, %v2136_v15, 0.0  ;;  %v6139_v1 = vsel %vm2150_vm1, %v2140_v0, 0.0  ;;  %8624 = vst [vmem:[#allocation66_spill] sm:$0xff] %v6142_v20 }
 0x67f   :  { %v5274_v55 = vunpack.i.h.bf16 %v5272_v53  ;;  %v5273_v57 = vunpack.i.l.bf16 %v5272_v53  ;;  %v2134_v53 = vmul.f32 %v5210_v45, %v6026_v4  ;;  %8623 = vst [vmem:[#allocation65_spill] sm:$0xff] %v6139_v1  ;;  %v6157_v0 = vadd.f32 %v5987_v22, %v825_v12 }
 0x680   :  { %v6136_v52 = vsel %vm2150_vm1, %v2138_v26, 0.0  ;;  %v8628_v15 = vunpack.i.l.bf16 %v5814_v33  ;;  %v8629_v22 = vunpack.i.h.bf16 %v5814_v33  ;;  %v8632_v33 = vunpack.i.h.bf16 %v5818_v47 }
 0x681   :  { %v2146_v11 = vmul.f32 %v5273_v57, %v6026_v4  ;;  %v2148_v27 = vmul.f32 %v5274_v55, %v6026_v4  ;;  %v6126_v55 = vsel %vm2150_vm1, %v2132_v63, 0.0  ;;  %v6129_v57 = vsel %vm2150_vm1, %v2134_v53, 0.0 }
 0x682   :  { %v6145_v63 = vsel %vm2150_vm1, %v2144_v14, 0.0  ;;  %v6168_v26 = vmul.f32 %v8628_v15, %v6157_v0  ;;  %v6173_v12 = vmul.f32 %v8629_v22, %v6157_v0  ;;  %v8630_v15 = vunpack.i.l.bf16 %v5818_v47 }
 0x683   :  { %8625 = vst [vmem:[#allocation67_spill] sm:$0xff] %v6145_v63  ;;  %v6148_v53 = vsel %vm2150_vm1, %v2146_v11, 0.0  ;;  %v6151_v45 = vsel %vm2150_vm1, %v2148_v27, 0.0  ;;  %v6189_v22 = vmul.f32 %v8632_v33, %v6157_v0  ;;  %v8634_v14 = vunpack.i.l.bf16 %v5830_v44 }
 0x684   :  { %8626 = vst [vmem:[#allocation68_spill] sm:$0xff] %v6148_v53  ;;  %v6184_v10 = vmul.f32 %v8630_v15, %v6157_v0  ;;  %v8636_v11 = vunpack.i.h.bf16 %v5830_v44  ;;  %v5216_v35 = vunpack.i.h.bf16 %v6006_v40  ;;  %v5215_v27 = vunpack.i.l.bf16 %v6006_v40 }
 0x685   :  { %8627 = vst [vmem:[#allocation69_spill] sm:$0xff] %v6151_v45  ;;  %v6204_v29 = vmul.f32 %v8634_v14, %v6157_v0  ;;  %v5145_v47 = vunpack.i.l.bf16 %v8642_v49  ;;  %v5259_v14 = vunpack.i.h.bf16 %v8643_v30  ;;  %v1734_v40 = vmul.f32 %v8648_v23, %v6026_v4 }
 0x686   :  { %8631 = vst [vmem:[#allocation70_spill] sm:$0xff] %v6184_v10  ;;  %v6209_v37 = vmul.f32 %v8636_v11, %v6157_v0  ;;  %v8644_v10 = vld [vmem:[#allocation48_spill] sm:$0xff]  ;;  %v6246_v33 = vmul.f32 %v5215_v27, %v6157_v0  ;;  %v6249_v36 = vmul.f32 %v5216_v35, %v6157_v0  ;;  %v5206_v15 = vunpack.i.h.bf16 %v8649_v56 }
 0x687   :  { %8633 = vst [vmem:[#allocation71_spill] sm:$0xff] %v6189_v22  ;;  %v5258_v22 = vunpack.i.l.bf16 %v8643_v30  ;;  %v5269_v44 = vunpack.i.h.bf16 %v8644_v10  ;;  %v5268_v11 = vunpack.i.l.bf16 %v8644_v10  ;;  %v5194_v10 = vunpack.i.l.bf16 %v8647_v41 }
 0x688   :  { %8635 = vst [vmem:[#allocation72_spill] sm:$0xff] %v6204_v29  ;;  %v5178_v29 = vunpack.i.l.bf16 %v8640_v62  ;;  %v5205_v62 = vunpack.i.l.bf16 %v8649_v56  ;;  %v5280_v27 = vunpack.i.h.bf16 %v8650_v6  ;;  %v8651_v35 = vunpack.i.h.bf16 %v5712_v9 }
 0x689   :  { %8637 = vst [vmem:[#allocation73_spill] sm:$0xff] %v6209_v37  ;;  %v5279_v30 = vunpack.i.l.bf16 %v8650_v6  ;;  %v6267_v41 = vmul.f32 %v8652_v32, %v6026_v4  ;;  %v8654_v23 = vunpack.i.h.bf16 %v5722_v13  ;;  %v2106_v56 = vmul.f32 %v5241_v25, %v6026_v4 }
 0x68a   :  { %v1736_v49 = vmul.f32 %v8651_v35, %v6026_v4  ;;  %v8656_v37 = vunpack.i.l.bf16 %v5729_v16  ;;  %v8658_v9 = vunpack.i.h.bf16 %v5729_v16  ;;  %v8660_v32 = vunpack.i.l.bf16 %v5731_v17 }
 0x68b   :  { %8653 = vst [vmem:[#allocation47_spill] sm:$0xff] %v6267_v41  ;;  %v6272_v43 = vmul.f32 %v8654_v23, %v6026_v4  ;;  %v8662_v13 = vunpack.i.h.bf16 %v5731_v17  ;;  %v8664_v25 = vunpack.i.l.bf16 %v5735_v19  ;;  %v8666_v16 = vunpack.i.h.bf16 %v5735_v19 }
 0x68c   :  { %v6278_v42 = vmul.f32 %v8656_v37, %v6026_v4  ;;  %v6283_v6 = vmul.f32 %v8658_v9, %v6026_v4  ;;  %v6288_v35 = vmul.f32 %v8660_v32, %v6026_v4  ;;  %v1798_v32 = vsel %vm68_vm0, %v1734_v40, 0.0 }
 0x68d   :  { %8655 = vst [vmem:[#allocation48_spill] sm:$0xff] %v6272_v43  ;;  %v6293_v23 = vmul.f32 %v8662_v13, %v6026_v4  ;;  %v6298_v37 = vmul.f32 %v8664_v25, %v6026_v4  ;;  %v6303_v9 = vmul.f32 %v8666_v16, %v6026_v4  ;;  %v1807_v43 = vsel %vm68_vm0, %v1736_v49, 0.0  ;;  %v8668_v13 = vld [vmem:[#allocation59_spill] sm:$0xff]  ;;  %v8670_v16 = vld [vmem:[#allocation62_spill] sm:$0xff] }
 0x68e   :  { %8657 = vst [vmem:[#allocation45_spill] sm:$0xff] %v6278_v42  ;;  %v6306_v42 = vmul.f32 %v5237_v28, %v6026_v4  ;;  %v1852_v17 = vsel %vm68_vm0, %v6031_v2, 0.0  ;;  %v1942_v25 = vsel %vm68_vm0, %v6039_v59, 0.0  ;;  %v2032_v28 = vsel %vm68_vm0, %v8670_v16, 0.0 }
 0x68f   :  { %8659 = vst [vmem:[#allocation46_spill] sm:$0xff] %v6283_v6  ;;  %v2241_v49 = vsel %vm2150_vm1, %v2106_v56, 0.0  ;;  %v8672_v2 = vunpack.i.l.bf16 %v5733_v18  ;;  %v8674_v59 = vunpack.i.l.bf16 %v5751_v24  ;;  %v8675_v16 = vunpack.i.h.bf16 %v5751_v24 }
 0x690   :  { %8661 = vst [vmem:[#allocation49_spill] sm:$0xff] %v6288_v35  ;;  %v1861_v35 = vsel %vm68_vm0, %v8668_v13, 0.0  ;;  %v8673_v13 = vunpack.i.h.bf16 %v5733_v18  ;;  %v8677_v45 = vunpack.i.h.bf16 %v5767_v60  ;;  %v8678_v18 = vunpack.i.h.bf16 %v5947_v7 }
 0x691   :  { %8663 = vst [vmem:[#allocation74_spill] sm:$0xff] %v6293_v23  ;;  %v1747_v23 = vmul.f32 %v8672_v2, %v6157_v0  ;;  %v1769_v41 = vmul.f32 %v8675_v16, %v6157_v0  ;;  %v2107_v53 = vmul.f32 %v5145_v47, %v6157_v0  ;;  %v2127_v63 = vmul.f32 %v5194_v10, %v6157_v0 }
 0x692   :  { %8665 = vst [vmem:[#allocation75_spill] sm:$0xff] %v6298_v37  ;;  %v8669_v37 = vld [vmem:[#allocation61_spill] sm:$0xff]  ;;  %v1749_v6 = vmul.f32 %v8673_v13, %v6157_v0  ;;  %v1789_v2 = vmul.f32 %v8677_v45, %v6157_v0  ;;  %v2105_v13 = vmul.f32 %v8678_v18, %v6157_v0  ;;  %v2129_v24 = vmul.f32 %v5195_v8, %v6157_v0 }
 0x693   :  { %8667 = vst [vmem:[#allocation76_spill] sm:$0xff] %v6303_v9  ;;  %v1951_v19 = vsel %vm68_vm0, %v8669_v37, 0.0  ;;  %v8671_v9 = vld [vmem:[#allocation63_spill] sm:$0xff]  ;;  %v1767_v37 = vmul.f32 %v8674_v59, %v6157_v0  ;;  %v2119_v59 = vmul.f32 %v5178_v29, %v6157_v0  ;;  %v2131_v16 = vmul.f32 %v5205_v62, %v6157_v0 }
 0x694   :  { %v2041_v40 = vsel %vm68_vm0, %v8671_v9, 0.0  ;;  %v8676_v9 = vunpack.i.l.bf16 %v5767_v60  ;;  %v2135_v20 = vmul.f32 %v5258_v22, %v6157_v0  ;;  %v2141_v60 = vmul.f32 %v5259_v14, %v6157_v0 }
 0x695   :  { %v2143_v45 = vmul.f32 %v5268_v11, %v6157_v0  ;;  %v2145_v18 = vmul.f32 %v5269_v44, %v6157_v0  ;;  %v2147_v47 = vmul.f32 %v5279_v30, %v6157_v0  ;;  %v2149_v29 = vmul.f32 %v5280_v27, %v6157_v0 }
 0x696   :  { %v1787_v56 = vmul.f32 %v8676_v9, %v6157_v0  ;;  %v2133_v9 = vmul.f32 %v5206_v15, %v6157_v0  ;;  %v1799_v10 = vsel %vm68_vm0, %v6168_v26, 0.0  ;;  %v1808_v62 = vsel %vm68_vm0, %v6173_v12, 0.0 }
 0x697   :  { %v1853_v8 = vsel %vm68_vm0, %v1747_v23, 0.0  ;;  %v1862_v22 = vsel %vm68_vm0, %v1749_v6, 0.0  ;;  %v1943_v15 = vsel %vm68_vm0, %v1767_v37, 0.0  ;;  %v1952_v14 = vsel %vm68_vm0, %v1769_v41, 0.0 }
 0x698   :  { %v2033_v44 = vsel %vm68_vm0, %v1787_v56, 0.0  ;;  %v2042_v11 = vsel %vm68_vm0, %v1789_v2, 0.0  ;;  %v2296_v30 = vsel %vm2150_vm1, %v2119_v59, 0.0  ;;  %v2242_v27 = vsel %vm2150_vm1, %v2107_v53, 0.0 }
 0x699   :  { %v2332_v26 = vsel %vm2150_vm1, %v2127_v63, 0.0  ;;  %v2341_v12 = vsel %vm2150_vm1, %v2129_v24, 0.0  ;;  %v2350_v23 = vsel %vm2150_vm1, %v2131_v16, 0.0  ;;  %v2359_v6 = vsel %vm2150_vm1, %v2133_v9, 0.0 }
 0x69a   :  { %v2368_v37 = vsel %vm2150_vm1, %v2135_v20, 0.0  ;;  %v2377_v41 = vsel %vm2150_vm1, %v6246_v33, 0.0  ;;  %v2386_v56 = vsel %vm2150_vm1, %v6249_v36, 0.0  ;;  %v2395_v2 = vsel %vm2150_vm1, %v2141_v60, 0.0 }
 0x69b   :  { %v2404_v53 = vsel %vm2150_vm1, %v2143_v45, 0.0  ;;  %v2413_v63 = vsel %vm2150_vm1, %v2145_v18, 0.0  ;;  %v2422_v59 = vsel %vm2150_vm1, %v2147_v47, 0.0  ;;  %v2431_v24 = vsel %vm2150_vm1, %v2149_v29, 0.0 }
 0x69c   :  { %v2243_v16 = vadd.f32 %v2242_v27, %v2241_v49  ;;  %v6382_v9 = vadd.f32 %v1799_v10, %v1798_v32  ;;  %v6384_v20 = vadd.f32 %v1808_v62, %v1807_v43  ;;  %v6386_v7 = vadd.f32 %v1853_v8, %v1852_v17 }
 0x69d   :  { %v6388_v33 = vadd.f32 %v1862_v22, %v1861_v35  ;;  %v6390_v36 = vadd.f32 %v1943_v15, %v1942_v25  ;;  %v6392_v60 = vadd.f32 %v1952_v14, %v1951_v19  ;;  %v8685_v45 = vunpack.i.h.bf16 %v5906_v54 }
 0x69e   :  { %8679 = vst [vmem:[#allocation59_spill] sm:$0xff] %v6382_v9  ;;  %v2244_v47 = vrot.slane %v2243_v16, 4  ;;  %v6397_v1 = vadd.f32 %v2033_v44, %v2032_v28  ;;  %v6399_v49 = vadd.f32 %v2042_v11, %v2041_v40  ;;  %v8688_v43 = vunpack.i.l.bf16 %v5743_v48 }
 0x69f   :  { %8680 = vst [vmem:[#allocation61_spill] sm:$0xff] %v6384_v20  ;;  %v2104_v18 = vmul.f32 %v8685_v45, %v6026_v4  ;;  %v8689_v35 = vunpack.i.h.bf16 %v5743_v48  ;;  %v8690_v25 = vunpack.i.l.bf16 %v5747_v39  ;;  %v8691_v28 = vunpack.i.h.bf16 %v5887_v38 }
 0x6a0   :  { %8681 = vst [vmem:[#allocation62_spill] sm:$0xff] %v6386_v7  ;;  %v6404_v32 = vmul.f32 %v8688_v43, %v6026_v4  ;;  %v8692_v29 = vunpack.i.l.bf16 %v6024_v31  ;;  %v8693_v62 = vunpack.i.l.bf16 %v5929_v46  ;;  %v2233_v48 = vsel %vm2150_vm1, %v2105_v13, 0.0 }
 0x6a1   :  { %8682 = vst [vmem:[#allocation63_spill] sm:$0xff] %v6388_v33  ;;  %v6409_v17 = vmul.f32 %v8689_v35, %v6026_v4  ;;  %v6414_v19 = vmul.f32 %v8690_v25, %v6026_v4  ;;  %v2089_v40 = vmul.f32 %v8691_v28, %v6157_v0  ;;  %v2245_v22 = vadd.f32 %v2244_v47, %v2243_v16 }
 0x6a2   :  { %8683 = vst [vmem:[#allocation77_spill] sm:$0xff] %v6390_v36  ;;  %v2086_v10 = vmul.f32 %v8692_v29, %v6026_v4  ;;  %v2090_v8 = vmul.f32 %v8693_v62, %v6026_v4  ;;  %v8694_v15 = vunpack.i.h.bf16 %v5929_v46  ;;  %v8695_v44 = vunpack.i.l.bf16 %v5938_v3 }
 0x6a3   :  { %8684 = vst [vmem:[#allocation78_spill] sm:$0xff] %v6392_v60  ;;  %v8696_v27 = vunpack.i.h.bf16 %v5938_v3  ;;  %v8697_v45 = vunpack.i.l.bf16 %v5901_v34  ;;  %v2160_v13 = vsel %vm2150_vm1, %v6306_v42, 0.0  ;;  %v2232_v46 = vsel %vm2150_vm1, %v2104_v18, 0.0 }
 0x6a4   :  { %8686 = vst [vmem:[#allocation79_spill] sm:$0xff] %v6397_v1  ;;  %v2092_v14 = vmul.f32 %v8694_v15, %v6026_v4  ;;  %v2094_v11 = vmul.f32 %v8695_v44, %v6026_v4  ;;  %v8698_v16 = vunpack.i.l.bf16 %v5887_v38  ;;  %v2246_v35 = vrot.slane %v2245_v22, 2 }
 0x6a5   :  { %8687 = vst [vmem:[#allocation80_spill] sm:$0xff] %v6399_v49  ;;  %v6435_v31 = vmul.f32 %v8696_v27, %v6026_v4  ;;  %v6440_v43 = vmul.f32 %v8697_v45, %v6026_v4  ;;  %v8699_v3 = vunpack.i.l.bf16 %v5893_v51  ;;  %v2161_v28 = vsel %vm2150_vm1, %v2089_v40, 0.0 }
 0x6a6   :  { %v2087_v47 = vmul.f32 %v8698_v16, %v6157_v0  ;;  %v2234_v29 = vadd.f32 %v2233_v48, %v2232_v46  ;;  %v6453_v62 = vadd.f32 %v2296_v30, %v6111_v21  ;;  %v2247_v15 = vadd.f32 %v2246_v35, %v2245_v22  ;;  %v8700_v30 = vld [vmem:[#allocation65_spill] sm:$0xff]  ;;  %v8711_v16 = vld [vmem:[#allocation38_spill] sm:$0xff] }
 0x6a7   :  { %v2091_v25 = vmul.f32 %v8699_v3, %v6157_v0  ;;  %v6456_v42 = vadd.f32 %v2332_v26, %v6117_v61  ;;  %v6459_v18 = vadd.f32 %v2341_v12, %v6120_v50  ;;  %v6462_v38 = vadd.f32 %v2350_v23, %v6123_v5  ;;  %v8701_v50 = vld [vmem:[#allocation66_spill] sm:$0xff]  ;;  %v8702_v5 = vld [vmem:[#allocation67_spill] sm:$0xff] }
 0x6a8   :  { %v6465_v44 = vadd.f32 %v2359_v6, %v6126_v55  ;;  %v6468_v27 = vadd.f32 %v2368_v37, %v6129_v57  ;;  %v6471_v40 = vadd.f32 %v2377_v41, %v6133_v58  ;;  %v6474_v21 = vadd.f32 %v2386_v56, %v6136_v52  ;;  %v8703_v55 = vld [vmem:[#allocation37_spill] sm:$0xff]  ;;  %v8705_v37 = vld [vmem:[#allocation68_spill] sm:$0xff] }
 0x6a9   :  { %v2248_v61 = vrot.slane %v2247_v15, 1  ;;  %v6477_v26 = vadd.f32 %v2395_v2, %v8700_v30  ;;  %v6480_v12 = vadd.f32 %v2404_v53, %v8701_v50  ;;  %v6483_v23 = vadd.f32 %v2413_v63, %v8702_v5  ;;  %v8706_v41 = vld [vmem:[#allocation69_spill] sm:$0xff]  ;;  %v8709_v53 = vld [vmem:[#allocation60_spill] sm:$0xff] }
 0x6aa   :  { %v8704_v57 = vunpack.i.l.bf16 %v8703_v55  ;;  %v6489_v58 = vadd.f32 %v2422_v59, %v8705_v37  ;;  %v6492_v52 = vadd.f32 %v2431_v24, %v8706_v41  ;;  %v2235_v56 = vrot.slane %v2234_v29, 4  ;;  %v8715_v5 = vld [vmem:[#allocation40_spill] sm:$0xff] }
 0x6ab   :  { %v8708_v2 = vunpack.i.l.bf16 %v5906_v54  ;;  %v8710_v22 = vunpack.i.h.bf16 %v8709_v53  ;;  %v2249_v45 = vadd.f32 %v2248_v61, %v2247_v15  ;;  %v2162_v46 = vadd.f32 %v2161_v28, %v2160_v13  ;;  %v8717_v15 = vld [vmem:[#allocation33_spill] sm:$0xff] }
 0x6ac   :  { %v2103_v6 = vmul.f32 %v8704_v57, %v6157_v0  ;;  %8707 = vst [vmem:[#allocation65_spill] sm:$0xff] %v6492_v52  ;;  %v8712_v35 = vunpack.i.l.bf16 %v8711_v16  ;;  %v8713_v59 = vunpack.i.h.bf16 %v8711_v16  ;;  %v8714_v30 = vunpack.i.h.bf16 %v5893_v51 }
 0x6ad   :  { %v2102_v48 = vmul.f32 %v8708_v2, %v6026_v4  ;;  %v2108_v63 = vmul.f32 %v8710_v22, %v6026_v4  ;;  %v2236_v54 = vadd.f32 %v2235_v56, %v2234_v29  ;;  %v8716_v55 = vunpack.i.l.bf16 %v8715_v5  ;;  %2491 = vrot.lane.b32.xlu0 %v2249_v45, %s5382_s16  ;;  %v8720_v29 = vld [vmem:[#allocation43_spill] sm:$0xff] }
 0x6ae   :  { %v2110_v3 = vmul.f32 %v8712_v35, %v6026_v4  ;;  %v2112_v24 = vmul.f32 %v8713_v59, %v6026_v4  ;;  %v2093_v50 = vmul.f32 %v8714_v30, %v6157_v0  ;;  %v8718_v13 = vunpack.i.h.bf16 %v8717_v15  ;;  %v8722_v15 = vld [vmem:[#allocation39_spill] sm:$0xff] }
 0x6af   :  { %v2114_v57 = vmul.f32 %v8716_v55, %v6026_v4  ;;  %v2152_v61 = vsel %vm2150_vm1, %v2087_v47, 0.0  ;;  %v2170_v37 = vsel %vm2150_vm1, %v2091_v25, 0.0  ;;  %v8719_v51 = vunpack.i.h.bf16 %v8715_v5 }
 0x6b0   :  { %v2109_v28 = vmul.f32 %v8718_v13, %v6157_v0  ;;  %v8721_v56 = vunpack.i.l.bf16 %v8720_v29  ;;  %v2224_v53 = vsel %vm2150_vm1, %v2103_v6, 0.0  ;;  %v2237_v22 = vrot.slane %v2236_v54, 2 }
 0x6b1   :  { %v2116_v41 = vmul.f32 %v8719_v51, %v6026_v4  ;;  %v2151_v16 = vsel %vm2150_vm1, %v2086_v10, 0.0  ;;  %v2169_v47 = vsel %vm2150_vm1, %v2090_v8, 0.0  ;;  %v2223_v25 = vsel %vm2150_vm1, %v2102_v48, 0.0  ;;  %v8724_v48 = vld [vmem:[#allocation36_spill] sm:$0xff] }
 0x6b2   :  { %v6524_v2 = vmul.f32 %v8721_v56, %v6026_v4  ;;  %v2163_v35 = vrot.slane %v2162_v46, 4  ;;  %v2179_v45 = vsel %vm2150_vm1, %v2093_v50, 0.0  ;;  %v2153_v59 = vadd.f32 %v2152_v61, %v2151_v16 }
 0x6b3   :  { %v2171_v30 = vadd.f32 %v2170_v37, %v2169_v47  ;;  %v2238_v5 = vadd.f32 %v2237_v22, %v2236_v54  ;;  %v2178_v55 = vsel %vm2150_vm1, %v2092_v14, 0.0  ;;  %v8723_v13 = vunpack.i.l.bf16 %v8722_v15  ;;  %v8726_v54 = vld [vmem:[#allocation32_spill] sm:$0xff] }
 0x6b4   :  { %v2251_v6 = vsel %vm2150_vm1, %v2109_v28, 0.0  ;;  %v2225_v56 = vadd.f32 %v2224_v53, %v2223_v25  ;;  %v2187_v10 = vsel %vm2150_vm1, %v2094_v11, 0.0  ;;  %v2250_v8 = vsel %vm2150_vm1, %v2108_v63, 0.0 }
 0x6b5   :  { %v2111_v51 = vmul.f32 %v8723_v13, %v6157_v0  ;;  %v8725_v49 = vunpack.i.l.bf16 %v8724_v48  ;;  %v2239_v61 = vrot.slane %v2238_v5, 1  ;;  %v8727_v37 = vunpack.i.l.bf16 %v8726_v54 }
 0x6b6   :  { %v8728_v22 = vunpack.i.h.bf16 %v8726_v54  ;;  %v2180_v47 = vadd.f32 %v2179_v45, %v2178_v55  ;;  %v2164_v28 = vadd.f32 %v2163_v35, %v2162_v46  ;;  %v2252_v53 = vadd.f32 %v2251_v6, %v2250_v8 }
 0x6b7   :  { %v2099_v50 = vmul.f32 %v8725_v49, %v6157_v0  ;;  %v2095_v14 = vmul.f32 %v8727_v37, %v6157_v0  ;;  %v2240_v25 = vadd.f32 %v2239_v61, %v2238_v5  ;;  %v2154_v11 = vrot.slane %v2153_v59, 4 }
 0x6b8   :  { %v2097_v16 = vmul.f32 %v8728_v22, %v6157_v0  ;;  %v2172_v13 = vrot.slane %v2171_v30, 4  ;;  %v2196_v63 = vsel %vm2150_vm1, %v6435_v31, 0.0  ;;  %v2260_v49 = vsel %vm2150_vm1, %v2111_v51, 0.0 }
 0x6b9   :  { %v2226_v36 = vrot.slane %v2225_v56, 4  ;;  %v2165_v1 = vrot.slane %v2164_v28, 2  ;;  %v2205_v37 = vsel %vm2150_vm1, %v6440_v43, 0.0  ;;  %v2259_v33 = vsel %vm2150_vm1, %v2110_v3, 0.0  ;;  %2489 = vrot.lane.b32.xlu2 %v2240_v25, %s5382_s16  ;;  %v8730_v25 = vld [vmem:[#allocation50_spill] sm:$0xff] }
 0x6ba   :  { %v2268_v54 = vsel %vm2150_vm1, %v2112_v24, 0.0  ;;  %v2206_v46 = vsel %vm2150_vm1, %v2099_v50, 0.0  ;;  %v2188_v35 = vsel %vm2150_vm1, %v2095_v14, 0.0  ;;  %v2197_v45 = vsel %vm2150_vm1, %v2097_v16, 0.0 }
 0x6bb   :  { %v2181_v31 = vrot.slane %v2180_v47, 4  ;;  %v2166_v5 = vadd.f32 %v2165_v1, %v2164_v28  ;;  %v2261_v55 = vadd.f32 %v2260_v49, %v2259_v33  ;;  %v2253_v51 = vrot.slane %v2252_v53, 4 }
 0x6bc   :  { %v2155_v6 = vadd.f32 %v2154_v11, %v2153_v59  ;;  %v2173_v8 = vadd.f32 %v2172_v13, %v2171_v30  ;;  %v2277_v43 = vsel %vm2150_vm1, %v2114_v57, 0.0  ;;  %v2207_v61 = vadd.f32 %v2206_v46, %v2205_v37 }
 0x6bd   :  { %v2167_v3 = vrot.slane %v2166_v5, 1  ;;  %v2227_v22 = vadd.f32 %v2226_v36, %v2225_v56  ;;  %v8729_v24 = vunpack.i.h.bf16 %v8722_v15  ;;  %v8731_v14 = vunpack.i.l.bf16 %v8730_v25 }
 0x6be   :  { %v8732_v1 = vunpack.i.h.bf16 %v8730_v25  ;;  %v2189_v16 = vadd.f32 %v2188_v35, %v2187_v10  ;;  %v2198_v59 = vadd.f32 %v2197_v45, %v2196_v63  ;;  %v2182_v28 = vadd.f32 %v2181_v31, %v2180_v47  ;;  %v8734_v10 = vld [vmem:[#allocation42_spill] sm:$0xff] }
 0x6bf   :  { %v2113_v50 = vmul.f32 %v8729_v24, %v6157_v0  ;;  %v2115_v60 = vmul.f32 %v8731_v14, %v6157_v0  ;;  %v2168_v30 = vadd.f32 %v2167_v3, %v2166_v5  ;;  %v2228_v57 = vrot.slane %v2227_v22, 2 }
 0x6c0   :  { %v2117_v33 = vmul.f32 %v8732_v1, %v6157_v0  ;;  %v2262_v11 = vrot.slane %v2261_v55, 4  ;;  %v2254_v13 = vadd.f32 %v2253_v51, %v2252_v53  ;;  %v2156_v36 = vrot.slane %v2155_v6, 2 }
 0x6c1   :  { %v2174_v56 = vrot.slane %v2173_v8, 2  ;;  %v2286_v15 = vsel %vm2150_vm1, %v2116_v41, 0.0  ;;  %v8733_v49 = vunpack.i.h.bf16 %v8724_v48  ;;  %v2208_v46 = vrot.slane %v2207_v61, 4  ;;  %2473 = vrot.lane.b32.xlu1 %v2168_v30, %s5382_s16 }
 0x6c2   :  { %v2229_v24 = vadd.f32 %v2228_v57, %v2227_v22  ;;  %v8735_v63 = vunpack.i.h.bf16 %v8734_v10  ;;  %v2269_v47 = vsel %vm2150_vm1, %v2113_v50, 0.0  ;;  %v2278_v53 = vsel %vm2150_vm1, %v2115_v60, 0.0  ;;  %v8736_v22 = vld [vmem:[#allocation44_spill] sm:$0xff] }
 0x6c3   :  { %v2101_v37 = vmul.f32 %v8733_v49, %v6157_v0  ;;  %v2287_v45 = vsel %vm2150_vm1, %v2117_v33, 0.0  ;;  %v2190_v31 = vrot.slane %v2189_v16, 4  ;;  %v2199_v41 = vrot.slane %v2198_v59, 4 }
 0x6c4   :  { %v2121_v35 = vmul.f32 %v8735_v63, %v6157_v0  ;;  %v2230_v5 = vrot.slane %v2229_v24, 1  ;;  %v2183_v51 = vrot.slane %v2182_v28, 2  ;;  %v2255_v48 = vrot.slane %v2254_v13, 2 }
 0x6c5   :  { %v2175_v3 = vadd.f32 %v2174_v56, %v2173_v8  ;;  %v2157_v25 = vadd.f32 %v2156_v36, %v2155_v6  ;;  %v2263_v14 = vadd.f32 %v2262_v11, %v2261_v55  ;;  %v8737_v1 = vunpack.i.l.bf16 %v8736_v22 }
 0x6c6   :  { %v2288_v57 = vadd.f32 %v2287_v45, %v2286_v15  ;;  %v2231_v49 = vadd.f32 %v2230_v5, %v2229_v24  ;;  %v2209_v10 = vadd.f32 %v2208_v46, %v2207_v61  ;;  %v2270_v50 = vadd.f32 %v2269_v47, %v2268_v54 }
 0x6c7   :  { %v2123_v30 = vmul.f32 %v8737_v1, %v6157_v0  ;;  %v2176_v63 = vrot.slane %v2175_v3, 1  ;;  %v2158_v60 = vrot.slane %v2157_v25, 1  ;;  %v2264_v7 = vrot.slane %v2263_v14, 2 }
 0x6c8   :  { %v2279_v33 = vadd.f32 %v2278_v53, %v2277_v43  ;;  %v2191_v20 = vadd.f32 %v2190_v31, %v2189_v16  ;;  %v2200_v9 = vadd.f32 %v2199_v41, %v2198_v59  ;;  %2487 = vrot.lane.b32.xlu0 %v2231_v49, %s5382_s16  ;;  %v2184_v52 = vadd.f32 %v2183_v51, %v2182_v28  ;;  %v8740_v16 = vld [vmem:[#allocation41_spill] sm:$0xff] }
 0x6c9   :  { %v2177_v8 = vadd.f32 %v2176_v63, %v2175_v3  ;;  %v2159_v6 = vadd.f32 %v2158_v60, %v2157_v25  ;;  %v2265_v55 = vadd.f32 %v2264_v7, %v2263_v14  ;;  %v2256_v11 = vadd.f32 %v2255_v48, %v2254_v13 }
 0x6ca   :  { %v8738_v36 = vunpack.i.h.bf16 %v5747_v39  ;;  %v8739_v54 = vunpack.i.h.bf16 %v5901_v34  ;;  %v2289_v15 = vrot.slane %v2288_v57, 4  ;;  %v2210_v43 = vrot.slane %v2209_v10, 2 }
 0x6cb   :  { %v8741_v59 = vunpack.i.h.bf16 %v8740_v16  ;;  %v2313_v28 = vsel %vm2150_vm1, %v6524_v2, 0.0  ;;  %v2314_v7 = vsel %vm2150_vm1, %v2123_v30, 0.0  ;;  %2475 = vrot.lane.b32.xlu1 %v2177_v8, %s5382_s16  ;;  %2471 = vrot.lane.b32.xlu2 %v2159_v6, %s5382_s16  ;;  %v2266_v39 = vrot.slane %v2265_v55, 1  ;;  %v8749_v16 = vld [vmem:[#allocation11_spill] sm:$0xff] }
 0x6cc   :  { %v6586_v56 = vmul.f32 %v8738_v36, %v6026_v4  ;;  %v2100_v61 = vmul.f32 %v8739_v54, %v6026_v4  ;;  %v2215_v13 = vsel %vm2150_vm1, %v2101_v37, 0.0  ;;  %v2305_v34 = vsel %vm2150_vm1, %v2121_v35, 0.0 }
 0x6cd   :  { %v2120_v46 = vmul.f32 %v8741_v59, %v6026_v4  ;;  %v2271_v24 = vrot.slane %v2270_v50, 4  ;;  %v2280_v47 = vrot.slane %v2279_v33, 4  ;;  %v2192_v53 = vrot.slane %v2191_v20, 2 }
 0x6ce   :  { %v2201_v45 = vrot.slane %v2200_v9, 2  ;;  %v2185_v31 = vrot.slane %v2184_v52, 1  ;;  %v2257_v41 = vrot.slane %v2256_v11, 1  ;;  %v2315_v5 = vadd.f32 %v2314_v7, %v2313_v28 }
 0x6cf   :  { %v2267_v51 = vadd.f32 %v2266_v39, %v2265_v55  ;;  %v2211_v2 = vadd.f32 %v2210_v43, %v2209_v10  ;;  %v2290_v48 = vadd.f32 %v2289_v15, %v2288_v57  ;;  %v8742_v3 = vunpack.i.h.bf16 %v8720_v29  ;;  %v8744_v29 = vld [vmem:[#allocation14_spill] sm:$0xff] }
 0x6d0   :  { %v2214_v14 = vsel %vm2150_vm1, %v2100_v61, 0.0  ;;  %v2304_v37 = vsel %vm2150_vm1, %v2120_v46, 0.0  ;;  %v8743_v35 = vunpack.i.h.bf16 %v8736_v22  ;;  %v2272_v63 = vadd.f32 %v2271_v24, %v2270_v50  ;;  %v8747_v50 = vld [vmem:[#allocation47_spill] sm:$0xff] }
 0x6d1   :  { %v2124_v25 = vmul.f32 %v8742_v3, %v6026_v4  ;;  %v2216_v30 = vadd.f32 %v2215_v13, %v2214_v14  ;;  %v2306_v49 = vadd.f32 %v2305_v34, %v2304_v37  ;;  %v2281_v60 = vadd.f32 %v2280_v47, %v2279_v33  ;;  %2495 = vrot.lane.b32.xlu0 %v2267_v51, %s5382_s16  ;;  %v8752_v3 = vld [vmem:[#allocation75_spill] sm:$0xff]  ;;  %v8753_v14 = vld [vmem:[#allocation9_spill] sm:$0xff] }
 0x6d2   :  { %v2125_v1 = vmul.f32 %v8743_v35, %v6157_v0  ;;  %v2186_v10 = vadd.f32 %v2185_v31, %v2184_v52  ;;  %v2258_v57 = vadd.f32 %v2257_v41, %v2256_v11  ;;  %v2193_v8 = vadd.f32 %v2192_v53, %v2191_v20  ;;  %v8748_v52 = vld [vmem:[#allocation46_spill] sm:$0xff] }
 0x6d3   :  { %v2202_v6 = vadd.f32 %v2201_v45, %v2200_v9  ;;  %v8745_v55 = vunpack.i.l.bf16 %v8744_v29  ;;  %v2316_v54 = vrot.slane %v2315_v5, 4  ;;  %v2212_v61 = vrot.slane %v2211_v2, 1  ;;  %v8751_v41 = vld [vmem:[#allocation74_spill] sm:$0xff] }
 0x6d4   :  { %v2291_v15 = vrot.slane %v2290_v48, 2  ;;  %v8746_v22 = vunpack.i.h.bf16 %v8744_v29  ;;  %v6622_v33 = vsel %vm68_vm0, %v8747_v50, 0.0  ;;  %v1843_v9 = vsel %vm68_vm0, %v8748_v52, 0.0  ;;  %2477 = vrot.lane.b32.xlu1 %v2186_v10, %s5382_s16  ;;  %2493 = vrot.lane.b32.xlu2 %v2258_v57, %s5382_s16  ;;  %v8758_v50 = vld [vmem:[#allocation76_spill] sm:$0xff] }
 0x6d5   :  { %v6613_v36 = vmul.f32 %v8745_v55, %v6026_v4  ;;  %v2323_v20 = vsel %vm2150_vm1, %v2125_v1, 0.0  ;;  %v2322_v11 = vsel %vm2150_vm1, %v2124_v25, 0.0  ;;  %v8750_v59 = vunpack.i.h.bf16 %v8749_v16  ;;  %v8755_v1 = vld [vmem:[#allocation10_spill] sm:$0xff] }
 0x6d6   :  { %v6618_v43 = vmul.f32 %v8746_v22, %v6026_v4  ;;  %v2217_v28 = vrot.slane %v2216_v30, 4  ;;  %v2307_v7 = vrot.slane %v2306_v49, 4  ;;  %v2273_v39 = vrot.slane %v2272_v63, 2 }
 0x6d7   :  { %v1753_v46 = vmul.f32 %v8750_v59, %v6157_v0  ;;  %v2282_v13 = vrot.slane %v2281_v60, 2  ;;  %v2194_v34 = vrot.slane %v2193_v8, 1  ;;  %v2203_v24 = vrot.slane %v2202_v6, 1 }
 0x6d8   :  { %v2324_v47 = vadd.f32 %v2323_v20, %v2322_v11  ;;  %v2213_v53 = vadd.f32 %v2212_v61, %v2211_v2  ;;  %v2292_v45 = vadd.f32 %v2291_v15, %v2290_v48  ;;  %v2317_v31 = vadd.f32 %v2316_v54, %v2315_v5 }
 0x6d9   :  { %v1879_v51 = vsel %vm68_vm0, %v8751_v41, 0.0  ;;  %v1888_v25 = vsel %vm68_vm0, %v8752_v3, 0.0  ;;  %v8754_v37 = vunpack.i.l.bf16 %v8753_v14  ;;  %v8756_v10 = vunpack.i.h.bf16 %v8755_v1 }
 0x6da   :  { %v8757_v29 = vunpack.i.l.bf16 %v8749_v16  ;;  %v1880_v5 = vsel %vm68_vm0, %v1753_v46, 0.0  ;;  %v2218_v48 = vadd.f32 %v2217_v28, %v2216_v30  ;;  %v2308_v55 = vadd.f32 %v2307_v7, %v2306_v49  ;;  %2483 = vrot.lane.b32.xlu0 %v2213_v53, %s5382_s16  ;;  %v8759_v16 = vld [vmem:[#allocation70_spill] sm:$0xff]  ;;  %v8760_v46 = vld [vmem:[#allocation71_spill] sm:$0xff] }
 0x6db   :  { %v1739_v35 = vmul.f32 %v8754_v37, %v6157_v0  ;;  %v1745_v57 = vmul.f32 %v8756_v10, %v6157_v0  ;;  %v2195_v54 = vadd.f32 %v2194_v34, %v2193_v8  ;;  %v2204_v61 = vadd.f32 %v2203_v24, %v2202_v6 }
 0x6dc   :  { %v1751_v2 = vmul.f32 %v8757_v29, %v6157_v0  ;;  %v2274_v15 = vadd.f32 %v2273_v39, %v2272_v63  ;;  %v2283_v22 = vadd.f32 %v2282_v13, %v2281_v60  ;;  %v1897_v52 = vsel %vm68_vm0, %v8758_v50, 0.0  ;;  %v8762_v29 = vld [vmem:[#allocation13_spill] sm:$0xff] }
 0x6dd   :  { %v2325_v20 = vrot.slane %v2324_v47, 4  ;;  %v2293_v11 = vrot.slane %v2292_v45, 1  ;;  %v2318_v59 = vrot.slane %v2317_v31, 2  ;;  %v1817_v41 = vsel %vm68_vm0, %v1739_v35, 0.0  ;;  %2479 = vrot.lane.b32.xlu1 %v2195_v54, %s5382_s16  ;;  %2481 = vrot.lane.b32.xlu2 %v2204_v61, %s5382_s16  ;;  %v8761_v35 = vld [vmem:[#allocation49_spill] sm:$0xff] }
 0x6de   :  { %v1889_v3 = vsel %vm68_vm0, %v8759_v16, 0.0  ;;  %v1898_v30 = vsel %vm68_vm0, %v8760_v46, 0.0  ;;  %v2379_v49 = vrot.slane %v6471_v40, 4  ;;  %v2388_v63 = vrot.slane %v6474_v21, 4 }
 0x6df   :  { %v2219_v60 = vrot.slane %v2218_v48, 2  ;;  %v2309_v8 = vrot.slane %v2308_v55, 2  ;;  %v6659_v6 = vadd.f32 %v1880_v5, %v1879_v51  ;;  %v1844_v28 = vsel %vm68_vm0, %v1745_v57, 0.0 }
 0x6e0   :  { %v1871_v7 = vsel %vm68_vm0, %v1751_v2, 0.0  ;;  %v2275_v39 = vrot.slane %v2274_v15, 1  ;;  %v2284_v13 = vrot.slane %v2283_v22, 1  ;;  %v2294_v34 = vadd.f32 %v2293_v11, %v2292_v45  ;;  %v8764_v11 = vld [vmem:[#allocation18_spill] sm:$0xff] }
 0x6e1   :  { %v2319_v24 = vadd.f32 %v2318_v59, %v2317_v31  ;;  %v2326_v53 = vadd.f32 %v2325_v20, %v2324_v47  ;;  %v6663_v37 = vadd.f32 %v1898_v30, %v1897_v52  ;;  %v1870_v10 = vsel %vm68_vm0, %v8761_v35, 0.0 }
 0x6e2   :  { %v8763_v54 = vunpack.i.l.bf16 %v8762_v29  ;;  %v2380_v51 = vadd.f32 %v2379_v49, %v6471_v40  ;;  %v6671_v5 = vadd.f32 %v1889_v3, %v1888_v25  ;;  %v2389_v57 = vadd.f32 %v2388_v63, %v6474_v21  ;;  %2501 = vrot.lane.b32.xlu0 %v2294_v34, %s5382_s16  ;;  %v8770_v3 = vld [vmem:[#allocation12_spill] sm:$0xff] }
 0x6e3   :  { %v2220_v45 = vadd.f32 %v2219_v60, %v2218_v48  ;;  %v2310_v31 = vadd.f32 %v2309_v8, %v2308_v55  ;;  %v6675_v47 = vadd.f32 %v1844_v28, %v1843_v9  ;;  %v2276_v2 = vadd.f32 %v2275_v39, %v2274_v15  ;;  %v8766_v48 = vld [vmem:[#allocation21_spill] sm:$0xff]  ;;  %v8767_v9 = vld [vmem:[#allocation20_spill] sm:$0xff] }
 0x6e4   :  { %v1763_v61 = vmul.f32 %v8763_v54, %v6157_v0  ;;  %v2285_v50 = vadd.f32 %v2284_v13, %v2283_v22  ;;  %v6677_v52 = vadd.f32 %v1871_v7, %v1870_v10  ;;  %v6680_v20 = vadd.f32 %v1817_v41, %v6622_v33 }
 0x6e5   :  { %v8765_v40 = vunpack.i.l.bf16 %v8764_v11  ;;  %v2334_v21 = vrot.slane %v6456_v42, 4  ;;  %v2320_v59 = vrot.slane %v2319_v24, 1  ;;  %v2327_v16 = vrot.slane %v2326_v53, 2  ;;  %2497 = vrot.lane.b32.xlu1 %v2276_v2, %s5382_s16 }
 0x6e6   :  { %v5073_v55 = vunpack.i.l.bf16 %v8766_v48  ;;  %v8768_v15 = vunpack.i.l.bf16 %v8767_v9  ;;  %v8769_v33 = vunpack.i.h.bf16 %v8767_v9  ;;  %v8771_v46 = vunpack.i.l.bf16 %v8770_v3  ;;  %2499 = vrot.lane.b32.xlu2 %v2285_v50, %s5382_s16 }
 0x6e7   :  { %v6685_v25 = vmul.f32 %v8765_v40, %v6026_v4  ;;  %v8772_v49 = vunpack.i.h.bf16 %v8753_v14  ;;  %v1925_v60 = vsel %vm68_vm0, %v1763_v61, 0.0  ;;  %v2298_v8 = vrot.slane %v6453_v62, 4 }
 0x6e8   :  { %v6692_v22 = vmul.f32 %v8768_v15, %v6026_v4  ;;  %v6697_v41 = vmul.f32 %v8769_v33, %v6026_v4  ;;  %v1759_v30 = vmul.f32 %v8771_v46, %v6157_v0  ;;  %v2370_v28 = vrot.slane %v6468_v27, 4 }
 0x6e9   :  { %v1741_v63 = vmul.f32 %v8772_v49, %v6157_v0  ;;  %v2381_v7 = vrot.slane %v2380_v51, 2  ;;  %v2390_v39 = vrot.slane %v2389_v57, 2  ;;  %v2221_v13 = vrot.slane %v2220_v45, 1 }
 0x6ea   :  { %v2311_v34 = vrot.slane %v2310_v31, 1  ;;  %v1906_v35 = vsel %vm68_vm0, %v6404_v32, 0.0  ;;  %v2321_v10 = vadd.f32 %v2320_v59, %v2319_v24  ;;  %v2328_v54 = vadd.f32 %v2327_v16, %v2326_v53 }
 0x6eb   :  { %v2335_v2 = vadd.f32 %v2334_v21, %v6456_v42  ;;  %v1924_v14 = vsel %vm68_vm0, %v6414_v19, 0.0  ;;  %v8773_v61 = vunpack.i.l.bf16 %v8755_v1  ;;  %v8774_v40 = vunpack.i.h.bf16 %v8762_v29 }
 0x6ec   :  { %v1907_v15 = vsel %vm68_vm0, %v1759_v30, 0.0  ;;  %v1826_v33 = vsel %vm68_vm0, %v1741_v63, 0.0  ;;  %v2299_v32 = vadd.f32 %v2298_v8, %v6453_v62  ;;  %v2371_v24 = vadd.f32 %v2370_v28, %v6468_v27  ;;  %2507 = vrot.lane.b32.xlu0 %v2321_v10, %s5382_s16  ;;  %v8775_v30 = vld [vmem:[#allocation48_spill] sm:$0xff]  ;;  %v8776_v62 = vld [vmem:[#allocation45_spill] sm:$0xff] }
 0x6ed   :  { %v1743_v50 = vmul.f32 %v8773_v61, %v6157_v0  ;;  %v1765_v9 = vmul.f32 %v8774_v40, %v6157_v0  ;;  %v6726_v42 = vadd.f32 %v1925_v60, %v1924_v14  ;;  %v2222_v19 = vadd.f32 %v2221_v13, %v2220_v45 }
 0x6ee   :  { %v2312_v53 = vadd.f32 %v2311_v34, %v2310_v31  ;;  %v2382_v1 = vadd.f32 %v2381_v7, %v2380_v51  ;;  %v2391_v21 = vadd.f32 %v2390_v39, %v2389_v57  ;;  %v2415_v59 = vrot.slane %v6483_v23, 4 }
 0x6ef   :  { %v2329_v29 = vrot.slane %v2328_v54, 1  ;;  %v2336_v16 = vrot.slane %v2335_v2, 2  ;;  %v6729_v46 = vadd.f32 %v1907_v15, %v1906_v35  ;;  %v1825_v49 = vsel %vm68_vm0, %v8775_v30, 0.0  ;;  %2485 = vrot.lane.b32.xlu1 %v2222_v19, %s5382_s16 }
 0x6f0   :  { %v1834_v27 = vsel %vm68_vm0, %v8776_v62, 0.0  ;;  %v1933_v63 = vsel %vm68_vm0, %v6586_v56, 0.0  ;;  %v1835_v45 = vsel %vm68_vm0, %v1743_v50, 0.0  ;;  %2505 = vrot.lane.b32.xlu2 %v2312_v53, %s5382_s16  ;;  %v1934_v51 = vsel %vm68_vm0, %v1765_v9, 0.0  ;;  %v8778_v9 = vld [vmem:[#allocation16_spill] sm:$0xff] }
 0x6f1   :  { %v2397_v57 = vrot.slane %v6477_v26, 4  ;;  %v2300_v31 = vrot.slane %v2299_v32, 2  ;;  %v6742_v60 = vadd.f32 %v1826_v33, %v1825_v49  ;;  %v2406_v8 = vrot.slane %v6480_v12, 4 }
 0x6f2   :  { %v2372_v28 = vrot.slane %v2371_v24, 2  ;;  %v2383_v7 = vrot.slane %v2382_v1, 1  ;;  %v2392_v39 = vrot.slane %v2391_v21, 1  ;;  %v2330_v13 = vadd.f32 %v2329_v29, %v2328_v54 }
 0x6f3   :  { %v2337_v56 = vadd.f32 %v2336_v16, %v2335_v2  ;;  %v2416_v34 = vadd.f32 %v2415_v59, %v6483_v23  ;;  %v6746_v35 = vadd.f32 %v1835_v45, %v1834_v27  ;;  %v1790_v10 = vmul.f32 %v5073_v55, %v6026_v4  ;;  %v8780_v2 = vld [vmem:[#allocation19_spill] sm:$0xff] }
 0x6f4   :  { %v1915_v14 = vsel %vm68_vm0, %v6409_v17, 0.0  ;;  %v8777_v61 = vunpack.i.h.bf16 %v8770_v3  ;;  %v6754_v40 = vadd.f32 %v1934_v51, %v1933_v63  ;;  %v8779_v15 = vunpack.i.l.bf16 %v8778_v9  ;;  %2509 = vrot.lane.b32.xlu0 %v2330_v13, %s5382_s16 }
 0x6f5   :  { %v8781_v23 = vunpack.i.l.bf16 %v8780_v2  ;;  %v2398_v19 = vadd.f32 %v2397_v57, %v6477_v26  ;;  %v2301_v55 = vadd.f32 %v2300_v31, %v2299_v32  ;;  %v2407_v17 = vadd.f32 %v2406_v8, %v6480_v12  ;;  %v8783_v32 = vld [vmem:[#allocation24_spill] sm:$0xff] }
 0x6f6   :  { %v1761_v50 = vmul.f32 %v8777_v61, %v6157_v0  ;;  %v1771_v54 = vmul.f32 %v8779_v15, %v6157_v0  ;;  %v2384_v53 = vadd.f32 %v2383_v7, %v2382_v1  ;;  %v2393_v3 = vadd.f32 %v2392_v39, %v2391_v21  ;;  %v8785_v61 = vld [vmem:[#allocation17_spill] sm:$0xff] }
 0x6f7   :  { %v1783_v33 = vmul.f32 %v8781_v23, %v6157_v0  ;;  %v2373_v59 = vadd.f32 %v2372_v28, %v2371_v24  ;;  %v1960_v29 = vsel %vm68_vm0, %v6613_v36, 0.0  ;;  %v2361_v16 = vrot.slane %v6465_v44, 4 }
 0x6f8   :  { %v2338_v30 = vrot.slane %v2337_v56, 1  ;;  %v2417_v49 = vrot.slane %v2416_v34, 2  ;;  %v2014_v62 = vsel %vm68_vm0, %v6692_v22, 0.0  ;;  %v8782_v26 = vunpack.i.h.bf16 %v8778_v9  ;;  %2521 = vrot.lane.b32.xlu1 %v2384_v53, %s5382_s16  ;;  %2523 = vrot.lane.b32.xlu2 %v2393_v3, %s5382_s16 }
 0x6f9   :  { %v8784_v12 = vunpack.i.l.bf16 %v8783_v32  ;;  %v1916_v24 = vsel %vm68_vm0, %v1761_v50, 0.0  ;;  %v2343_v36 = vrot.slane %v6459_v18, 4  ;;  %v2352_v21 = vrot.slane %v6462_v38, 4 }
 0x6fa   :  { %v1773_v27 = vmul.f32 %v8782_v26, %v6157_v0  ;;  %v2399_v63 = vrot.slane %v2398_v19, 2  ;;  %v2302_v22 = vrot.slane %v2301_v55, 1  ;;  %v1961_v45 = vsel %vm68_vm0, %v1771_v54, 0.0 }
 0x6fb   :  { %v1791_v1 = vmul.f32 %v8784_v12, %v6157_v0  ;;  %v2015_v51 = vsel %vm68_vm0, %v1783_v33, 0.0  ;;  %v2408_v57 = vrot.slane %v2407_v17, 2  ;;  %v2374_v31 = vrot.slane %v2373_v59, 1 }
 0x6fc   :  { %v2339_v8 = vadd.f32 %v2338_v30, %v2337_v56  ;;  %v2418_v28 = vadd.f32 %v2417_v49, %v2416_v34  ;;  %v2362_v7 = vadd.f32 %v2361_v16, %v6465_v44  ;;  %v6784_v39 = vadd.f32 %v1916_v24, %v1915_v14 }
 0x6fd   :  { %v2050_v13 = vsel %vm68_vm0, %v1790_v10, 0.0  ;;  %v8786_v50 = vunpack.i.l.bf16 %v8785_v61  ;;  %v8787_v15 = vunpack.i.h.bf16 %v8780_v2  ;;  %v2051_v23 = vsel %vm68_vm0, %v1791_v1, 0.0 }
 0x6fe   :  { %v2344_v33 = vadd.f32 %v2343_v36, %v6459_v18  ;;  %v2353_v56 = vadd.f32 %v2352_v21, %v6462_v38  ;;  %2511 = vrot.lane.b32.xlu0 %v2339_v8, %s5382_s16  ;;  %v2303_v44 = vadd.f32 %v2302_v22, %v2301_v55  ;;  %v2400_v34 = vadd.f32 %v2399_v63, %v2398_v19  ;;  %v8789_v21 = vld [vmem:[#allocation22_spill] sm:$0xff]  ;;  %v8790_v22 = vld [vmem:[#allocation15_spill] sm:$0xff] }
 0x6ff   :  { %v1779_v9 = vmul.f32 %v8786_v50, %v6157_v0  ;;  %v1785_v54 = vmul.f32 %v8787_v15, %v6157_v0  ;;  %v2375_v14 = vadd.f32 %v2374_v31, %v2373_v59  ;;  %v2409_v10 = vadd.f32 %v2408_v57, %v2407_v17 }
 0x700   :  { %v6797_v53 = vadd.f32 %v2015_v51, %v2014_v62  ;;  %v6799_v3 = vadd.f32 %v1961_v45, %v1960_v29  ;;  %v1970_v16 = vsel %vm68_vm0, %v1773_v27, 0.0  ;;  %v2419_v2 = vrot.slane %v2418_v28, 1  ;;  %2503 = vrot.lane.b32.xlu1 %v2303_v44, %s5382_s16  ;;  %v8788_v29 = vld [vmem:[#allocation65_spill] sm:$0xff] }
 0x701   :  { %v2363_v30 = vrot.slane %v2362_v7, 2  ;;  %v6802_v49 = vadd.f32 %v2051_v23, %v2050_v13  ;;  %v5074_v18 = vunpack.i.h.bf16 %v8766_v48  ;;  %v1969_v38 = vsel %vm68_vm0, %v6618_v43, 0.0  ;;  %2519 = vrot.lane.b32.xlu2 %v2375_v14, %s5382_s16  ;;  %v8793_v13 = vld [vmem:[#allocation29_spill] sm:$0xff] }
 0x702   :  { %v2023_v19 = vsel %vm68_vm0, %v6697_v41, 0.0  ;;  %v2024_v55 = vsel %vm68_vm0, %v1785_v54, 0.0  ;;  %v1997_v17 = vsel %vm68_vm0, %v1779_v9, 0.0  ;;  %v2424_v59 = vrot.slane %v6489_v58, 4 }
 0x703   :  { %v2433_v62 = vrot.slane %v8788_v29, 4  ;;  %v2345_v26 = vrot.slane %v2344_v33, 2  ;;  %v2354_v48 = vrot.slane %v2353_v56, 2  ;;  %v2401_v27 = vrot.slane %v2400_v34, 1 }
 0x704   :  { %v2410_v12 = vrot.slane %v2409_v10, 1  ;;  %v6815_v43 = vadd.f32 %v1970_v16, %v1969_v38  ;;  %v1996_v41 = vsel %vm68_vm0, %v6685_v25, 0.0  ;;  %v2420_v1 = vadd.f32 %v2419_v2, %v2418_v28  ;;  %v8795_v28 = vld [vmem:[#allocation72_spill] sm:$0xff] }
 0x705   :  { %v2364_v24 = vadd.f32 %v2363_v30, %v2362_v7  ;;  %v6819_v36 = vadd.f32 %v2024_v55, %v2023_v19  ;;  %v5084_v63 = vunpack.i.h.bf16 %v8789_v21  ;;  %v8791_v45 = vunpack.i.l.bf16 %v8790_v22 }
 0x706   :  { %v8792_v57 = vunpack.i.h.bf16 %v8783_v32  ;;  %v6828_v8 = vadd.f32 %v1997_v17, %v1996_v41  ;;  %v8794_v50 = vunpack.i.h.bf16 %v8793_v13  ;;  %v1979_v7 = vsel %vm68_vm0, %v8795_v28, 0.0  ;;  %2529 = vrot.lane.b32.xlu0 %v2420_v1, %s5382_s16 }
 0x707   :  { %v1774_v51 = vmul.f32 %v8791_v45, %v6026_v4  ;;  %v2425_v9 = vadd.f32 %v2424_v59, %v6489_v58  ;;  %v2434_v15 = vadd.f32 %v2433_v62, %v8788_v29  ;;  %v2402_v54 = vadd.f32 %v2401_v27, %v2400_v34 }
 0x708   :  { %v1793_v31 = vmul.f32 %v8792_v57, %v6157_v0  ;;  %v1797_v25 = vmul.f32 %v8794_v50, %v6157_v0  ;;  %v2411_v23 = vadd.f32 %v2410_v12, %v2409_v10  ;;  %v2346_v44 = vadd.f32 %v2345_v26, %v2344_v33 }
 0x709   :  { %v2355_v32 = vadd.f32 %v2354_v48, %v2353_v56  ;;  %v5052_v14 = vunpack.i.h.bf16 %v8785_v61  ;;  %v1792_v16 = vmul.f32 %v5074_v18, %v6026_v4  ;;  %v1796_v2 = vmul.f32 %v5084_v63, %v6026_v4  ;;  %2525 = vrot.lane.b32.xlu1 %v2402_v54, %s5382_s16 }
 0x70a   :  { %v2365_v30 = vrot.slane %v2364_v24, 1  ;;  %v5035_v38 = vunpack.i.h.bf16 %v8790_v22  ;;  %v5046_v19 = vunpack.i.h.bf16 %v8764_v11  ;;  %v5083_v58 = vunpack.i.l.bf16 %v8789_v21  ;;  %2527 = vrot.lane.b32.xlu2 %v2411_v23, %s5382_s16 }
 0x70b   :  { %v1978_v55 = vsel %vm68_vm0, %v1774_v51, 0.0  ;;  %v1781_v33 = vmul.f32 %v5052_v14, %v6157_v0  ;;  %v2060_v61 = vsel %vm68_vm0, %v1793_v31, 0.0  ;;  %v2078_v56 = vsel %vm68_vm0, %v1797_v25, 0.0  ;;  %v6877_v25 = vld [vmem:[%s8377_s1 + $0x10] sm:$0xff]  ;;  %v6888_v14 = vpop.permute.xlu2 %4326 }
 0x70c   :  { %v6850_v34 = vadd.f32 %v1979_v7, %v1978_v55  ;;  %v2426_v10 = vrot.slane %v2425_v9, 2  ;;  %v2435_v18 = vrot.slane %v2434_v15, 2  ;;  %v2347_v17 = vrot.slane %v2346_v44, 1  ;;  %8800 = vst [vmem:[#allocation37_spill] sm:$0xff] %v6877_v25 }
 0x70d   :  { %v2356_v11 = vrot.slane %v2355_v32, 1  ;;  %v2059_v59 = vsel %vm68_vm0, %v1792_v16, 0.0  ;;  %v2077_v29 = vsel %vm68_vm0, %v1796_v2, 0.0  ;;  %v8796_v62 = vunpack.i.l.bf16 %v8793_v13  ;;  %8804 = vst [vmem:[#allocation38_spill] sm:$0xff] %v6888_v14  ;;  %v5337_v16 = vld [vmem:[%s8377_s1 + $0x18] sm:$0xff] }
 0x70e   :  { %v2366_v48 = vadd.f32 %v2365_v30, %v2364_v24  ;;  %v1780_v27 = vmul.f32 %v5046_v19, %v6026_v4  ;;  %v6858_v12 = vadd.f32 %v2078_v56, %v2077_v29  ;;  %v6860_v41 = vadd.f32 %v2060_v61, %v2059_v59  ;;  %v8808_v61 = vld [vmem:[#allocation59_spill] sm:$0xff] }
 0x70f   :  { %v1795_v26 = vmul.f32 %v8796_v62, %v6157_v0  ;;  %v1776_v1 = vmul.f32 %v5035_v38, %v6026_v4  ;;  %v1794_v21 = vmul.f32 %v5083_v58, %v6026_v4  ;;  %v2006_v63 = vsel %vm68_vm0, %v1781_v33, 0.0  ;;  %v8799_v0 = vld [vmem:[#allocation73_spill] sm:$0xff]  ;;  %v8805_v38 = vld [vmem:[#allocation31_spill] sm:$0xff]  ;;  %v6903_v33 = vpop.permute.xlu0 %3803 }
 0x710   :  { %8797 = vst [vmem:[#allocation66_spill] sm:$0xff] %v6858_v12  ;;  %2517 = vrot.lane.b32.xlu0 %v2366_v48, %s5382_s16  ;;  %v2348_v22 = vadd.f32 %v2347_v17, %v2346_v44  ;;  %v2357_v45 = vadd.f32 %v2356_v11, %v2355_v32  ;;  %v2427_v51 = vadd.f32 %v2426_v10, %v2425_v9  ;;  %v1988_v24 = vsel %vm68_vm0, %v8799_v0, 0.0  ;;  %v8809_v10 = vld [vmem:[#allocation6_spill] sm:$0xff]  ;;  %v8811_v48 = vld [vmem:[#allocation61_spill] sm:$0xff] }
 0x711   :  { %8798 = vst [vmem:[#allocation67_spill] sm:$0xff] %v6860_v41  ;;  %v2436_v57 = vadd.f32 %v2435_v18, %v2434_v15  ;;  %v2069_v31 = vsel %vm68_vm0, %v1795_v26, 0.0  ;;  %v2005_v13 = vsel %vm68_vm0, %v1780_v27, 0.0  ;;  %v1987_v4 = vsel %vm68_vm0, %v1776_v1, 0.0  ;;  %v8812_v1 = vld [vmem:[#allocation5_spill] sm:$0xff] }
 0x712   :  { %2513 = vrot.lane.b32.xlu1 %v2348_v22, %s5382_s16  ;;  %2515 = vrot.lane.b32.xlu2 %v2357_v45, %s5382_s16  ;;  %v2068_v50 = vsel %vm68_vm0, %v1794_v21, 0.0  ;;  %v8483_v28 = vperm.slane %v6877_v25, 4  ;;  %v6880_v7 = vadd.f32 %v2006_v63, %v2005_v13  ;;  %v2428_v9 = vrot.slane %v2427_v51, 1  ;;  %8807 = vst [vmem:[#allocation40_spill] sm:$0xff] %v6903_v33  ;;  %v6921_v22 = vpop.permute.xlu1 %4430  ;;  %v8819_v33 = vld [vmem:[#allocation63_spill] sm:$0xff] }
 0x713   :  { %v2437_v15 = vrot.slane %v2436_v57, 1  ;;  %v6882_v54 = vadd.f32 %v1988_v24, %v1987_v4  ;;  %v6884_v23 = vadd.f32 %v2069_v31, %v2068_v50  ;;  %v4438_v2 = vperm.slane %v5337_v16, 4  ;;  %v6900_v58 = vpop.permute.xlu2 %2489  ;;  %8813 = vst [vmem:[#allocation43_spill] sm:$0xff] %v6921_v22 }
 0x714   :  { %8801 = vst [vmem:[#allocation68_spill] sm:$0xff] %v6880_v7  ;;  %v2429_v44 = vadd.f32 %v2428_v9, %v2427_v51  ;;  %v8481_v30 = vperm.slane %v6877_v25, 5  ;;  %v8806_v19 = vperm.slane %v8805_v38, 3  ;;  %v8482_v55 = vperm.slane %v6877_v25, 6  ;;  %v8814_v9 = vld [vmem:[#allocation30_spill] sm:$0xff]  ;;  %v6965_v38 = vpop.f32.mrf.mxu1 }
 0x715   :  { %8802 = vst [vmem:[#allocation69_spill] sm:$0xff] %v6882_v54  ;;  %v2438_v32 = vadd.f32 %v2437_v15, %v2436_v57  ;;  %v1801_v56 = vrot.slane %v8808_v61, 4  ;;  %v1882_v18 = vrot.slane %v6659_v6, 4  ;;  %v4451_v59 = vperm.slane %v5337_v16, 5 }
 0x716   :  { %8803 = vst [vmem:[#allocation60_spill] sm:$0xff] %v6884_v23  ;;  %v1810_v27 = vrot.slane %v8811_v48, 4  ;;  %v1900_v21 = vrot.slane %v6663_v37, 4  ;;  %v1891_v63 = vrot.slane %v6671_v5, 4  ;;  %v1873_v24 = vrot.slane %v6677_v52, 4 }
 0x717   :  { %v1802_v11 = vadd.f32 %v1801_v56, %v8808_v61  ;;  %v6913_v29 = vpop.permute.xlu0 %4313  ;;  %v1883_v62 = vadd.f32 %v1882_v18, %v6659_v6  ;;  %v1846_v6 = vrot.slane %v6675_v47, 4  ;;  %v1819_v31 = vrot.slane %v6680_v20, 4  ;;  %v5338_v61 = vld [vmem:[%s8381_s5 + $0x8] sm:$0x7f] }
 0x718   :  { %4339 = vperm.xlu0 %5217, %v8483_v28   ;;  %8810 = vst [vmem:[#allocation33_spill] sm:$0xff] %v6913_v29  ;;  %v1811_v0 = vadd.f32 %v1810_v27, %v8811_v48  ;;  %v1901_v13 = vadd.f32 %v1900_v21, %v6663_v37  ;;  %v1892_v4 = vadd.f32 %v1891_v63, %v6671_v5  ;;  %v1927_v50 = vrot.slane %v6726_v42, 4  ;;  %v8816_v27 = vld [vmem:[#allocation62_spill] sm:$0xff] }
 0x719   :  { %v1803_v26 = vrot.slane %v1802_v11, 2  ;;  %v1884_v45 = vrot.slane %v1883_v62, 2  ;;  %v8815_v15 = vperm.slane %v8814_v9, 0  ;;  %v6940_v56 = vperm.slane %v5338_v61, 1 }
 0x71a   :  { %2531 = vrot.lane.b32.xlu1 %v2429_v44, %s5382_s16  ;;  %2533 = vrot.lane.b32.xlu2 %v2438_v32, %s5382_s16  ;;  %v1874_v37 = vadd.f32 %v1873_v24, %v6677_v52  ;;  %v1820_v5 = vadd.f32 %v1819_v31, %v6680_v20  ;;  %v1902_v18 = vrot.slane %v1901_v13, 2  ;;  %v1828_v48 = vrot.slane %v6742_v60, 4 }
 0x71b   :  { %v1804_v51 = vadd.f32 %v1803_v26, %v1802_v11  ;;  %v1885_v32 = vadd.f32 %v1884_v45, %v1883_v62  ;;  %v1893_v11 = vrot.slane %v1892_v4, 2  ;;  %v1928_v26 = vadd.f32 %v1927_v50, %v6726_v42  ;;  %v8818_v50 = vld [vmem:[#allocation78_spill] sm:$0xff] }
 0x71c   :  { %v1909_v62 = vrot.slane %v6729_v46, 4  ;;  %v1855_v21 = vrot.slane %v8816_v27, 4  ;;  %v1837_v63 = vrot.slane %v6746_v35, 4  ;;  %v1936_v52 = vrot.slane %v6754_v40, 4 }
 0x71d   :  { %v1805_v16 = vrot.slane %v1804_v51, 1  ;;  %v1886_v20 = vrot.slane %v1885_v32, 1  ;;  %v1875_v24 = vrot.slane %v1874_v37, 2  ;;  %v1821_v31 = vrot.slane %v1820_v5, 2 }
 0x71e   :  { %v1918_v61 = vrot.slane %v6784_v39, 4  ;;  %v1910_v28 = vadd.f32 %v1909_v62, %v6729_v46  ;;  %v1864_v14 = vrot.slane %v8819_v33, 4  ;;  %v1894_v22 = vadd.f32 %v1893_v11, %v1892_v4 }
 0x71f   :  { %v6934_v44 = vpop.permute.xlu0 %2491  ;;  %v6953_v45 = vadd.f32 %v1805_v16, %v1804_v51  ;;  %v1856_v51 = vadd.f32 %v1855_v21, %v8816_v27  ;;  %v1937_v16 = vadd.f32 %v1936_v52, %v6754_v40  ;;  %v1822_v46 = vadd.f32 %v1821_v31, %v1820_v5  ;;  %v8820_v21 = vld [vmem:[#allocation79_spill] sm:$0xff] }
 0x720   :  { %4443 = vperm.xlu0 %5217, %v4438_v2   ;;  %v1911_v27 = vrot.slane %v1910_v28, 2  ;;  %v1865_v40 = vadd.f32 %v1864_v14, %v8819_v33  ;;  %v1895_v52 = vrot.slane %v1894_v22, 1  ;;  %v2017_v54 = vrot.slane %v6797_v53, 4 }
 0x721   :  { %v1938_v11 = vrot.slane %v1937_v16, 2  ;;  %vm8833_vm0 = vcmask 1046534  }
 0x722   :  { %4352 = vperm.xlu1 %5288, %v8481_v30   ;;  %4436 = vperm.xlu2 %5289, %v8806_v19   ;;  %v1847_v19 = vadd.f32 %v1846_v6, %v6675_v47  ;;  %v1903_v30 = vadd.f32 %v1902_v18, %v1901_v13  ;;  %v1876_v18 = vadd.f32 %v1875_v24, %v1874_v37  ;;  %vm8838_vm13 = vmmov %vm8833_vm0 }
 0x723   :  { %v1912_v33 = vadd.f32 %v1911_v27, %v1910_v28  ;;  %v1939_v29 = vadd.f32 %v1938_v11, %v1937_v16  ;;  %vm8843_vm7 = vmmov %vm8833_vm0 }
 0x724   :  { %v1848_v42 = vrot.slane %v1847_v19, 2  ;;  %vm8847_vm15 = vmmov %vm8833_vm0 }
 0x725   :  { %v6910_v17 = vpop.permute.xlu2 %2471  ;;  %v1913_v27 = vrot.slane %v1912_v33, 1 }
 0x726   :  { %v1849_v9 = vadd.f32 %v1848_v42, %v1847_v19 }
 0x728   :  { %4365 = vperm.xlu0 %5217, %v8482_v55   ;;  %v1929_v55 = vrot.slane %v1928_v26, 2  ;;  %v1850_v5 = vrot.slane %v1849_v9, 1 }
 0x72a   :  { %5291 = vset.pattern.permute.xlu1 %v8809_v10  ;;  %4449 = vperm.xlu2 %5289, %v4438_v2   ;;  %v1812_v2 = vrot.slane %v1811_v0, 2  ;;  %v6981_v23 = vadd.f32 %v1850_v5, %v1849_v9  ;;  %v1940_v9 = vrot.slane %v1939_v29, 1 }
 0x72e   :  { %v6923_v57 = vpop.permute.xlu2 %2493 }
 0x730   :  { %5292 = vset.pattern.permute.xlu0 %v8809_v10 }
 0x732   :  { %4462 = vperm.xlu1 %5291, %v4451_v59   ;;  %5290 = vset.pattern.permute.xlu2 %v8812_v1 }
 0x733   :  { %v6947_v47 = vpop.permute.xlu1 %2473 }
 0x737   :  { %v6955_v6 = vpop.permute.xlu2 %2481 }
 0x738   :  { %4293 = vperm.xlu0 %5292, %v8815_v15   ;;  %8817 = vst [vmem:[#allocation39_spill] sm:$0xff] %v6955_v6  ;;  %v1954_v15 = vrot.slane %v8818_v50, 4 }
 0x73a   :  { %4456 = vperm.xlu2 %5290, %v4451_v59   ;;  %5294 = vset.pattern.permute.xlu1 %v8812_v1  ;;  %v1813_v59 = vadd.f32 %v1812_v2, %v1811_v0  ;;  %v1829_v1 = vadd.f32 %v1828_v48, %v6742_v60  ;;  %v1838_v0 = vadd.f32 %v1837_v63, %v6746_v35  ;;  %v6967_v13 = vpop.permute.xlu0 %2487  ;;  %v2035_v35 = vrot.slane %v8820_v21, 4 }
 0x73b   :  { %v1887_v2 = vadd.f32 %v1886_v20, %v1885_v32  ;;  %v1955_v62 = vadd.f32 %v1954_v15, %v8818_v50  ;;  %v1919_v60 = vadd.f32 %v1918_v61, %v6784_v39  ;;  %v1930_v48 = vadd.f32 %v1929_v55, %v1928_v26 }
 0x73c   :  { %v1814_v25 = vrot.slane %v1813_v59, 1  ;;  %v1830_v4 = vrot.slane %v1829_v1, 2  ;;  %v1857_v32 = vrot.slane %v1856_v51, 2  ;;  %v1839_v19 = vrot.slane %v1838_v0, 2 }
 0x73d   :  { %v1904_v63 = vrot.slane %v1903_v30, 1  ;;  %v6976_v20 = vpop.permute.xlu1 %2475  ;;  %v1877_v55 = vrot.slane %v1876_v18, 1  ;;  %v1823_v26 = vrot.slane %v1822_v46, 1  ;;  %v1956_v42 = vrot.slane %v1955_v62, 2 }
 0x73e   :  { %v6974_v37 = vadd.f32 %v1814_v25, %v1813_v59  ;;  %v1920_v24 = vrot.slane %v1919_v60, 2  ;;  %v1931_v14 = vrot.slane %v1930_v48, 1  ;;  %v2036_v31 = vadd.f32 %v2035_v35, %v8820_v21 }
 0x73f   :  { %v1866_v50 = vrot.slane %v1865_v40, 2  ;;  %v1831_v15 = vadd.f32 %v1830_v4, %v1829_v1  ;;  %v1858_v61 = vadd.f32 %v1857_v32, %v1856_v51  ;;  %v1905_v25 = vadd.f32 %v1904_v63, %v1903_v30  ;;  %v6988_v51 = vpop.f32.mrf.mxu1 }
 0x740   :  { %v6978_v39 = vpop.permute.xlu2 %2499  ;;  %v1896_v59 = vadd.f32 %v1895_v52, %v1894_v22  ;;  %v1878_v7 = vadd.f32 %v1877_v55, %v1876_v18  ;;  %v1824_v41 = vadd.f32 %v1823_v26, %v1822_v46  ;;  %v6984_v6 = vadd.f32 %v1956_v42, %v1955_v62 }
 0x741   :  { %8821 = vst [vmem:[#allocation36_spill] sm:$0xff] %v6978_v39  ;;  %v1921_v39 = vadd.f32 %v1920_v24, %v1919_v60  ;;  %v6986_v28 = vadd.f32 %v1931_v14, %v1930_v48  ;;  %v2037_v21 = vrot.slane %v2036_v31, 2  ;;  %v1867_v1 = vadd.f32 %v1866_v50, %v1865_v40 }
 0x742   :  { %5293 = vset.pattern.permute.xlu2 %v8809_v10  ;;  %v1840_v10 = vadd.f32 %v1839_v19, %v1838_v0  ;;  %v1832_v0 = vrot.slane %v1831_v15, 1  ;;  %v1859_v30 = vrot.slane %v1858_v61, 1  ;;  %v6993_v18 = vadd.f32 %v2017_v54, %v6797_v53 }
 0x743   :  { %v2496_v12 = vpop.permute.xlu0 %2495  ;;  %v1963_v46 = vrot.slane %v6799_v3, 4  ;;  %v2053_v62 = vrot.slane %v6802_v49, 4  ;;  %v1972_v60 = vrot.slane %v6815_v43, 4  ;;  %v2645_v48 = vrot.slane %v6988_v51, 1 }
 0x744   :  { %v1841_v22 = vrot.slane %v1840_v10, 1  ;;  %v2576_v40 = vadd.f32 %v6900_v58, %v1887_v2  ;;  %v1922_v32 = vrot.slane %v1921_v39, 1  ;;  %v1914_v19 = vadd.f32 %v1913_v27, %v1912_v33 }
 0x745   :  { %v7001_v11 = vadd.f32 %v2037_v21, %v2036_v31  ;;  %v1868_v63 = vrot.slane %v1867_v1, 1  ;;  %v2026_v53 = vrot.slane %v6819_v36, 4  ;;  %v1833_v54 = vadd.f32 %v1832_v0, %v1831_v15 }
 0x746   :  { %v2478_v16 = vpop.permute.xlu1 %2477  ;;  %v7004_v52 = vadd.f32 %v1859_v30, %v1858_v61  ;;  %v1842_v5 = vadd.f32 %v1841_v22, %v1840_v10  ;;  %v1941_v55 = vadd.f32 %v1940_v9, %v1939_v29  ;;  %v2019_v26 = vrot.slane %v6993_v18, 2  ;;  %v8823_v22 = vld [vmem:[#allocation77_spill] sm:$0xff] }
 0x747   :  { %v7008_v42 = vadd.f32 %v1963_v46, %v6799_v3  ;;  %v7011_v58 = vadd.f32 %v2053_v62, %v6802_v49  ;;  %v7014_v2 = vadd.f32 %v1972_v60, %v6815_v43  ;;  %v2707_v24 = vadd.f32 %v2645_v48, %v2576_v40 }
 0x748   :  { %v2575_v14 = vadd.f32 %v6967_v13, %v1878_v7  ;;  %v1923_v31 = vadd.f32 %v1922_v32, %v1921_v39  ;;  %v1999_v50 = vrot.slane %v6828_v8, 4  ;;  %v2646_v10 = vrot.slane %v6988_v51, 2  ;;  %v8824_v60 = vld [vmem:[#allocation36_spill] sm:$0xff] }
 0x749   :  { %v2577_v29 = vadd.f32 %v6934_v44, %v1896_v59  ;;  %v7020_v15 = vadd.f32 %v1868_v63, %v1867_v1  ;;  %v7023_v3 = vadd.f32 %v2026_v53, %v6819_v36  ;;  %v2647_v49 = vrot.slane %v6988_v51, 3 }
 0x74a   :  { %v6990_v35 = vpop.permute.xlu2 %2505  ;;  %v2638_v43 = vrot.slane %v6965_v38, 1  ;;  %v2568_v7 = vadd.f32 %v6947_v47, %v6974_v37  ;;  %v2639_v13 = vrot.slane %v6965_v38, 2  ;;  %v2578_v39 = vadd.f32 %v6923_v57, %v1905_v25 }
 0x74b   :  { %v2569_v61 = vadd.f32 %v6976_v20, %v1824_v41  ;;  %v2648_v44 = vrot.slane %v6988_v51, 4  ;;  %v2579_v59 = vadd.f32 %v2496_v12, %v1914_v19  ;;  %v7036_v36 = vadd.f32 %v6940_v56, %v2707_v24 }
 0x74c   :  { %v2484_v33 = vpop.permute.xlu0 %2483  ;;  %v2706_v1 = vadd.f32 %v6988_v51, %v2575_v14  ;;  %v2640_v0 = vrot.slane %v6965_v38, 3  ;;  %v2570_v47 = vadd.f32 %v2478_v16, %v1833_v54  ;;  %v2708_v37 = vadd.f32 %v2646_v10, %v2577_v29  ;;  %v8826_v14 = vld [vmem:[#allocation39_spill] sm:$0xff] }
 0x74d   :  { %8822 = vst [vmem:[#allocation32_spill] sm:$0xff] %v7036_v36  ;;  %v2641_v30 = vrot.slane %v6965_v38, 4  ;;  %v1981_v41 = vrot.slane %v6850_v34, 4  ;;  %v2567_v12 = vadd.f32 %v6910_v17, %v6953_v45  ;;  %v2699_v20 = vadd.f32 %v2638_v43, %v2568_v7 }
 0x74e   :  { %v2650_v25 = vrot.slane %v6988_v51, 6  ;;  %v1945_v9 = vrot.slane %v8823_v22, 4  ;;  %v2709_v46 = vadd.f32 %v2647_v49, %v2578_v39  ;;  %v2700_v62 = vadd.f32 %v2639_v13, %v2569_v61 }
 0x74f   :  { %v2480_v27 = vpop.permute.xlu1 %2479  ;;  %v2581_v48 = vadd.f32 %v8824_v60, %v6986_v28  ;;  %v2710_v16 = vadd.f32 %v2648_v44, %v2579_v59  ;;  %v2809_v40 = vrot.slane %v7036_v36, 7  ;;  %v7050_v32 = vadd.f32 %v6940_v56, %v2706_v1 }
 0x750   :  { %v2571_v57 = vadd.f32 %v2480_v27, %v1842_v5  ;;  %v2701_v19 = vadd.f32 %v2640_v0, %v2570_v47  ;;  %v2651_v63 = vrot.slane %v6988_v51, 7  ;;  %v7054_v45 = vadd.f32 %v6940_v56, %v2708_v37 }
 0x751   :  { %v2642_v53 = vrot.slane %v6965_v38, 5  ;;  %v2698_v24 = vadd.f32 %v6965_v38, %v2567_v12  ;;  %v7059_v28 = vadd.f32 %v6940_v56, %v2699_v20  ;;  %v2572_v10 = vadd.f32 %v8826_v14, %v6981_v23 }
 0x752   :  { %v7033_v21 = vpop.permute.xlu2 %2523  ;;  %8825 = vst [vmem:[#allocation50_spill] sm:$0xff] %v7054_v45  ;;  %v2702_v54 = vadd.f32 %v2641_v30, %v2571_v57  ;;  %v2649_v29 = vrot.slane %v6988_v51, 5  ;;  %v7065_v49 = vadd.f32 %v6940_v56, %v2709_v46  ;;  %v7068_v43 = vadd.f32 %v6940_v56, %v2700_v62 }
 0x753   :  { %v2712_v7 = vadd.f32 %v2650_v25, %v2581_v48  ;;  %v7071_v13 = vadd.f32 %v6940_v56, %v2710_v16  ;;  %v2810_v61 = vsel %vm528_vm2, %v2809_v40, %v7050_v32  ;;  %v7078_v23 = vadd.f32 %v6940_v56, %v2701_v19  ;;  %v8832_v19 = vld [vmem:[#allocation66_spill] sm:$0xff] }
 0x754   :  { %v2502_v17 = vpop.permute.xlu0 %2501  ;;  %8827 = vst [vmem:[#allocation42_spill] sm:$0xff] %v7065_v49  ;;  %v2811_v59 = vrot.slane %v7054_v45, 6  ;;  %v2643_v27 = vrot.slane %v6965_v38, 6  ;;  %v2573_v1 = vadd.f32 %v2484_v33, %v7004_v52  ;;  %v7084_v0 = vadd.f32 %v6940_v56, %v2702_v54 }
 0x755   :  { %v2582_v5 = vadd.f32 %v2502_v17, %v1941_v55  ;;  %8828 = vst [vmem:[#allocation44_spill] sm:$0xff] %v7071_v13  ;;  %v7087_v47 = vadd.f32 %v6940_v56, %v2698_v24  ;;  %v2795_v37 = vrot.slane %v7059_v28, 7  ;;  %v2703_v30 = vadd.f32 %v2642_v53, %v2572_v10 }
 0x756   :  { %v2812_v12 = vsel %vm530_vm3, %v2811_v59, %v2810_v61  ;;  %v7093_v20 = vadd.f32 %v6940_v56, %v2712_v7  ;;  %v2815_v25 = vrot.slane %v7071_v13, 4  ;;  %v2813_v52 = vrot.slane %v7065_v49, 5 }
 0x757   :  { %v2498_v55 = vpop.permute.xlu1 %2497  ;;  %v2713_v51 = vadd.f32 %v2651_v63, %v2582_v5  ;;  %v2799_v33 = vrot.slane %v7078_v23, 5  ;;  %v2704_v48 = vadd.f32 %v2643_v27, %v2573_v1  ;;  %v2801_v16 = vrot.slane %v7084_v0, 4  ;;  %v8834_v27 = vld [vmem:[#allocation67_spill] sm:$0xff] }
 0x758   :  { %v2580_v44 = vadd.f32 %v2498_v55, %v1923_v31  ;;  %v2797_v31 = vrot.slane %v7068_v43, 6  ;;  %8829 = vst [vmem:[#allocation41_spill] sm:$0xff] %v7093_v20  ;;  %v1946_v40 = vadd.f32 %v1945_v9, %v8823_v22  ;;  %v2080_v63 = vrot.slane %v8832_v19, 4 }
 0x759   :  { %v7099_v46 = vadd.f32 %v6940_v56, %v2713_v51  ;;  %v2796_v17 = vsel %vm528_vm2, %v2795_v37, %v7087_v47  ;;  %v7112_v53 = vadd.f32 %v6940_v56, %v2703_v30  ;;  %v2814_v5 = vsel %vm532_vm4, %v2813_v52, %v2812_v12  ;;  %v8836_v52 = vld [vmem:[#allocation80_spill] sm:$0xff] }
 0x75a   :  { %v2711_v57 = vadd.f32 %v2649_v29, %v2580_v44  ;;  %v2798_v24 = vsel %vm530_vm3, %v2797_v31, %v2796_v17  ;;  %v2644_v14 = vrot.slane %v6965_v38, 7  ;;  %v2816_v29 = vsel %vm534_vm5, %v2815_v25, %v2814_v5 }
 0x75b   :  { %v7073_v39 = vpop.permute.xlu2 %2519  ;;  %8830 = vst [vmem:[#allocation14_spill] sm:$0xff] %v7099_v46  ;;  %v2819_v22 = vrot.slane %v7093_v20, 2  ;;  %v2821_v61 = vrot.slane %v7099_v46, 1  ;;  %v2800_v51 = vsel %vm532_vm4, %v2799_v33, %v2798_v24  ;;  %v7127_v44 = vadd.f32 %v6940_v56, %v2704_v48 }
 0x75c   :  { %v7102_v62 = vadd.f32 %v6940_v56, %v2711_v57  ;;  %v2802_v59 = vsel %vm534_vm5, %v2801_v16, %v2800_v51  ;;  %v2062_v1 = vrot.slane %v8834_v27, 4  ;;  %v2803_v37 = vrot.slane %v7112_v53, 3 }
 0x75d   :  { %v2000_v57 = vadd.f32 %v1999_v50, %v6828_v8  ;;  %v1965_v12 = vrot.slane %v7008_v42, 2  ;;  %v1982_v31 = vadd.f32 %v1981_v41, %v6850_v34  ;;  %v1947_v25 = vrot.slane %v1946_v40, 2 }
 0x75e   :  { %8831 = vst [vmem:[#allocation47_spill] sm:$0xff] %v7102_v62  ;;  %v7104_v60 = vpop.permute.xlu0 %2507  ;;  %v2817_v54 = vrot.slane %v7102_v62, 3  ;;  %v2044_v33 = vrot.slane %v8836_v52, 4  ;;  %v2055_v16 = vrot.slane %v7011_v58, 2  ;;  %v2804_v8 = vsel %vm536_vm6, %v2803_v37, %v2802_v59 }
 0x75f   :  { %v2081_v50 = vadd.f32 %v2080_v63, %v8832_v19  ;;  %v2020_v34 = vadd.f32 %v2019_v26, %v6993_v18  ;;  %v1974_v41 = vrot.slane %v7014_v2, 2  ;;  %v2063_v5 = vadd.f32 %v2062_v1, %v8834_v27  ;;  %v7172_v27 = vpop.f32.mrf.mxu1 }
 0x760   :  { %v2818_v55 = vsel %vm536_vm6, %v2817_v54, %v2816_v29  ;;  %v2805_v54 = vrot.slane %v7127_v44, 2  ;;  %v2028_v24 = vrot.slane %v7023_v3, 2  ;;  %v8837_v29 = vld [vmem:[#allocation68_spill] sm:$0xff]  ;;  %v1983_v63 = vrot.slane %v1982_v31, 2 }
 0x761   :  { %v2486_v10 = vpop.permute.xlu1 %2485  ;;  %v2820_v38 = vsel %vm8833_vm0, %v2819_v22, %v2818_v55  ;;  %v2008_v22 = vrot.slane %v8837_v29, 4  ;;  %v1948_v55 = vadd.f32 %v1947_v25, %v1946_v40  ;;  %v2039_v18 = vrot.slane %v7001_v11, 1 }
 0x762   :  { %v2574_v9 = vadd.f32 %v2486_v10, %v7020_v15  ;;  %v7134_v30 = vsel %vm8835_vm12, %v2821_v61, %v2820_v38  ;;  %v2806_v19 = vsel %vm8838_vm13, %v2805_v54, %v2804_v8  ;;  %v2045_v61 = vadd.f32 %v2044_v33, %v8836_v52  ;;  %v8840_v38 = vld [vmem:[#allocation69_spill] sm:$0xff]  ;;  %vm8864_vm12 = vmmov %vm8844_vm8 }
 0x763   :  { %3354 = vrot.lane.b32.xlu0 %v7134_v30, %s5383_s23  ;;  %v2082_v51 = vrot.slane %v2081_v50, 2  ;;  %v1990_v59 = vrot.slane %v8840_v38, 4  ;;  %v1966_v1 = vadd.f32 %v1965_v12, %v7008_v42  ;;  %v2056_v37 = vadd.f32 %v2055_v16, %v7011_v58  ;;  %vm8885_vm13 = vmmov %vm8833_vm0 }
 0x764   :  { %v7121_v7 = vpop.permute.xlu2 %2527  ;;  %v2705_v15 = vadd.f32 %v2644_v14, %v2574_v9  ;;  %v2001_v14 = vrot.slane %v2000_v57, 2  ;;  %v2064_v40 = vrot.slane %v2063_v5, 2  ;;  %v2021_v52 = vrot.slane %v2020_v34, 1 }
 0x765   :  { %v1975_v33 = vadd.f32 %v1974_v41, %v7014_v2  ;;  %v2029_v8 = vadd.f32 %v2028_v24, %v7023_v3  ;;  %v1984_v4 = vadd.f32 %v1983_v63, %v1982_v31  ;;  %v1949_v42 = vrot.slane %v1948_v55, 1 }
 0x766   :  { %v7147_v48 = vadd.f32 %v6940_v56, %v2705_v15  ;;  %v7150_v17 = vpop.permute.xlu0 %2509  ;;  %v8841_v15 = vld [vmem:[#allocation60_spill] sm:$0xff]  ;;  %v2046_v12 = vrot.slane %v2045_v61, 2  ;;  %v8842_v58 = vrot.slane %v6984_v6, 1  ;;  %v2040_v46 = vadd.f32 %v2039_v18, %v7001_v11 }
 0x767   :  { %v2071_v25 = vrot.slane %v8841_v15, 4  ;;  %v2083_v62 = vadd.f32 %v2082_v51, %v2081_v50  ;;  %v1991_v2 = vadd.f32 %v1990_v59, %v8840_v38  ;;  %v1967_v41 = vrot.slane %v1966_v1, 1 }
 0x768   :  { %v2807_v10 = vrot.slane %v7147_v48, 1  ;;  %v1959_v16 = vadd.f32 %v8842_v58, %v6984_v6  ;;  %v2057_v3 = vrot.slane %v2056_v37, 1  ;;  %v2065_v24 = vadd.f32 %v2064_v40, %v2063_v5  ;;  %v7192_v58 = vpop.f32.mrf.mxu1 }
 0x769   :  { %v2072_v13 = vadd.f32 %v2071_v25, %v8841_v15  ;;  %v2030_v31 = vrot.slane %v2029_v8, 1  ;;  %v1985_v63 = vrot.slane %v1984_v4, 1  ;;  %v1950_v45 = vadd.f32 %v1949_v42, %v1948_v55 }
 0x76a   :  { %v7163_v9 = vpop.permute.xlu1 %2521  ;;  %v7169_v26 = vsel %vm8839_vm14, %v2807_v10, %v2806_v19  ;;  %v2009_v10 = vadd.f32 %v2008_v22, %v8837_v29  ;;  %v2002_v19 = vadd.f32 %v2001_v14, %v2000_v57  ;;  %v2022_v29 = vadd.f32 %v2021_v52, %v2020_v34  ;;  %vm8886_vm14 = vmmov %vm8844_vm8 }
 0x76b   :  { %3352 = vrot.lane.b32.xlu1 %v7169_v26, %s5383_s23  ;;  %v1976_v57 = vrot.slane %v1975_v33, 1  ;;  %v2047_v6 = vadd.f32 %v2046_v12, %v2045_v61  ;;  %v2652_v11 = vrot.slane %v7172_v27, 1  ;;  %v2584_v50 = vadd.f32 %v6990_v35, %v1959_v16 }
 0x76c   :  { %v7181_v54 = vpop.permute.xlu2 %2515  ;;  %v2010_v14 = vrot.slane %v2009_v10, 2  ;;  %v2003_v22 = vrot.slane %v2002_v19, 1  ;;  %v2084_v18 = vrot.slane %v2083_v62, 1  ;;  %v1992_v51 = vrot.slane %v1991_v2, 2 }
 0x76d   :  { %v1968_v38 = vadd.f32 %v1967_v41, %v1966_v1  ;;  %v2058_v59 = vadd.f32 %v2057_v3, %v2056_v37  ;;  %v2066_v5 = vrot.slane %v2065_v24, 1  ;;  %v2073_v40 = vrot.slane %v2072_v13, 2 }
 0x76e   :  { %v1977_v15 = vadd.f32 %v1976_v57, %v1975_v33  ;;  %v2031_v34 = vadd.f32 %v2030_v31, %v2029_v8  ;;  %v2011_v52 = vadd.f32 %v2010_v14, %v2009_v10  ;;  %v2653_v36 = vrot.slane %v7172_v27, 2 }
 0x76f   :  { %v2585_v55 = vadd.f32 %v7104_v60, %v1968_v38  ;;  %v2004_v61 = vadd.f32 %v2003_v22, %v2002_v19  ;;  %v2048_v42 = vrot.slane %v2047_v6, 1  ;;  %v2715_v12 = vadd.f32 %v2652_v11, %v2584_v50 }
 0x770   :  { %v2512_v20 = vpop.permute.xlu0 %2511  ;;  %v1986_v35 = vadd.f32 %v1985_v63, %v1984_v4  ;;  %v7196_v16 = vadd.f32 %v2084_v18, %v2083_v62  ;;  %v1993_v41 = vadd.f32 %v1992_v51, %v1991_v2  ;;  %v2659_v33 = vrot.slane %v7192_v58, 1 }
 0x771   :  { %v7202_v8 = vadd.f32 %v2073_v40, %v2072_v13  ;;  %v2654_v10 = vrot.slane %v7172_v27, 3  ;;  %v2586_v60 = vadd.f32 %v7150_v17, %v1977_v15  ;;  %v2012_v4 = vrot.slane %v2011_v52, 1 }
 0x772   :  { %v2504_v49 = vpop.permute.xlu1 %2503  ;;  %v2716_v62 = vadd.f32 %v2653_v36, %v2585_v55  ;;  %v2655_v3 = vrot.slane %v7172_v27, 4  ;;  %v2587_v57 = vadd.f32 %v2512_v20, %v1986_v35  ;;  %v2049_v2 = vadd.f32 %v2048_v42, %v2047_v6 }
 0x773   :  { %v2583_v25 = vadd.f32 %v2504_v49, %v1950_v45  ;;  %v2592_v45 = vadd.f32 %v7163_v9, %v2031_v34  ;;  %v2067_v49 = vadd.f32 %v2066_v5, %v2065_v24  ;;  %v7209_v14 = vadd.f32 %v6940_v56, %v2715_v12 }
 0x774   :  { %v7198_v1 = vpop.permute.xlu2 %2533  ;;  %v2660_v9 = vrot.slane %v7192_v58, 2  ;;  %v2593_v13 = vadd.f32 %v7033_v21, %v2040_v46  ;;  %v1994_v24 = vrot.slane %v1993_v41, 1  ;;  %v2661_v17 = vrot.slane %v7192_v58, 3 }
 0x775   :  { %v2714_v19 = vadd.f32 %v7172_v27, %v2583_v25  ;;  %v2723_v22 = vadd.f32 %v2659_v33, %v2592_v45  ;;  %v2075_v11 = vrot.slane %v7202_v8, 1  ;;  %v2717_v36 = vadd.f32 %v2654_v10, %v2586_v60 }
 0x776   :  { %v2657_v50 = vrot.slane %v7172_v27, 6  ;;  %v2013_v6 = vadd.f32 %v2012_v4, %v2011_v52  ;;  %v2591_v18 = vadd.f32 %v7073_v39, %v2022_v29  ;;  %v7221_v51 = vadd.f32 %v6940_v56, %v2716_v62 }
 0x777   :  { %v7217_v20 = vadd.f32 %v6940_v56, %v2714_v19  ;;  %v2589_v21 = vadd.f32 %v7181_v54, %v2004_v61  ;;  %v2718_v46 = vadd.f32 %v2655_v3, %v2587_v57  ;;  %v2823_v38 = vrot.slane %v7209_v14, 7 }
 0x778   :  { %v2530_v37 = vpop.permute.xlu0 %2529  ;;  %v2724_v5 = vadd.f32 %v2660_v9, %v2593_v13  ;;  %v2658_v40 = vrot.slane %v7172_v27, 7  ;;  %v1995_v34 = vadd.f32 %v1994_v24, %v1993_v41  ;;  %v2662_v25 = vrot.slane %v7192_v58, 4 }
 0x779   :  { %v7228_v55 = vadd.f32 %v6940_v56, %v2723_v22  ;;  %v2595_v29 = vadd.f32 %v7121_v7, %v2058_v59  ;;  %v7232_v42 = vadd.f32 %v6940_v56, %v2717_v36  ;;  %v2824_v54 = vsel %vm528_vm2, %v2823_v38, %v7217_v20 }
 0x77a   :  { %v2656_v12 = vrot.slane %v7172_v27, 5  ;;  %v2722_v35 = vadd.f32 %v7192_v58, %v2591_v18  ;;  %v2825_v41 = vrot.slane %v7221_v51, 6  ;;  %v2720_v33 = vadd.f32 %v2657_v50, %v2589_v21 }
 0x77b   :  { %v2526_v31 = vpop.permute.xlu1 %2525  ;;  %v7242_v45 = vadd.f32 %v6940_v56, %v2718_v46  ;;  %v7245_v7 = vadd.f32 %v6940_v56, %v2724_v5  ;;  %v2663_v59 = vrot.slane %v7192_v58, 5  ;;  %v2837_v4 = vrot.slane %v7228_v55, 7 }
 0x77c   :  { %v2594_v63 = vadd.f32 %v2526_v31, %v2049_v2  ;;  %v7236_v61 = vpop.permute.xlu2 %4436  ;;  %v2826_v27 = vsel %vm530_vm3, %v2825_v41, %v2824_v54  ;;  %v2596_v62 = vadd.f32 %v2530_v37, %v2067_v49  ;;  %v2726_v57 = vadd.f32 %v2662_v25, %v2595_v29 }
 0x77d   :  { %v2827_v31 = vrot.slane %v7232_v42, 5  ;;  %v2665_v2 = vrot.slane %v7192_v58, 7  ;;  %v7256_v13 = vadd.f32 %v6940_v56, %v2722_v35  ;;  %v7259_v24 = vadd.f32 %v6940_v56, %v2720_v33 }
 0x77e   :  { %v2725_v52 = vadd.f32 %v2661_v17, %v2594_v63  ;;  %v2829_v22 = vrot.slane %v7242_v45, 4  ;;  %v2598_v37 = vadd.f32 %v7198_v1, %v7196_v16  ;;  %v2076_v21 = vadd.f32 %v2075_v11, %v7202_v8 }
 0x77f   :  { %v2828_v36 = vsel %vm532_vm4, %v2827_v31, %v2826_v27  ;;  %v2838_v50 = vsel %vm528_vm2, %v2837_v4, %v7256_v13  ;;  %v2839_v16 = vrot.slane %v7245_v7, 6  ;;  %v7279_v1 = vadd.f32 %v6940_v56, %v2726_v57  ;;  %v8846_v57 = vld [vmem:[#allocation54_spill] sm:$0xff] }
 0x780   :  { %v7251_v3 = vadd.f32 %v6940_v56, %v2725_v52  ;;  %v2664_v38 = vrot.slane %v7192_v58, 6  ;;  %v2833_v5 = vrot.slane %v7259_v24, 2 }
 0x781   :  { %v2840_v11 = vsel %vm530_vm3, %v2839_v16, %v2838_v50 }
 0x782   :  { %v2518_v15 = vpop.permute.xlu0 %2517  ;;  %v2841_v18 = vrot.slane %v7251_v3, 5 }
 0x783   :  { %v2590_v39 = vadd.f32 %v2518_v15, %v2013_v6  ;;  %v2727_v6 = vadd.f32 %v2663_v59, %v2596_v62 }
 0x784   :  { %v2514_v10 = vpop.permute.xlu1 %2513  ;;  %v4450_v25 = vpop.permute.xlu2 %4449  ;;  %v2842_v58 = vsel %vm532_vm4, %v2841_v18, %v2840_v11  ;;  %v8849_v18 = vld [vmem:[#allocation55_spill] sm:$0xff] }
 0x785   :  { %v2721_v60 = vadd.f32 %v2658_v40, %v2590_v39  ;;  %v2588_v19 = vadd.f32 %v2514_v10, %v1995_v34  ;;  %v2729_v40 = vadd.f32 %v2665_v2, %v2598_v37  ;;  %v2830_v34 = vsel %vm534_vm5, %v2829_v22, %v2828_v36  ;;  %v8845_v10 = vld [vmem:[#allocation53_spill] sm:$0xff] }
 0x786   :  { %v7289_v29 = vadd.f32 %v6940_v56, %v2727_v6  ;;  %v4515_v59 = vmul.f32 %v4450_v25, %v8845_v10 }
 0x787   :  { %v2719_v9 = vadd.f32 %v2656_v12, %v2588_v19  ;;  %v7265_v49 = vadd.f32 %v6940_v56, %v2721_v60  ;;  %v2843_v12 = vrot.slane %v7279_v1, 4  ;;  %v7296_v33 = vadd.f32 %v6940_v56, %v2729_v40 }
 0x788   :  { %v2855_v19 = vsel %vm620_vm10, %v7169_v26, 0.0  ;;  %v2845_v62 = vrot.slane %v7289_v29, 3 }
 0x789   :  { %v7268_v17 = vadd.f32 %v6940_v56, %v2719_v9  ;;  %v2835_v8 = vrot.slane %v7265_v49, 1  ;;  %v2844_v27 = vsel %vm534_vm5, %v2843_v12, %v2842_v58  ;;  %v4631_v9 = vsel %vm620_vm10, %v4515_v59, -inf }
 0x78a   :  { %v7270_v63 = vpop.permute.xlu0 %4339  ;;  %v2849_v37 = vrot.slane %v7296_v33, 1 }
 0x78b   :  { %v2831_v46 = vrot.slane %v7268_v17, 3 }
 0x78c   :  { %v2532_v15 = vpop.permute.xlu1 %2531 }
 0x78d   :  { %v2597_v52 = vadd.f32 %v2532_v15, %v2076_v21  ;;  %v2832_v39 = vsel %vm536_vm6, %v2831_v46, %v2830_v34  ;;  %2856 = vadd.xlane.f32.xlu0 %v2855_v19  ;;  %v4534_v21 = vrot.slane %v8849_v18, 4 }
 0x78e   :  { %v2834_v54 = vsel %vm8843_vm7, %v2833_v5, %v2832_v39  ;;  %vm8907_vm7 = vmmov %vm8833_vm0 }
 0x78f   :  { %v2728_v35 = vadd.f32 %v2664_v38, %v2597_v52  ;;  %v2836_v41 = vsel %vm8844_vm8, %v2835_v8, %v2834_v54  ;;  %v4535_v46 = vmax.f32 %v8849_v18, %v4534_v21  ;;  %v8851_v38 = vld [vmem:[#allocation51_spill] sm:$0xff] }
 0x790   :  { %3356 = vrot.lane.b32.xlu2 %v2836_v41, %s5383_s23  ;;  %v4490_v5 = vmul.f32 %v8851_v38, %v8846_v57 }
 0x791   :  { %v7301_v60 = vadd.f32 %v6940_v56, %v2728_v35  ;;  %v2846_v56 = vsel %vm536_vm6, %v2845_v62, %v2844_v27  ;;  %v4536_v40 = vrot.slane %v4535_v46, 2 }
 0x792   :  { %v4444_v4 = vpop.permute.xlu0 %4443  ;;  %v4522_v25 = vsel %vm620_vm10, %v4490_v5, -inf }
 0x793   :  { %v4514_v31 = vmul.f32 %v4444_v4, %v8846_v57  ;;  %v2847_v2 = vrot.slane %v7301_v60, 2  ;;  %v4537_v39 = vmax.f32 %v4535_v46, %v4536_v40  ;;  %v2861_v4 = vsel %vm620_vm10, %v2836_v41, 0.0 }
 0x795   :  { %v4630_v22 = vsel %vm620_vm10, %v4514_v31, -inf  ;;  %v2848_v26 = vsel %vm8847_vm15, %v2847_v2, %v2846_v56  ;;  %v4538_v54 = vrot.slane %v4537_v39, 1  ;;  %v2858_v56 = vsel %vm620_vm10, %v7134_v30, 0.0  ;;  %vm8914_vm15 = vmmov %vm8833_vm0 }
 0x796   :  { %v7313_v36 = vmax.f32 %v4630_v22, %v4631_v9  ;;  %v2850_v50 = vsel %vm8848_vm9, %v2849_v37, %v2848_v26  ;;  %v7332_v37 = vpop.permute.xlu1 %4352  ;;  %v8853_v26 = vld [vmem:[#allocation58_spill] sm:$0xff]  ;;  %vm8917_vm9 = vmmov %vm8844_vm8 }
 0x797   :  { %3358 = vrot.lane.b32.xlu1 %v2850_v50, %s5383_s23  ;;  %v2864_v6 = vsel %vm620_vm10, %v2850_v50, 0.0  ;;  %v4539_v35 = vmax.f32 %v4537_v39, %v4538_v54  ;;  %8852 = vst [vmem:[#allocation11_spill] sm:$0xff] %v7332_v37  ;;  %v4495_v50 = vmul.f32 %v8853_v26, %v8845_v10  ;;  %v5384_v54 = vmov 16.0  }
 0x798   :  { %2865 = vadd.xlane.f32.xlu0 %v2864_v6  ;;  %v8854_v6 = vld [vmem:[#allocation33_spill] sm:$0xff]  ;;  %5313 = vrcp.f32 %v5384_v54 }
 0x799   :  { %v4671_v27 = vpack.c.bf16 %v4539_v35, %v4539_v35  ;;  %v4494_v41 = vmul.f32 %v8854_v6, %v8846_v57  ;;  %v4541_v18 = vsel %vm620_vm10, %v4495_v50, -inf }
 0x79a   :  { %v7320_v16 = vpop.permute.xlu0 %4365 }
 0x79b   :  { %8850 = vst [vmem:[#allocation46_spill] sm:$0xff] %v7320_v16  ;;  %v4703_v2 = vunpack.c.l.b16 %v4671_v27  ;;  %v4540_v21 = vsel %vm620_vm10, %v4494_v41, -inf  ;;  %v8855_v27 = vld [vmem:[#allocation31_spill] sm:$0xff] }
 0x79c   :  { %v4542_v38 = vmax.f32 %v4540_v21, %v4541_v18 }
 0x79e   :  { %v4543_v30 = vrot.slane %v4542_v38, 4  ;;  %v5314_v35 = vpop.eup %5313 }
 0x79f   :  { %vm2872_vm1 = vweird.f32 %v5314_v35 }
 0x7a4   :  { %v7340_v46 = vpop.permute.xlu1 %4462 }
 0x7aa   :  { %v4294_v15 = vpop.permute.xlu0 %4293 }
 0x7ab   :  { %v4491_v34 = vmul.f32 %v4294_v15, %v8845_v10 }
 0x7ad   :  { %v4523_v52 = vsel %vm620_vm10, %v4491_v34, -inf  ;;  %v4544_v34 = vmax.f32 %v4542_v38, %v4543_v30 }
 0x7ae   :  { %v4524_v8 = vmax.f32 %v4522_v25, %v4523_v52  ;;  %v7344_v52 = vpop.permute.xlu2 %4456 }
 0x7af   :  { %v4545_v39 = vrot.slane %v4544_v34, 2 }
 0x7b0   :  { %v4525_v11 = vrot.slane %v4524_v8, 4 }
 0x7b2   :  { %v4526_v58 = vmax.f32 %v4524_v8, %v4525_v11  ;;  %v4546_v8 = vmax.f32 %v4544_v34, %v4545_v39 }
 0x7b4   :  { %v4527_v12 = vrot.slane %v4526_v58, 2 }
 0x7b6   :  { %v4528_v59 = vmax.f32 %v4526_v58, %v4527_v12  ;;  %v4547_v12 = vrot.slane %v4546_v8, 1 }
 0x7b8   :  { %v4529_v19 = vrot.slane %v4528_v59, 1 }
 0x7b9   :  { %2862 = vadd.xlane.f32.xlu2 %v2861_v4 }
 0x7ba   :  { %v4530_v62 = vmax.f32 %v4528_v59, %v4529_v19  ;;  %v4548_v59 = vmax.f32 %v4546_v8, %v4547_v12  ;;  %v2868_v19 = vmul.f32 16.0, %v5314_v35 }
 0x7bc   :  { %v4670_v31 = vpack.c.bf16 %v4530_v62, %v4530_v62  ;;  %v4672_v4 = vpack.c.bf16 %v4548_v59, %v4548_v59  ;;  %v8856_v62 = vperm.slane %v8855_v27, 0 }
 0x7be   :  { %v4702_v9 = vunpack.c.l.b16 %v4670_v31  ;;  %v2869_v31 = vsub.f32 1.0, %v2868_v19 }
 0x7c0   :  { %v4718_v22 = vsel %vm528_vm2, %v4703_v2, %v4702_v9  ;;  %v4704_v2 = vunpack.c.l.b16 %v4672_v4  ;;  %v2870_v9 = vmul.f32 %v5314_v35, %v2869_v31 }
 0x7c1   :  { %2859 = vadd.xlane.f32.xlu1 %v2858_v56 }
 0x7c2   :  { %v7350_v56 = vsel %vm530_vm3, %v4704_v2, %v4718_v22  ;;  %v2871_v26 = vadd.f32 %v5314_v35, %v2870_v9 }
 0x7c4   :  { %v7352_v50 = vsel %vm2872_vm1, %v5314_v35, %v2871_v26  ;;  %vm8920_vm1 = vmmov %vm8833_vm0 }
 0x7d5   :  { %v3355_v5 = vpop.permute.xlu0 %3354 }
 0x7d6   :  { %v3367_v40 = vsel %vm620_vm10, %v3355_v5, 0.0 }
 0x7d7   :  { %3368 = vadd.xlane.f32.xlu2 %v3367_v40 }
 0x7dd   :  { %v3353_v15 = vpop.permute.xlu1 %3352 }
 0x7de   :  { %v3364_v25 = vsel %vm620_vm10, %v3353_v15, 0.0 }
 0x7df   :  { %3365 = vadd.xlane.f32.xlu0 %v3364_v25 }
 0x7ea   :  { %v3357_v11 = vpop.permute.xlu2 %3356 }
 0x7eb   :  { %v3370_v58 = vsel %vm620_vm10, %v3357_v11, 0.0 }
 0x7ec   :  { %3371 = vadd.xlane.f32.xlu1 %v3370_v58 }
 0x7f3   :  { %4397 = vperm.xlu0 %5292, %v8856_v62  }
 0x800   :  { %v2857_v6 = vpop.xlane.xlu0 %2856 }
 0x801   :  { %v2874_v41 = vmul.f32 %v7352_v50, %v2857_v6 }
 0x803   :  { %v2882_v18 = vrot.slane %v2874_v41, 1  ;;  %v2883_v21 = vrot.slane %v2874_v41, 2  ;;  %v2884_v38 = vrot.slane %v2874_v41, 3  ;;  %v2885_v5 = vrot.slane %v2874_v41, 4 }
 0x804   :  { %v2886_v40 = vrot.slane %v2874_v41, 5  ;;  %v2887_v30 = vrot.slane %v2874_v41, 6  ;;  %v2888_v15 = vrot.slane %v2874_v41, 7  ;;  %v7356_v34 = vsub.f32 %v7087_v47, %v2874_v41 }
 0x805   :  { %v7359_v22 = vsub.f32 %v7059_v28, %v2882_v18  ;;  %v7362_v25 = vsub.f32 %v7068_v43, %v2883_v21  ;;  %v7365_v39 = vsub.f32 %v7078_v23, %v2884_v38  ;;  %v7368_v8 = vsub.f32 %v7084_v0, %v2885_v5 }
 0x806   :  { %v7371_v11 = vsub.f32 %v7112_v53, %v2886_v40  ;;  %v7374_v54 = vsub.f32 %v7127_v44, %v2887_v30  ;;  %v7377_v58 = vsub.f32 %v7147_v48, %v2888_v15  ;;  %v2974_v4 = vmul.f32 %v7356_v34, %v7356_v34 }
 0x807   :  { %8857 = vst [vmem:[#allocation74_spill] sm:$0xff] %v7359_v22  ;;  %v2975_v12 = vmul.f32 %v7359_v22, %v7359_v22  ;;  %v2976_v35 = vmul.f32 %v7362_v25, %v7362_v25  ;;  %v2977_v59 = vmul.f32 %v7365_v39, %v7365_v39  ;;  %v2978_v19 = vmul.f32 %v7368_v8, %v7368_v8 }
 0x808   :  { %8858 = vst [vmem:[#allocation75_spill] sm:$0xff] %v7362_v25  ;;  %v2979_v27 = vmul.f32 %v7371_v11, %v7371_v11  ;;  %v2980_v2 = vmul.f32 %v7374_v54, %v7374_v54  ;;  %v2981_v9 = vmul.f32 %v7377_v58, %v7377_v58 }
 0x809   :  { %8859 = vst [vmem:[#allocation9_spill] sm:$0xff] %v7365_v39  ;;  %v3038_v62 = vrot.slane %v2975_v12, 7  ;;  %v3040_v31 = vrot.slane %v2976_v35, 6  ;;  %v3042_v6 = vrot.slane %v2977_v59, 5  ;;  %v3044_v18 = vrot.slane %v2978_v19, 4  ;;  %v3359_v59 = vpop.permute.xlu1 %3358 }
 0x80a   :  { %8860 = vst [vmem:[#allocation10_spill] sm:$0xff] %v7368_v8  ;;  %v3046_v38 = vrot.slane %v2979_v27, 3  ;;  %v3048_v40 = vrot.slane %v2980_v2, 2  ;;  %v3050_v15 = vrot.slane %v2981_v9, 1 }
 0x80b   :  { %8861 = vst [vmem:[#allocation76_spill] sm:$0xff] %v7371_v11  ;;  %v3039_v26 = vsel %vm528_vm2, %v3038_v62, %v2974_v4  ;;  %v3373_v4 = vsel %vm620_vm10, %v3359_v59, 0.0  ;;  %v8865_v62 = vld [vmem:[#allocation30_spill] sm:$0xff] }
 0x80c   :  { %8862 = vst [vmem:[#allocation70_spill] sm:$0xff] %v7374_v54  ;;  %v3041_v41 = vsel %vm530_vm3, %v3040_v31, %v3039_v26  ;;  %v8866_v27 = vperm.slane %v8865_v62, 3  ;;  %v8878_v62 = vld [vmem:[#allocation41_spill] sm:$0xff] }
 0x80d   :  { %8863 = vst [vmem:[#allocation71_spill] sm:$0xff] %v7377_v58  ;;  %v3043_v21 = vsel %vm532_vm4, %v3042_v6, %v3041_v41 }
 0x80e   :  { %v3045_v5 = vsel %vm534_vm5, %v3044_v18, %v3043_v21 }
 0x80f   :  { %v3047_v30 = vsel %vm536_vm6, %v3046_v38, %v3045_v5 }
 0x810   :  { %v3049_v12 = vsel %vm8833_vm0, %v3048_v40, %v3047_v30  ;;  %v8870_v40 = vld [vmem:[#allocation50_spill] sm:$0xff]  ;;  %vm8921_vm0 = vmmov %vm8844_vm8 }
 0x811   :  { %v3051_v35 = vsel %vm8864_vm12, %v3050_v15, %v3049_v12  ;;  %v8872_v15 = vld [vmem:[#allocation42_spill] sm:$0xff]  ;;  %vm8935_vm12 = vmmov %vm8920_vm1 }
 0x812   :  { %v3098_v58 = vsel %vm620_vm10, %v3051_v35, 0.0  ;;  %v8874_v35 = vld [vmem:[#allocation44_spill] sm:$0xff] }
 0x813   :  { %3099 = vadd.xlane.f32.xlu1 %v3098_v58  ;;  %v8868_v58 = vld [vmem:[#allocation32_spill] sm:$0xff] }
 0x81d   :  { %3374 = vadd.xlane.f32.xlu0 %v3373_v4  ;;  %v8876_v4 = vld [vmem:[#allocation47_spill] sm:$0xff] }
 0x831   :  { %4332 = vperm.xlu0 %5292, %v8866_v27  }
 0x834   :  { %v2860_v19 = vpop.xlane.xlu1 %2859 }
 0x835   :  { %v2875_v31 = vmul.f32 %v7352_v50, %v2860_v19 }
 0x837   :  { %v2889_v2 = vrot.slane %v2875_v31, 1  ;;  %v2890_v26 = vrot.slane %v2875_v31, 2  ;;  %v2891_v9 = vrot.slane %v2875_v31, 3  ;;  %v2892_v6 = vrot.slane %v2875_v31, 4 }
 0x838   :  { %v2893_v41 = vrot.slane %v2875_v31, 5  ;;  %v2894_v18 = vrot.slane %v2875_v31, 6  ;;  %v2895_v21 = vrot.slane %v2875_v31, 7  ;;  %v7408_v38 = vsub.f32 %v7050_v32, %v2875_v31  ;;  %v8880_v31 = vld [vmem:[#allocation14_spill] sm:$0xff] }
 0x839   :  { %v7411_v5 = vsub.f32 %v8868_v58, %v2889_v2  ;;  %v7414_v30 = vsub.f32 %v8870_v40, %v2890_v26  ;;  %v7417_v12 = vsub.f32 %v8872_v15, %v2891_v9  ;;  %v7420_v59 = vsub.f32 %v8874_v35, %v2892_v6  ;;  %v8882_v6 = vld [vmem:[#allocation37_spill] sm:$0xff] }
 0x83a   :  { %8867 = vst [vmem:[#allocation49_spill] sm:$0xff] %v7408_v38  ;;  %v7423_v19 = vsub.f32 %v8876_v4, %v2893_v41  ;;  %v7426_v27 = vsub.f32 %v8878_v62, %v2894_v18  ;;  %v7429_v54 = vsub.f32 %v8880_v31, %v2895_v21  ;;  %v8883_v11 = vperm.slane %v8882_v6, 4 }
 0x83b   :  { %8869 = vst [vmem:[#allocation13_spill] sm:$0xff] %v7411_v5  ;;  %v2983_v2 = vmul.f32 %v7411_v5, %v7411_v5  ;;  %v2984_v26 = vmul.f32 %v7414_v30, %v7414_v30  ;;  %v2985_v9 = vmul.f32 %v7417_v12, %v7417_v12  ;;  %v2986_v41 = vmul.f32 %v7420_v59, %v7420_v59 }
 0x83c   :  { %8871 = vst [vmem:[#allocation18_spill] sm:$0xff] %v7414_v30  ;;  %4345 = vperm.xlu0 %5292, %v8883_v11   ;;  %v2982_v18 = vmul.f32 %v7408_v38, %v7408_v38  ;;  %v2987_v21 = vmul.f32 %v7423_v19, %v7423_v19  ;;  %v2988_v30 = vmul.f32 %v7426_v27, %v7426_v27 }
 0x83d   :  { %8873 = vst [vmem:[#allocation21_spill] sm:$0xff] %v7417_v12  ;;  %v3052_v8 = vrot.slane %v2983_v2, 7  ;;  %v3054_v5 = vrot.slane %v2984_v26, 6  ;;  %v2989_v12 = vmul.f32 %v7429_v54, %v7429_v54  ;;  %v3056_v11 = vrot.slane %v2985_v9, 5  ;;  %v7462_v9 = vpop.xlane.xlu2 %2862 }
 0x83e   :  { %8875 = vst [vmem:[#allocation20_spill] sm:$0xff] %v7420_v59  ;;  %v3058_v59 = vrot.slane %v2986_v41, 4  ;;  %v3060_v38 = vrot.slane %v2987_v21, 3  ;;  %v3062_v26 = vrot.slane %v2988_v30, 2 }
 0x83f   :  { %8877 = vst [vmem:[#allocation12_spill] sm:$0xff] %v7423_v19  ;;  %v3053_v39 = vsel %vm528_vm2, %v3052_v8, %v2982_v18  ;;  %v4513_v19 = vmul.f32 %v7236_v61, %v8845_v10  ;;  %v3064_v16 = vrot.slane %v2989_v12, 1  ;;  %v8889_v12 = vld [vmem:[#allocation56_spill] sm:$0xff] }
 0x840   :  { %8879 = vst [vmem:[#allocation48_spill] sm:$0xff] %v7426_v27  ;;  %v3055_v25 = vsel %vm530_vm3, %v3054_v5, %v3053_v39 }
 0x841   :  { %8881 = vst [vmem:[#allocation45_spill] sm:$0xff] %v7429_v54  ;;  %v3057_v37 = vsel %vm532_vm4, %v3056_v11, %v3055_v25  ;;  %v8884_v54 = vld [vmem:[#allocation43_spill] sm:$0xff]  ;;  %v4622_v5 = vsel %vm620_vm10, %v4513_v19, -inf  ;;  %v7472_v19 = vpop.xlane.xlu0 %2865 }
 0x842   :  { %v3059_v2 = vsel %vm534_vm5, %v3058_v59, %v3057_v37  ;;  %v4512_v22 = vmul.f32 %v8884_v54, %v8846_v57  ;;  %8887 = vst [vmem:[#allocation16_spill] sm:$0xff] %v7462_v9  ;;  %v8888_v37 = vld [vmem:[#allocation57_spill] sm:$0xff]  ;;  %v4506_v59 = vmul.f32 %v8889_v12, %v8846_v57 }
 0x843   :  { %v3061_v27 = vsel %vm536_vm6, %v3060_v38, %v3059_v2  ;;  %v4606_v30 = vrot.slane %v8888_v37, 4  ;;  %8891 = vst [vmem:[#allocation19_spill] sm:$0xff] %v7472_v19 }
 0x844   :  { %v3063_v8 = vsel %vm8885_vm13, %v3062_v26, %v3061_v27  ;;  %v4621_v61 = vsel %vm620_vm10, %v4512_v22, -inf  ;;  %v8890_v27 = vld [vmem:[#allocation64_spill] sm:$0xff]  ;;  %v7476_v11 = vsel %vm620_vm10, %v4506_v59, -inf  ;;  %vm8936_vm13 = vmmov %vm8921_vm0 }
 0x845   :  { %v3065_v39 = vsel %vm8886_vm14, %v3064_v16, %v3063_v8  ;;  %v4623_v38 = vmax.f32 %v4621_v61, %v4622_v5  ;;  %v7469_v54 = vmax.f32 %v8888_v37, %v4606_v30  ;;  %v4615_v16 = vrot.slane %v8890_v27, 4 }
 0x846   :  { %v3101_v25 = vsel %vm620_vm10, %v3065_v39, 0.0 }
 0x847   :  { %3102 = vadd.xlane.f32.xlu2 %v3101_v25  ;;  %v4624_v41 = vrot.slane %v4623_v38, 4  ;;  %v7480_v2 = vmax.f32 %v8890_v27, %v4615_v16 }
 0x849   :  { %v7482_v26 = vmax.f32 %v4623_v38, %v4624_v41 }
 0x84a   :  { %v3369_v18 = vpop.xlane.xlu2 %3368 }
 0x84b   :  { %v3377_v21 = vmul.f32 %v3369_v18, %v7352_v50 }
 0x84d   :  { %v3391_v8 = vrot.slane %v3377_v21, 1  ;;  %v3392_v39 = vrot.slane %v3377_v21, 2  ;;  %v3393_v5 = vrot.slane %v3377_v21, 3  ;;  %v3394_v25 = vrot.slane %v3377_v21, 4 }
 0x84e   :  { %v3395_v61 = vrot.slane %v3377_v21, 5  ;;  %v3396_v37 = vrot.slane %v3377_v21, 6  ;;  %v3397_v30 = vrot.slane %v3377_v21, 7  ;;  %v7485_v12 = vsub.f32 %v7050_v32, %v3377_v21 }
 0x84f   :  { %v7488_v59 = vsub.f32 %v8868_v58, %v3391_v8  ;;  %v7491_v18 = vsub.f32 %v8870_v40, %v3392_v39  ;;  %v7494_v27 = vsub.f32 %v8872_v15, %v3393_v5  ;;  %v7497_v38 = vsub.f32 %v8874_v35, %v3394_v25 }
 0x850   :  { %8892 = vst [vmem:[#allocation24_spill] sm:$0xff] %v7485_v12  ;;  %v7500_v41 = vsub.f32 %v8876_v4, %v3395_v61  ;;  %v7503_v22 = vsub.f32 %v8878_v62, %v3396_v37  ;;  %v7506_v32 = vsub.f32 %v8880_v31, %v3397_v30  ;;  %v3484_v58 = vmul.f32 %v7485_v12, %v7485_v12 }
 0x851   :  { %8893 = vst [vmem:[#allocation17_spill] sm:$0xff] %v7488_v59  ;;  %v3485_v15 = vmul.f32 %v7488_v59, %v7488_v59  ;;  %v3486_v35 = vmul.f32 %v7491_v18, %v7491_v18  ;;  %v3487_v4 = vmul.f32 %v7494_v27, %v7494_v27  ;;  %v3488_v62 = vmul.f32 %v7497_v38, %v7497_v38 }
 0x852   :  { %8894 = vst [vmem:[#allocation65_spill] sm:$0xff] %v7491_v18  ;;  %v3366_v16 = vpop.xlane.xlu0 %3365  ;;  %v3489_v31 = vmul.f32 %v7500_v41, %v7500_v41  ;;  %v3490_v21 = vmul.f32 %v7503_v22, %v7503_v22  ;;  %v3491_v8 = vmul.f32 %v7506_v32, %v7506_v32 }
 0x853   :  { %8895 = vst [vmem:[#allocation22_spill] sm:$0xff] %v7494_v27  ;;  %v3376_v40 = vmul.f32 %v3366_v16, %v7352_v50  ;;  %v3554_v39 = vrot.slane %v3485_v15, 7  ;;  %v3556_v5 = vrot.slane %v3486_v35, 6  ;;  %v3558_v25 = vrot.slane %v3487_v4, 5 }
 0x854   :  { %8896 = vst [vmem:[#allocation15_spill] sm:$0xff] %v7497_v38  ;;  %v3560_v37 = vrot.slane %v3488_v62, 4  ;;  %v3562_v30 = vrot.slane %v3489_v31, 3  ;;  %v3564_v16 = vrot.slane %v3490_v21, 2  ;;  %v3566_v27 = vrot.slane %v3491_v8, 1 }
 0x855   :  { %8897 = vst [vmem:[#allocation29_spill] sm:$0xff] %v7500_v41  ;;  %v3384_v61 = vrot.slane %v3376_v40, 1  ;;  %v3555_v18 = vsel %vm528_vm2, %v3554_v39, %v3484_v58  ;;  %v3385_v38 = vrot.slane %v3376_v40, 2  ;;  %v3386_v59 = vrot.slane %v3376_v40, 3 }
 0x856   :  { %8898 = vst [vmem:[#allocation72_spill] sm:$0xff] %v7503_v22  ;;  %v3387_v12 = vrot.slane %v3376_v40, 4  ;;  %v3557_v41 = vsel %vm530_vm3, %v3556_v5, %v3555_v18  ;;  %v3388_v19 = vrot.slane %v3376_v40, 5  ;;  %v3389_v22 = vrot.slane %v3376_v40, 6 }
 0x857   :  { %8899 = vst [vmem:[#allocation73_spill] sm:$0xff] %v7506_v32  ;;  %v3390_v9 = vrot.slane %v3376_v40, 7  ;;  %v3559_v32 = vsel %vm532_vm4, %v3558_v25, %v3557_v41  ;;  %v7529_v15 = vsub.f32 %v7087_v47, %v3376_v40  ;;  %v7532_v35 = vsub.f32 %v7059_v28, %v3384_v61 }
 0x858   :  { %v7535_v4 = vsub.f32 %v7068_v43, %v3385_v38  ;;  %v3561_v58 = vsel %vm534_vm5, %v3560_v37, %v3559_v32  ;;  %v7539_v62 = vsub.f32 %v7078_v23, %v3386_v59  ;;  %v7542_v18 = vsub.f32 %v7084_v0, %v3387_v12 }
 0x859   :  { %8900 = vst [vmem:[#allocation59_spill] sm:$0xff] %v7532_v35  ;;  %v7545_v31 = vsub.f32 %v7112_v53, %v3388_v19  ;;  %v3563_v47 = vsel %vm536_vm6, %v3562_v30, %v3561_v58  ;;  %v7549_v41 = vsub.f32 %v7127_v44, %v3389_v22  ;;  %v7552_v28 = vsub.f32 %v7147_v48, %v3390_v9 }
 0x85a   :  { %8901 = vst [vmem:[#allocation61_spill] sm:$0xff] %v7535_v4  ;;  %v3476_v43 = vmul.f32 %v7529_v15, %v7529_v15  ;;  %v3565_v23 = vsel %vm8907_vm7, %v3564_v16, %v3563_v47  ;;  %v3477_v0 = vmul.f32 %v7532_v35, %v7532_v35  ;;  %v3478_v53 = vmul.f32 %v7535_v4, %v7535_v4 }
 0x85b   :  { %8902 = vst [vmem:[#allocation62_spill] sm:$0xff] %v7539_v62  ;;  %v3479_v19 = vmul.f32 %v7539_v62, %v7539_v62  ;;  %v3567_v48 = vsel %vm8844_vm8, %v3566_v27, %v3565_v23  ;;  %v3480_v9 = vmul.f32 %v7542_v18, %v7542_v18  ;;  %v3481_v22 = vmul.f32 %v7545_v31, %v7545_v31  ;;  %v7577_v27 = vld [vmem:[%s8377_s1 + $0x18] sm:$0xff] }
 0x85c   :  { %8903 = vst [vmem:[#allocation78_spill] sm:$0xff] %v7542_v18  ;;  %3598 = vrot.lane.b32.xlu1 %v3567_v48, %s5383_s23  ;;  %v3482_v12 = vmul.f32 %v7549_v41, %v7549_v41  ;;  %v3483_v59 = vmul.f32 %v7552_v28, %v7552_v28  ;;  %v3540_v32 = vrot.slane %v3477_v0, 7  ;;  %v3542_v40 = vrot.slane %v3478_v53, 6 }
 0x85d   :  { %8904 = vst [vmem:[#allocation63_spill] sm:$0xff] %v7545_v31  ;;  %v3544_v21 = vrot.slane %v3479_v19, 5  ;;  %v3546_v8 = vrot.slane %v3480_v9, 4  ;;  %v3548_v39 = vrot.slane %v3481_v22, 3  ;;  %v8531_v5 = vperm.slane %v7577_v27, 6 }
 0x85e   :  { %8905 = vst [vmem:[#allocation79_spill] sm:$0xff] %v7549_v41  ;;  %v3541_v25 = vsel %vm528_vm2, %v3540_v32, %v3476_v43  ;;  %v3550_v61 = vrot.slane %v3482_v12, 2  ;;  %v3552_v37 = vrot.slane %v3483_v59, 1 }
 0x85f   :  { %8906 = vst [vmem:[#allocation77_spill] sm:$0xff] %v7552_v28  ;;  %v3372_v38 = vpop.xlane.xlu1 %3371  ;;  %v3543_v16 = vsel %vm530_vm3, %v3542_v40, %v3541_v25 }
 0x860   :  { %v3378_v44 = vmul.f32 %v3372_v38, %v7352_v50  ;;  %v3545_v23 = vsel %vm532_vm4, %v3544_v21, %v3543_v16 }
 0x861   :  { %v3547_v48 = vsel %vm534_vm5, %v3546_v8, %v3545_v23 }
 0x862   :  { %v3398_v30 = vrot.slane %v3378_v44, 1  ;;  %v3399_v58 = vrot.slane %v3378_v44, 2  ;;  %v3400_v47 = vrot.slane %v3378_v44, 3  ;;  %v3401_v38 = vrot.slane %v3378_v44, 4 }
 0x863   :  { %v3402_v0 = vrot.slane %v3378_v44, 5  ;;  %v3403_v53 = vrot.slane %v3378_v44, 6  ;;  %v3404_v19 = vrot.slane %v3378_v44, 7  ;;  %v7585_v9 = vsub.f32 %v7217_v20, %v3378_v44 }
 0x864   :  { %v7588_v43 = vsub.f32 %v7209_v14, %v3398_v30  ;;  %v7591_v22 = vsub.f32 %v7221_v51, %v3399_v58  ;;  %v3549_v12 = vsel %vm536_vm6, %v3548_v39, %v3547_v48  ;;  %v7595_v59 = vsub.f32 %v7232_v42, %v3400_v47  ;;  %4469 = vperm.xlu1 %5294, %v8531_v5  }
 0x865   :  { %8908 = vst [vmem:[#allocation36_spill] sm:$0xff] %v7585_v9  ;;  %v7598_v32 = vsub.f32 %v7242_v45, %v3401_v38  ;;  %v7601_v40 = vsub.f32 %v7268_v17, %v3402_v0  ;;  %v4617_v44 = vrot.slane %v7480_v2, 2  ;;  %v3551_v21 = vsel %vm8914_vm15, %v3550_v61, %v3549_v12  ;;  %v4398_v8 = vpop.permute.xlu0 %4397 }
 0x866   :  { %8909 = vst [vmem:[#allocation39_spill] sm:$0xff] %v7588_v43  ;;  %v7606_v25 = vsub.f32 %v7259_v24, %v3403_v53  ;;  %v7609_v30 = vsub.f32 %v7265_v49, %v3404_v19  ;;  %v3553_v39 = vsel %vm8917_vm9, %v3552_v37, %v3551_v21  ;;  %v4507_v16 = vmul.f32 %v4398_v8, %v8845_v10 }
 0x867   :  { %8910 = vst [vmem:[#allocation66_spill] sm:$0xff] %v7591_v22  ;;  %v3493_v58 = vmul.f32 %v7588_v43, %v7588_v43  ;;  %v3494_v61 = vmul.f32 %v7591_v22, %v7591_v22  ;;  %v4626_v47 = vrot.slane %v7482_v26, 2  ;;  %3596 = vrot.lane.b32.xlu2 %v3553_v39, %s5383_s23  ;;  %v3492_v38 = vmul.f32 %v7585_v9, %v7585_v9  ;;  %v8952_v9 = vld [vmem:[#allocation12_spill] sm:$0xff] }
 0x868   :  { %8911 = vst [vmem:[#allocation67_spill] sm:$0xff] %v7595_v59  ;;  %v3495_v37 = vmul.f32 %v7595_v59, %v7595_v59  ;;  %v3496_v23 = vmul.f32 %v7598_v32, %v7598_v32  ;;  %v4595_v0 = vsel %vm620_vm10, %v4507_v16, -inf  ;;  %v3497_v53 = vmul.f32 %v7601_v40, %v7601_v40 }
 0x869   :  { %8912 = vst [vmem:[#allocation80_spill] sm:$0xff] %v7598_v32  ;;  %v3568_v19 = vrot.slane %v3493_v58, 7  ;;  %v3570_v48 = vrot.slane %v3494_v61, 6  ;;  %v8918_v12 = vrot.slane %v7469_v54, 2  ;;  %v4618_v8 = vmax.f32 %v7480_v2, %v4617_v44  ;;  %v7643_v58 = vld [vmem:[%s8377_s1 + $0x10] sm:$0xff] }
 0x86a   :  { %8913 = vst [vmem:[#allocation68_spill] sm:$0xff] %v7601_v40  ;;  %v4596_v39 = vmax.f32 %v7476_v11, %v4595_v0  ;;  %v3498_v5 = vmul.f32 %v7606_v25, %v7606_v25  ;;  %v3499_v32 = vmul.f32 %v7609_v30, %v7609_v30  ;;  %v3572_v28 = vrot.slane %v3495_v37, 5 }
 0x86b   :  { %8915 = vst [vmem:[#allocation69_spill] sm:$0xff] %v7606_v25  ;;  %v4609_v21 = vmax.f32 %v7469_v54, %v8918_v12  ;;  %v3569_v16 = vsel %vm528_vm2, %v3568_v19, %v3492_v38  ;;  %v8538_v54 = vperm.slane %v7643_v58, 7  ;;  %v4627_v2 = vmax.f32 %v7482_v26, %v4626_v47 }
 0x86c   :  { %8916 = vst [vmem:[#allocation60_spill] sm:$0xff] %v7609_v30  ;;  %v4597_v44 = vrot.slane %v4596_v39, 4  ;;  %v3571_v11 = vsel %vm530_vm3, %v3570_v48, %v3569_v16  ;;  %v3574_v61 = vrot.slane %v3496_v23, 4  ;;  %v3576_v12 = vrot.slane %v3497_v53, 3 }
 0x86d   :  { %v3573_v0 = vsel %vm532_vm4, %v3572_v28, %v3571_v11  ;;  %v4610_v30 = vrot.slane %v4609_v21, 1  ;;  %v3578_v37 = vrot.slane %v3498_v5, 2  ;;  %v4619_v19 = vrot.slane %v4618_v8, 1  ;;  %4378 = vperm.xlu1 %5294, %v8538_v54  }
 0x86e   :  { %v4598_v25 = vmax.f32 %v4596_v39, %v4597_v44  ;;  %v3575_v38 = vsel %vm534_vm5, %v3574_v61, %v3573_v0  ;;  %v3580_v41 = vrot.slane %v3499_v32, 1  ;;  %v4628_v26 = vrot.slane %v4627_v2, 1  ;;  %v8922_v0 = vld [vmem:[#allocation6_spill] sm:$0xff] }
 0x86f   :  { %v3577_v40 = vsel %vm536_vm6, %v3576_v12, %v3575_v38  ;;  %v8919_v48 = vperm.slane %v8882_v6, 6  ;;  %v4611_v53 = vmax.f32 %v4609_v21, %v4610_v30  ;;  %v4620_v5 = vmax.f32 %v4618_v8, %v4619_v19  ;;  %v8925_v19 = vld [vmem:[#allocation5_spill] sm:$0xff] }
 0x870   :  { %v4599_v47 = vrot.slane %v4598_v25, 2  ;;  %v3579_v28 = vsel %vm8920_vm1, %v3578_v37, %v3577_v40  ;;  %v4629_v16 = vmax.f32 %v4627_v2, %v4628_v26  ;;  %v4517_v26 = vmul.f32 %v7340_v46, %v8845_v10 }
 0x871   :  { %4371 = vperm.xlu2 %5293, %v8919_v48   ;;  %v3581_v23 = vsel %vm8921_vm0, %v3580_v41, %v3579_v28  ;;  %v4679_v32 = vpack.c.bf16 %v4611_v53, %v4611_v53  ;;  %v4680_v61 = vpack.c.bf16 %v4620_v5, %v4620_v5  ;;  %v8923_v48 = vperm.slane %v7577_v27, 6  ;;  %vm8956_vm0 = vmmov %vm8935_vm12 }
 0x872   :  { %v4600_v39 = vmax.f32 %v4598_v25, %v4599_v47  ;;  %3600 = vrot.lane.b32.xlu0 %v3581_v23, %s5383_s23  ;;  %v4681_v12 = vpack.c.bf16 %v4629_v16, %v4629_v16  ;;  %v8924_v41 = vperm.slane %v8882_v6, 5  ;;  %v4516_v47 = vmul.f32 %v7344_v52, %v8846_v57 }
 0x873   :  { %v4711_v40 = vunpack.c.l.b16 %v4679_v32  ;;  %v4712_v25 = vunpack.c.l.b16 %v4680_v61  ;;  %v4640_v6 = vsel %vm620_vm10, %v4517_v26, -inf }
 0x874   :  { %v4601_v44 = vrot.slane %v4600_v39, 1  ;;  %v4713_v30 = vunpack.c.l.b16 %v4681_v12  ;;  %v4639_v23 = vsel %vm620_vm10, %v4516_v47, -inf }
 0x875   :  { %5296 = vset.pattern.permute.xlu1 %v8922_v0 }
 0x876   :  { %v4602_v11 = vmax.f32 %v4600_v39, %v4601_v44  ;;  %v4641_v39 = vmax.f32 %v4639_v23, %v4640_v6 }
 0x878   :  { %v4678_v38 = vpack.c.bf16 %v4602_v11, %v4602_v11 }
 0x879   :  { %4475 = vperm.xlu2 %5293, %v8923_v48  }
 0x87a   :  { %v4710_v37 = vunpack.c.l.b16 %v4678_v38  ;;  %4358 = vperm.xlu0 %5292, %v8924_v41   ;;  %v4642_v41 = vrot.slane %v4641_v39, 4 }
 0x87c   :  { %v4725_v21 = vsel %vm528_vm2, %v4711_v40, %v4710_v37  ;;  %v4633_v37 = vrot.slane %v7313_v36, 4 }
 0x87d   :  { %v4726_v8 = vsel %vm530_vm3, %v4712_v25, %v4725_v21 }
 0x87e   :  { %v7666_v2 = vsel %vm532_vm4, %v4713_v30, %v4726_v8 }
 0x881   :  { %5295 = vset.pattern.permute.xlu2 %v8925_v19 }
 0x886   :  { %v3100_v61 = vpop.xlane.xlu1 %3099 }
 0x887   :  { %v3110_v30 = vmul.f32 %v3100_v61, %v7352_v50 }
 0x890   :  { %v3375_v28 = vpop.xlane.xlu0 %3374 }
 0x891   :  { %v3379_v53 = vmul.f32 %v3375_v28, %v7352_v50 }
 0x893   :  { %v3405_v5 = vrot.slane %v3379_v53, 1  ;;  %v3406_v16 = vrot.slane %v3379_v53, 2  ;;  %v3407_v44 = vrot.slane %v3379_v53, 3  ;;  %v3408_v32 = vrot.slane %v3379_v53, 4 }
 0x894   :  { %v3409_v11 = vrot.slane %v3379_v53, 5  ;;  %v3410_v0 = vrot.slane %v3379_v53, 6  ;;  %v7677_v46 = vsub.f32 %v7256_v13, %v3379_v53  ;;  %v3411_v38 = vrot.slane %v3379_v53, 7 }
 0x895   :  { %v7680_v52 = vsub.f32 %v7228_v55, %v3405_v5  ;;  %v7683_v12 = vsub.f32 %v7245_v7, %v3406_v16  ;;  %v7686_v48 = vsub.f32 %v7251_v3, %v3407_v44  ;;  %v7689_v40 = vsub.f32 %v7279_v1, %v3408_v32 }
 0x896   :  { %8926 = vst [vmem:[#allocation53_spill] sm:$0xff] %v7677_v46  ;;  %v7696_v21 = vsub.f32 %v7289_v29, %v3409_v11  ;;  %v7703_v26 = vsub.f32 %v7301_v60, %v3410_v0  ;;  %v3500_v47 = vmul.f32 %v7677_v46, %v7677_v46  ;;  %v7710_v23 = vsub.f32 %v7296_v33, %v3411_v38 }
 0x897   :  { %8927 = vst [vmem:[#allocation54_spill] sm:$0xff] %v7680_v52  ;;  %v3501_v25 = vmul.f32 %v7680_v52, %v7680_v52  ;;  %v3502_v8 = vmul.f32 %v7683_v12, %v7683_v12  ;;  %v3503_v19 = vmul.f32 %v7686_v48, %v7686_v48  ;;  %v3504_v6 = vmul.f32 %v7689_v40, %v7689_v40  ;;  %v8944_v52 = vld [vmem:[#allocation10_spill] sm:$0xff] }
 0x898   :  { %8928 = vst [vmem:[#allocation55_spill] sm:$0xff] %v7683_v12  ;;  %v4634_v44 = vmax.f32 %v7313_v36, %v4633_v37  ;;  %v7714_v32 = vadd.f32 1e-05, %v3110_v30  ;;  %v3505_v11 = vmul.f32 %v7696_v21, %v7696_v21  ;;  %v4643_v0 = vmax.f32 %v4641_v39, %v4642_v41 }
 0x899   :  { %8929 = vst [vmem:[#allocation51_spill] sm:$0xff] %v7686_v48  ;;  %v3582_v28 = vrot.slane %v3501_v25, 7  ;;  %v3584_v53 = vrot.slane %v3502_v8, 6  ;;  %v3586_v16 = vrot.slane %v3503_v19, 5  ;;  %v3506_v25 = vmul.f32 %v7703_v26, %v7703_v26 }
 0x89a   :  { %8930 = vst [vmem:[#allocation58_spill] sm:$0xff] %v7689_v40  ;;  %v3588_v54 = vrot.slane %v3504_v6, 4  ;;  %v3507_v8 = vmul.f32 %v7710_v23, %v7710_v23  ;;  %v4635_v36 = vrot.slane %v4634_v44, 2  ;;  %5315 = vrsqrt.f32 %v7714_v32 }
 0x89b   :  { %8931 = vst [vmem:[#allocation33_spill] sm:$0xff] %v7696_v21  ;;  %v3583_v5 = vsel %vm528_vm2, %v3582_v28, %v3500_v47  ;;  %v3590_v37 = vrot.slane %v3505_v11, 3  ;;  %v4644_v30 = vrot.slane %v4643_v0, 2  ;;  %v3592_v47 = vrot.slane %v3506_v25, 2  ;;  %v8934_v28 = vld [vmem:[#allocation38_spill] sm:$0xff] }
 0x89c   :  { %8932 = vst [vmem:[#allocation31_spill] sm:$0xff] %v7703_v26  ;;  %v3585_v61 = vsel %vm530_vm3, %v3584_v53, %v3583_v5  ;;  %v4496_v39 = vmul.f32 %v8934_v28, %v8846_v57  ;;  %v3594_v53 = vrot.slane %v3507_v8, 1  ;;  %vm3124_vm7 = vweird.f32 %v7714_v32 }
 0x89d   :  { %8933 = vst [vmem:[#allocation30_spill] sm:$0xff] %v7710_v23  ;;  %v3587_v38 = vsel %vm532_vm4, %v3586_v16, %v3585_v61  ;;  %v4636_v16 = vmax.f32 %v4634_v44, %v4635_v36  ;;  %v4498_v44 = vmul.f32 %v7270_v63, %v8846_v57 }
 0x89e   :  { %v3589_v19 = vsel %vm534_vm5, %v3588_v54, %v3587_v38  ;;  %v4645_v38 = vmax.f32 %v4643_v0, %v4644_v30  ;;  %v4549_v25 = vsel %vm620_vm10, %v4496_v39, -inf }
 0x89f   :  { %v3591_v41 = vsel %vm536_vm6, %v3590_v37, %v3589_v19  ;;  %v4637_v26 = vrot.slane %v4636_v16, 1  ;;  %v4558_v39 = vsel %vm620_vm10, %v4498_v44, -inf }
 0x8a0   :  { %v3593_v5 = vsel %vm8935_vm12, %v3592_v47, %v3591_v41  ;;  %v5316_v11 = vpop.eup %5315  ;;  %v4646_v19 = vrot.slane %v4645_v38, 1  ;;  %vm8958_vm12 = vmmov %vm8956_vm0 }
 0x8a1   :  { %v3595_v61 = vsel %vm8936_vm13, %v3594_v53, %v3593_v5  ;;  %v3119_v8 = vmul.f32 %v5316_v11, %v7714_v32  ;;  %v4638_v41 = vmax.f32 %v4636_v16, %v4637_v26  ;;  %vm3125_vm14 = vweird.f32 %v5316_v11  ;;  %vm8959_vm13 = vmmov %vm8956_vm0 }
 0x8a2   :  { %3602 = vrot.lane.b32.xlu2 %v3595_v61, %s5383_s23  ;;  %v4647_v30 = vmax.f32 %v4645_v38, %v4646_v19  ;;  %vm3126_vm8 = vmor %vm3124_vm7, %vm3125_vm14  ;;  %vm8960_vm14 = vcmask 1047559  }
 0x8a3   :  { %v4333_v6 = vpop.permute.xlu0 %4332  ;;  %v3120_v53 = vmul.f32 %v5316_v11, %v3119_v8  ;;  %vm8961_vm7 = vmmov %vm8960_vm14 }
 0x8a4   :  { %v4497_v54 = vmul.f32 %v4333_v6, %v8845_v10 }
 0x8a5   :  { %v3121_v21 = vmul.f32 0.5, %v3120_v53 }
 0x8a6   :  { %v4550_v23 = vsel %vm620_vm10, %v4497_v54, -inf  ;;  %v4682_v54 = vpack.c.bf16 %v4638_v41, %v4638_v41 }
 0x8a7   :  { %v4551_v28 = vmax.f32 %v4549_v25, %v4550_v23  ;;  %v4683_v25 = vpack.c.bf16 %v4647_v30, %v4647_v30  ;;  %v3122_v16 = vsub.f32 1.5, %v3121_v21 }
 0x8a9   :  { %v4552_v37 = vrot.slane %v4551_v28, 4  ;;  %v4715_v26 = vunpack.c.l.b16 %v4683_v25  ;;  %v3123_v30 = vmul.f32 %v5316_v11, %v3122_v16 }
 0x8ab   :  { %v4553_v36 = vmax.f32 %v4551_v28, %v4552_v37  ;;  %v4714_v37 = vunpack.c.l.b16 %v4682_v54 }
 0x8ad   :  { %v4554_v5 = vrot.slane %v4553_v36, 2  ;;  %v4728_v19 = vsel %vm534_vm5, %v4714_v37, %v7666_v2  ;;  %v7750_v2 = vsel %vm3126_vm8, %v5316_v11, %v3123_v30  ;;  %vm8963_vm8 = vmmov %vm8956_vm0 }
 0x8ae   :  { %v4346_v47 = vpop.permute.xlu0 %4345  ;;  %v3222_v32 = vmul.f32 %v7750_v2, %v7356_v34 }
 0x8af   :  { %v4499_v0 = vmul.f32 %v4346_v47, %v8845_v10  ;;  %v4555_v6 = vmax.f32 %v4553_v36, %v4554_v5  ;;  %v7744_v36 = vsel %vm536_vm6, %v4715_v26, %v4728_v19 }
 0x8b1   :  { %v4559_v23 = vsel %vm620_vm10, %v4499_v0, -inf  ;;  %v4556_v40 = vrot.slane %v4555_v6, 1 }
 0x8b2   :  { %v4560_v61 = vmax.f32 %v4558_v39, %v4559_v23  ;;  %v3162_v23 = vrot.slane %v7750_v2, 1 }
 0x8b3   :  { %v4557_v63 = vmax.f32 %v4555_v6, %v4556_v40 }
 0x8b4   :  { %v4561_v48 = vrot.slane %v4560_v61, 4 }
 0x8b5   :  { %v4673_v47 = vpack.c.bf16 %v4557_v63, %v4557_v63 }
 0x8b6   :  { %v4562_v28 = vmax.f32 %v4560_v61, %v4561_v48 }
 0x8b7   :  { %v4705_v8 = vunpack.c.l.b16 %v4673_v47 }
 0x8b8   :  { %v4563_v38 = vrot.slane %v4562_v28, 2 }
 0x8b9   :  { %v4720_v48 = vsel %vm532_vm4, %v4705_v8, %v7350_v56  ;;  %v5341_v56 = vld [vmem:[%s8381_s5 + $0x8] sm:$0x7f] }
 0x8ba   :  { %v4564_v44 = vmax.f32 %v4562_v28, %v4563_v38  ;;  %v3103_v0 = vpop.xlane.xlu2 %3102  ;;  %v7759_v25 = vperm.slane %v5341_v56, 2  ;;  %v8938_v28 = vld [vmem:[#allocation74_spill] sm:$0xff]  ;;  %v7765_v16 = vperm.slane %v5341_v56, 3 }
 0x8bb   :  { %v3111_v41 = vmul.f32 %v3103_v0, %v7352_v50  ;;  %v3223_v37 = vmul.f32 %v3162_v23, %v8938_v28  ;;  %v8939_v38 = vld [vmem:[#allocation46_spill] sm:$0xff]  ;;  %v8940_v0 = vld [vmem:[#allocation11_spill] sm:$0xff]  ;;  %v3164_v23 = vrot.slane %v7750_v2, 3 }
 0x8bc   :  { %v4565_v40 = vrot.slane %v4564_v44, 1  ;;  %8937 = vst [vmem:[#allocation32_spill] sm:$0xff] %v7759_v25  ;;  %v3255_v47 = vmul.f32 %v7759_v25, %v3222_v32  ;;  %v4502_v19 = vmul.f32 %v8939_v38, %v8846_v57  ;;  %v4500_v34 = vmul.f32 %v8940_v0, %v8846_v57 }
 0x8bd   :  { %v3115_v21 = vadd.f32 1e-05, %v3111_v41 }
 0x8be   :  { %v4566_v53 = vmax.f32 %v4564_v44, %v4565_v40  ;;  %v3256_v44 = vmul.f32 %v7759_v25, %v3223_v37 }
 0x8bf   :  { %5317 = vrsqrt.f32 %v3115_v21  ;;  %vm3134_vm9 = vweird.f32 %v3115_v21 }
 0x8c0   :  { %v4674_v5 = vpack.c.bf16 %v4566_v53, %v4566_v53  ;;  %v4576_v53 = vsel %vm620_vm10, %v4502_v19, -inf  ;;  %v3289_v56 = vadd.f32 %v7765_v16, %v3256_v44  ;;  %v4891_v19 = vld [vmem:[#allocation2 + $0x68] sm:$0xff] }
 0x8c1   :  { %4236 = vmatpush.bf16.msra.mxu3 %v4891_v19 }
 0x8c2   :  { %v4706_v39 = vunpack.c.l.b16 %v4674_v5  ;;  %v3597_v61 = vpop.permute.xlu2 %3596  ;;  %v3163_v5 = vrot.slane %v7750_v2, 2 }
 0x8c3   :  { %v3608_v11 = vsel %vm620_vm10, %v3597_v61, 0.0  ;;  %v3165_v61 = vrot.slane %v7750_v2, 4 }
 0x8c4   :  { %v7754_v6 = vsel %vm534_vm5, %v4706_v39, %v4720_v48  ;;  %3609 = vadd.xlane.f32.xlu1 %v3608_v11  ;;  %v3288_v48 = vadd.f32 %v7765_v16, %v3255_v47  ;;  %v7782_v11 = vsel %vm620_vm10, %v4500_v34, -inf  ;;  %v8943_v34 = vld [vmem:[#allocation9_spill] sm:$0xff] }
 0x8c5   :  { %v5318_v54 = vpop.eup %5317  ;;  %v3225_v12 = vmul.f32 %v3164_v23, %v8943_v34  ;;  %v3226_v46 = vmul.f32 %v3165_v61, %v8944_v52  ;;  %v8947_v61 = vld [vmem:[#allocation18_spill] sm:$0xff] }
 0x8c6   :  { %v3129_v63 = vmul.f32 %v5318_v54, %v3115_v21  ;;  %vm3135_vm15 = vweird.f32 %v5318_v54  ;;  %v3168_v21 = vrot.slane %v7750_v2, 7  ;;  %v3320_v47 = vmax.f32 %v3288_v48, 0.0  ;;  %v8949_v34 = vld [vmem:[#allocation70_spill] sm:$0xff] }
 0x8c7   :  { %vm3136_vm1 = vmor %vm3134_vm9, %vm3135_vm15 }
 0x8c8   :  { %v3130_v26 = vmul.f32 %v5318_v54, %v3129_v63  ;;  %v3166_v63 = vrot.slane %v7750_v2, 5  ;;  %v7797_v22 = vpack.c.bf16 %v3320_v47, %v3320_v47  ;;  %vm8964_vm15 = vmmov %vm8961_vm7 }
 0x8c9   :  { %vm8971_vm9 = vmmov %vm8956_vm0 }
 0x8ca   :  { %v3131_v8 = vmul.f32 0.5, %v3130_v26  ;;  %v3167_v26 = vrot.slane %v7750_v2, 6 }
 0x8cb   :  { %v4372_v30 = vpop.permute.xlu2 %4371 }
 0x8cc   :  { %v3132_v41 = vsub.f32 1.5, %v3131_v8  ;;  %v4503_v40 = vmul.f32 %v4372_v30, %v8845_v10  ;;  %v8941_v8 = vld [vmem:[#allocation75_spill] sm:$0xff]  ;;  %v8942_v30 = vld [vmem:[#allocation49_spill] sm:$0xff] }
 0x8cd   :  { %v3224_v44 = vmul.f32 %v3163_v5, %v8941_v8  ;;  %v8946_v8 = vld [vmem:[#allocation76_spill] sm:$0xff] }
 0x8ce   :  { %v3133_v39 = vmul.f32 %v5318_v54, %v3132_v41  ;;  %v4577_v32 = vsel %vm620_vm10, %v4503_v40, -inf  ;;  %v3227_v59 = vmul.f32 %v3166_v63, %v8946_v8  ;;  %v8950_v63 = vld [vmem:[#allocation71_spill] sm:$0xff]  ;;  %v3258_v8 = vmul.f32 %v7759_v25, %v3225_v12 }
 0x8cf   :  { %v7785_v37 = vmax.f32 %v4576_v53, %v4577_v32  ;;  %v8945_v53 = vld [vmem:[#allocation13_spill] sm:$0xff]  ;;  %v3599_v32 = vpop.permute.xlu1 %3598  ;;  %v3257_v52 = vmul.f32 %v7759_v25, %v3224_v44  ;;  %v3229_v47 = vmul.f32 %v3168_v21, %v8950_v63 }
 0x8d0   :  { %v3137_v28 = vsel %vm3136_vm1, %v5318_v54, %v3133_v39  ;;  %v3321_v54 = vmax.f32 %v3289_v56, 0.0  ;;  %v3611_v5 = vsel %vm620_vm10, %v3599_v32, 0.0  ;;  %v3260_v12 = vmul.f32 %v7759_v25, %v3227_v59  ;;  %vm8972_vm1 = vmmov %vm8961_vm7 }
 0x8d1   :  { %v3169_v38 = vrot.slane %v3137_v28, 1  ;;  %v3170_v0 = vrot.slane %v3137_v28, 2  ;;  %v3171_v41 = vrot.slane %v3137_v28, 3  ;;  %v3230_v40 = vmul.f32 %v3137_v28, %v8942_v30  ;;  %3612 = vadd.xlane.f32.xlu2 %v3611_v5  ;;  %v8951_v5 = vld [vmem:[#allocation20_spill] sm:$0xff] }
 0x8d2   :  { %v3172_v31 = vrot.slane %v3137_v28, 4  ;;  %v3173_v2 = vrot.slane %v3137_v28, 5  ;;  %v3174_v30 = vrot.slane %v3137_v28, 6  ;;  %v3175_v23 = vrot.slane %v3137_v28, 7 }
 0x8d3   :  { %v3231_v39 = vmul.f32 %v3169_v38, %v8945_v53  ;;  %v3263_v48 = vmul.f32 %v7759_v25, %v3230_v40  ;;  %v4476_v18 = vpop.permute.xlu2 %4475  ;;  %v3232_v56 = vmul.f32 %v3170_v0, %v8947_v61  ;;  %v8948_v38 = vld [vmem:[#allocation21_spill] sm:$0xff]  ;;  %v3228_v53 = vmul.f32 %v3167_v26, %v8949_v34  ;;  %v8953_v61 = vld [vmem:[#allocation48_spill] sm:$0xff] }
 0x8d4   :  { %v3233_v19 = vmul.f32 %v3171_v41, %v8948_v38  ;;  %v4519_v32 = vmul.f32 %v4476_v18, %v8845_v10  ;;  %v7808_v28 = vpack.c.bf16 %v3321_v54, %v3321_v54  ;;  %v3234_v44 = vmul.f32 %v3172_v31, %v8951_v5  ;;  %v8954_v38 = vld [vmem:[#allocation45_spill] sm:$0xff] }
 0x8d5   :  { %v3264_v40 = vmul.f32 %v7759_v25, %v3231_v39  ;;  %v3296_v43 = vadd.f32 %v7765_v16, %v3263_v48  ;;  %v3235_v0 = vmul.f32 %v3173_v2, %v8952_v9  ;;  %v3236_v26 = vmul.f32 %v3174_v30, %v8953_v61 }
 0x8d6   :  { %v3237_v39 = vmul.f32 %v3175_v23, %v8954_v38  ;;  %v3259_v48 = vmul.f32 %v7759_v25, %v3226_v46  ;;  %v3265_v18 = vmul.f32 %v7759_v25, %v3232_v56  ;;  %v3266_v21 = vmul.f32 %v7759_v25, %v3233_v19 }
 0x8d7   :  { %v3261_v54 = vmul.f32 %v7759_v25, %v3228_v53  ;;  %v3297_v31 = vadd.f32 %v7765_v16, %v3264_v40  ;;  %v3328_v34 = vmax.f32 %v3296_v43, 0.0  ;;  %v4649_v9 = vsel %vm620_vm10, %v4519_v32, -inf  ;;  %v4470_v2 = vpop.permute.xlu1 %4469 }
 0x8d8   :  { %v3262_v30 = vmul.f32 %v7759_v25, %v3229_v47  ;;  %v4518_v23 = vmul.f32 %v4470_v2, %v8846_v57  ;;  %v3267_v46 = vmul.f32 %v7759_v25, %v3234_v44  ;;  %v3268_v56 = vmul.f32 %v7759_v25, %v3235_v0 }
 0x8d9   :  { %v3290_v19 = vadd.f32 %v7765_v16, %v3257_v52  ;;  %v3269_v59 = vmul.f32 %v7759_v25, %v3236_v26  ;;  %v3270_v53 = vmul.f32 %v7759_v25, %v3237_v39  ;;  %v3291_v40 = vadd.f32 %v7765_v16, %v3258_v8 }
 0x8da   :  { %v3292_v43 = vadd.f32 %v7765_v16, %v3259_v48  ;;  %v4648_v32 = vsel %vm620_vm10, %v4518_v23, -inf  ;;  %v3293_v63 = vadd.f32 %v7765_v16, %v3260_v12  ;;  %v3294_v47 = vadd.f32 %v7765_v16, %v3261_v54 }
 0x8db   :  { %v3298_v5 = vadd.f32 %v7765_v16, %v3265_v18  ;;  %v3329_v44 = vmax.f32 %v3297_v31, 0.0  ;;  %v4650_v0 = vmax.f32 %v4648_v32, %v4649_v9  ;;  %v3295_v52 = vadd.f32 %v7765_v16, %v3262_v30 }
 0x8dc   :  { %v3299_v61 = vadd.f32 %v7765_v16, %v3266_v21  ;;  %v7837_v26 = vpack.c.bf16 %v3328_v34, %v3328_v34  ;;  %v3300_v8 = vadd.f32 %v7765_v16, %v3267_v46  ;;  %v3301_v38 = vadd.f32 %v7765_v16, %v3268_v56 }
 0x8dd   :  { %v3322_v39 = vmax.f32 %v3290_v19, 0.0  ;;  %v4651_v48 = vrot.slane %v4650_v0, 4  ;;  %v3302_v12 = vadd.f32 %v7765_v16, %v3269_v59  ;;  %v3303_v54 = vadd.f32 %v7765_v16, %v3270_v53 }
 0x8de   :  { %v3323_v2 = vmax.f32 %v3291_v40, 0.0  ;;  %v3324_v18 = vmax.f32 %v3292_v43, 0.0  ;;  %v3325_v31 = vmax.f32 %v3293_v63, 0.0  ;;  %v3326_v9 = vmax.f32 %v3294_v47, 0.0 }
 0x8df   :  { %v3330_v23 = vmax.f32 %v3298_v5, 0.0  ;;  %v3881_v30 = vpack.c.bf16 %v3329_v44, %v3329_v44  ;;  %v4652_v32 = vmax.f32 %v4650_v0, %v4651_v48  ;;  %v3327_v21 = vmax.f32 %v3295_v52, 0.0 }
 0x8e0   :  { %v3331_v34 = vmax.f32 %v3299_v61, 0.0  ;;  %v4135_v41 = vunpack.c.l.b16 %v7837_v26  ;;  %v3332_v46 = vmax.f32 %v3300_v8, 0.0  ;;  %v3333_v25 = vmax.f32 %v3301_v38, 0.0 }
 0x8e1   :  { %v3874_v56 = vpack.c.bf16 %v3322_v39, %v3322_v39  ;;  %v4653_v19 = vrot.slane %v4652_v32, 2  ;;  %v3334_v62 = vmax.f32 %v3302_v12, 0.0  ;;  %v3335_v4 = vmax.f32 %v3303_v54, 0.0 }
 0x8e2   :  { %v3875_v59 = vpack.c.bf16 %v3323_v2, %v3323_v2  ;;  %v3876_v53 = vpack.c.bf16 %v3324_v18, %v3324_v18  ;;  %v3877_v40 = vpack.c.bf16 %v3325_v31, %v3325_v31  ;;  %v3878_v43 = vpack.c.bf16 %v3326_v9, %v3326_v9 }
 0x8e3   :  { %v3882_v63 = vpack.c.bf16 %v3330_v23, %v3330_v23  ;;  %v4654_v47 = vmax.f32 %v4652_v32, %v4653_v19  ;;  %v3879_v44 = vpack.c.bf16 %v3327_v21, %v3327_v21  ;;  %v3883_v0 = vpack.c.bf16 %v3331_v34, %v3331_v34 }
 0x8e4   :  { %v3601_v35 = vpop.permute.xlu0 %3600  ;;  %v3884_v52 = vpack.c.bf16 %v3332_v46, %v3332_v46  ;;  %v3885_v61 = vpack.c.bf16 %v3333_v25, %v3333_v25  ;;  %v4128_v26 = vunpack.c.l.b16 %v7808_v28  ;;  %v4129_v8 = vunpack.c.l.b16 %v3874_v56 }
 0x8e5   :  { %v3614_v5 = vsel %vm620_vm10, %v3601_v35, 0.0  ;;  %v4655_v38 = vrot.slane %v4654_v47, 1  ;;  %v3886_v39 = vpack.c.bf16 %v3334_v62, %v3334_v62  ;;  %v3887_v48 = vpack.c.bf16 %v3335_v4, %v3335_v4 }
 0x8e6   :  { %3615 = vadd.xlane.f32.xlu0 %v3614_v5  ;;  %v4130_v12 = vunpack.c.l.b16 %v3875_v59  ;;  %v4131_v54 = vunpack.c.l.b16 %v3876_v53  ;;  %v4132_v2 = vunpack.c.l.b16 %v3877_v40  ;;  %v4136_v18 = vunpack.c.l.b16 %v3881_v30 }
 0x8e7   :  { %v4137_v31 = vunpack.c.l.b16 %v3882_v63  ;;  %v4656_v9 = vmax.f32 %v4654_v47, %v4655_v38  ;;  %v4133_v23 = vunpack.c.l.b16 %v3878_v43  ;;  %v4134_v32 = vunpack.c.l.b16 %v3879_v44 }
 0x8e8   :  { %v4138_v35 = vunpack.c.l.b16 %v3883_v0  ;;  %v4139_v21 = vunpack.c.l.b16 %v3884_v52  ;;  %v4140_v34 = vunpack.c.l.b16 %v3885_v61  ;;  %v4159_v19 = vrot.slane %v4128_v26, 7 }
 0x8e9   :  { %v4161_v46 = vrot.slane %v4129_v8, 6  ;;  %v4684_v25 = vpack.c.bf16 %v4656_v9, %v4656_v9  ;;  %v4141_v5 = vunpack.c.l.b16 %v3886_v39  ;;  %v4142_v28 = vunpack.c.l.b16 %v3887_v48 }
 0x8ea   :  { %v4163_v56 = vrot.slane %v4130_v12, 5  ;;  %v8955_v62 = vunpack.c.l.b16 %v7797_v22  ;;  %v4165_v59 = vrot.slane %v4131_v54, 4  ;;  %v4173_v53 = vrot.slane %v4136_v18, 7 }
 0x8eb   :  { %v4175_v30 = vrot.slane %v4137_v31, 6  ;;  %v4716_v40 = vunpack.c.l.b16 %v4684_v25  ;;  %v4167_v63 = vrot.slane %v4132_v2, 3  ;;  %v4169_v47 = vrot.slane %v4133_v23, 2 }
 0x8ec   :  { %v4160_v4 = vsel %vm528_vm2, %v4159_v19, %v8955_v62  ;;  %v4359_v44 = vpop.permute.xlu0 %4358  ;;  %v4174_v52 = vsel %vm528_vm2, %v4173_v53, %v4135_v41  ;;  %v4177_v61 = vrot.slane %v4138_v35, 5  ;;  %v4179_v26 = vrot.slane %v4139_v21, 4  ;;  %v8957_v41 = vld [vmem:[#allocation16_spill] sm:$0xff] }
 0x8ed   :  { %v4162_v43 = vsel %vm530_vm3, %v4161_v46, %v4160_v4  ;;  %v7854_v22 = vsel %vm8956_vm0, %v4716_v40, %v7744_v36  ;;  %v4176_v38 = vsel %vm530_vm3, %v4175_v30, %v4174_v52  ;;  %v4181_v39 = vrot.slane %v4140_v34, 3 }
 0x8ee   :  { %v4164_v0 = vsel %vm532_vm4, %v4163_v56, %v4162_v43  ;;  %v4178_v12 = vsel %vm532_vm4, %v4177_v61, %v4176_v38  ;;  %v4501_v54 = vmul.f32 %v4359_v44, %v8845_v10  ;;  %v4477_v2 = vperm.slane %v7577_v27, 7 }
 0x8ef   :  { %v4166_v8 = vsel %vm534_vm5, %v4165_v59, %v4164_v0  ;;  %v2876_v18 = vmul.f32 %v7352_v50, %v8957_v41  ;;  %v4180_v36 = vsel %vm534_vm5, %v4179_v26, %v4178_v12  ;;  %v4183_v9 = vrot.slane %v4141_v5, 2 }
 0x8f0   :  { %v4168_v48 = vsel %vm536_vm6, %v4167_v63, %v4166_v8  ;;  %v4171_v23 = vrot.slane %v4134_v32, 1  ;;  %v4182_v35 = vsel %vm536_vm6, %v4181_v39, %v4180_v36  ;;  %v4185_v21 = vrot.slane %v4142_v28, 1  ;;  %4482 = vperm.xlu2 %5295, %v4477_v2  }
 0x8f1   :  { %v4170_v31 = vsel %vm8958_vm12, %v4169_v47, %v4168_v48  ;;  %v4568_v34 = vsel %vm620_vm10, %v4501_v54, -inf  ;;  %v4184_v19 = vsel %vm8959_vm13, %v4183_v9, %v4182_v35  ;;  %v2896_v5 = vrot.slane %v2876_v18, 1 }
 0x8f2   :  { %v4569_v46 = vmax.f32 %v7782_v11, %v4568_v34  ;;  %v4172_v25 = vsel %vm8960_vm14, %v4171_v23, %v4170_v31  ;;  %v4186_v56 = vsel %vm8961_vm7, %v4185_v21, %v4184_v19  ;;  %v2897_v28 = vrot.slane %v2876_v18, 2 }
 0x8f3   :  { %v4215_v62 = vpack.c.b16 %v4186_v56, %v4172_v25  ;;  %v7876_v53 = vsub.f32 %v7209_v14, %v2896_v5  ;;  %v8962_v30 = vperm.slane %v7643_v58, 7  ;;  %v2898_v63 = vrot.slane %v2876_v18, 3 }
 0x8f4   :  { %v4570_v4 = vrot.slane %v4569_v46, 4  ;;  %v7881_v11 = vsub.f32 %v7221_v51, %v2897_v28  ;;  %v7886_v0 = vsub.f32 %v7217_v20, %v2876_v18  ;;  %v2899_v61 = vrot.slane %v2876_v18, 4  ;;  %v8965_v28 = vld [vmem:[#allocation19_spill] sm:$0xff] }
 0x8f5   :  { %4866 = vmatmul.msk.bf16.vlgmr.msra.gmra.mxu3 %vm620_vm10, %v4215_v62  ;;  %v2991_v47 = vmul.f32 %v7876_v53, %v7876_v53  ;;  %v7892_v51 = vsub.f32 %v7232_v42, %v2898_v63  ;;  %v2900_v39 = vrot.slane %v2876_v18, 5  ;;  %v2901_v31 = vrot.slane %v2876_v18, 6 }
 0x8f6   :  { %v4571_v32 = vmax.f32 %v4569_v46, %v4570_v4  ;;  %v2992_v14 = vmul.f32 %v7881_v11, %v7881_v11  ;;  %v2990_v48 = vmul.f32 %v7886_v0, %v7886_v0  ;;  %v7897_v20 = vsub.f32 %v7242_v45, %v2899_v61 }
 0x8f7   :  { %v3066_v8 = vrot.slane %v2991_v47, 7  ;;  %v2993_v41 = vmul.f32 %v7892_v51, %v7892_v51  ;;  %v7907_v36 = vsub.f32 %v7268_v17, %v2900_v39  ;;  %v2902_v23 = vrot.slane %v2876_v18, 7 }
 0x8f8   :  { %v4572_v59 = vrot.slane %v4571_v32, 2  ;;  %v3068_v12 = vrot.slane %v2992_v14, 6  ;;  %v2994_v9 = vmul.f32 %v7897_v20, %v7897_v20  ;;  %v7913_v21 = vsub.f32 %v7259_v24, %v2901_v31  ;;  %v4379_v31 = vpop.permute.xlu1 %4378 }
 0x8f9   :  { %v3067_v42 = vsel %vm528_vm2, %v3066_v8, %v2990_v48  ;;  %v3070_v35 = vrot.slane %v2993_v41, 5  ;;  %v7919_v46 = vsub.f32 %v7265_v49, %v2902_v23  ;;  %v4579_v63 = vrot.slane %v7785_v37, 4 }
 0x8fa   :  { %4384 = vperm.xlu0 %5292, %v8962_v30   ;;  %v4573_v40 = vmax.f32 %v4571_v32, %v4572_v59  ;;  %v3069_v45 = vsel %vm530_vm3, %v3068_v12, %v3067_v42  ;;  %v3072_v19 = vrot.slane %v2994_v9, 4  ;;  %v2996_v17 = vmul.f32 %v7913_v21, %v7913_v21 }
 0x8fb   :  { %v3071_v34 = vsel %vm532_vm4, %v3070_v35, %v3069_v45  ;;  %v2997_v18 = vmul.f32 %v7919_v46, %v7919_v46  ;;  %v2877_v59 = vmul.f32 %v7352_v50, %v8965_v28  ;;  %v4580_v27 = vmax.f32 %v7785_v37, %v4579_v63 }
 0x8fc   :  { %v4574_v43 = vrot.slane %v4573_v40, 1  ;;  %v3603_v52 = vpop.permute.xlu2 %3602  ;;  %v3073_v25 = vsel %vm534_vm5, %v3072_v19, %v3071_v34  ;;  %v3076_v62 = vrot.slane %v2996_v17, 2 }
 0x8fd   :  { %v3617_v26 = vsel %vm620_vm10, %v3603_v52, 0.0  ;;  %v3078_v5 = vrot.slane %v2997_v18, 1  ;;  %v2903_v30 = vrot.slane %v2877_v59, 1  ;;  %v7944_v61 = vsub.f32 %v7256_v13, %v2877_v59 }
 0x8fe   :  { %v4575_v44 = vmax.f32 %v4573_v40, %v4574_v43  ;;  %3618 = vadd.xlane.f32.xlu1 %v3617_v26  ;;  %v2904_v40 = vrot.slane %v2877_v59, 2  ;;  %v2907_v26 = vrot.slane %v2877_v59, 5  ;;  %v4581_v8 = vrot.slane %v4580_v27, 2 }
 0x8ff   :  { %v7935_v43 = vsub.f32 %v7228_v55, %v2903_v30  ;;  %v2908_v48 = vrot.slane %v2877_v59, 6  ;;  %v2909_v9 = vrot.slane %v2877_v59, 7 }
 0x900   :  { %v4675_v58 = vpack.c.bf16 %v4575_v44, %v4575_v44  ;;  %v7939_v47 = vsub.f32 %v7245_v7, %v2904_v40  ;;  %v2905_v44 = vrot.slane %v2877_v59, 3  ;;  %v2998_v7 = vmul.f32 %v7944_v61, %v7944_v61 }
 0x901   :  { %v2999_v52 = vmul.f32 %v7935_v43, %v7935_v43  ;;  %v7961_v12 = vsub.f32 %v7289_v29, %v2907_v26  ;;  %v7967_v45 = vsub.f32 %v7301_v60, %v2908_v48  ;;  %v7973_v34 = vsub.f32 %v7296_v33, %v2909_v9 }
 0x902   :  { %v4707_v38 = vunpack.c.l.b16 %v4675_v58  ;;  %v3000_v14 = vmul.f32 %v7939_v47, %v7939_v47  ;;  %v7950_v55 = vsub.f32 %v7251_v3, %v2905_v44  ;;  %v4582_v3 = vmax.f32 %v4580_v27, %v4581_v8 }
 0x903   :  { %v3080_v58 = vrot.slane %v2999_v52, 7  ;;  %8968 = vst [vmem:[#allocation44_spill] sm:$0xff] %v7961_v12  ;;  %v3003_v23 = vmul.f32 %v7961_v12, %v7961_v12  ;;  %v3004_v19 = vmul.f32 %v7967_v45, %v7967_v45  ;;  %v3005_v60 = vmul.f32 %v7973_v34, %v7973_v34 }
 0x904   :  { %v7901_v54 = vsel %vm536_vm6, %v4707_v38, %v7754_v6  ;;  %v2995_v6 = vmul.f32 %v7907_v36, %v7907_v36  ;;  %8966 = vst [vmem:[#allocation50_spill] sm:$0xff] %v7950_v55  ;;  %v3082_v13 = vrot.slane %v3000_v14, 6  ;;  %v3001_v37 = vmul.f32 %v7950_v55, %v7950_v55 }
 0x905   :  { %v3081_v39 = vsel %vm528_vm2, %v3080_v58, %v2998_v7  ;;  %8969 = vst [vmem:[#allocation47_spill] sm:$0xff] %v7967_v45 }
 0x906   :  { %v3074_v56 = vrot.slane %v2995_v6, 3  ;;  %v3083_v42 = vsel %vm530_vm3, %v3082_v13, %v3081_v39  ;;  %v4583_v6 = vrot.slane %v4582_v3, 1  ;;  %8970 = vst [vmem:[#allocation41_spill] sm:$0xff] %v7973_v34 }
 0x908   :  { %v3075_v24 = vsel %vm536_vm6, %v3074_v56, %v3073_v25  ;;  %v3088_v25 = vrot.slane %v3003_v23, 3  ;;  %v4584_v56 = vmax.f32 %v4582_v3, %v4583_v6  ;;  %v4504_v23 = vmul.f32 %v4379_v31, %v8846_v57 }
 0x909   :  { %v3077_v4 = vsel %vm8963_vm8, %v3076_v62, %v3075_v24  ;;  %v3090_v62 = vrot.slane %v3004_v19, 2 }
 0x90a   :  { %v3079_v32 = vsel %vm8964_vm15, %v3078_v5, %v3077_v4  ;;  %v4676_v4 = vpack.c.bf16 %v4584_v56, %v4584_v56 }
 0x90b   :  { %v3104_v49 = vsel %vm620_vm10, %v3079_v32, 0.0  ;;  %v3092_v32 = vrot.slane %v3005_v60, 1  ;;  %v4585_v60 = vsel %vm620_vm10, %v4504_v23, -inf  ;;  %v8980_v23 = vld [vmem:[#allocation22_spill] sm:$0xff] }
 0x90c   :  { %v4708_v28 = vunpack.c.l.b16 %v4676_v4 }
 0x90e   :  { %v7987_v40 = vsel %vm8956_vm0, %v4708_v28, %v7901_v54 }
 0x917   :  { %4488 = vperm.xlu1 %5296, %v4477_v2   ;;  %v2906_v2 = vrot.slane %v2877_v59, 4 }
 0x919   :  { %3105 = vadd.xlane.f32.xlu2 %v3104_v49  ;;  %v7955_v38 = vsub.f32 %v7279_v1, %v2906_v2  ;;  %v3084_v1 = vrot.slane %v3001_v37, 5 }
 0x91b   :  { %8967 = vst [vmem:[#allocation42_spill] sm:$0xff] %v7955_v38  ;;  %v3002_v41 = vmul.f32 %v7955_v38, %v7955_v38  ;;  %v3085_v35 = vsel %vm532_vm4, %v3084_v1, %v3083_v42 }
 0x91d   :  { %v3086_v29 = vrot.slane %v3002_v41, 4 }
 0x91f   :  { %v3087_v17 = vsel %vm534_vm5, %v3086_v29, %v3085_v35 }
 0x920   :  { %v3089_v24 = vsel %vm536_vm6, %v3088_v25, %v3087_v17 }
 0x921   :  { %v3091_v33 = vsel %vm8971_vm9, %v3090_v62, %v3089_v24  ;;  %v8973_v62 = vld [vmem:[#allocation59_spill] sm:$0xff] }
 0x922   :  { %v3093_v49 = vsel %vm8972_vm1, %v3092_v32, %v3091_v33 }
 0x923   :  { %v3107_v30 = vsel %vm620_vm10, %v3093_v49, 0.0 }
 0x937   :  { %v3610_v18 = vpop.xlane.xlu1 %3609 }
 0x938   :  { %v3620_v5 = vmul.f32 %v3610_v18, %v7352_v50 }
 0x93a   :  { %v3624_v59 = vadd.f32 1e-05, %v3620_v5 }
 0x93c   :  { %5319 = vrsqrt.f32 %v3624_v59  ;;  %vm3634_vm13 = vweird.f32 %v3624_v59 }
 0x941   :  { %3108 = vadd.xlane.f32.xlu1 %v3107_v30 }
 0x942   :  { %v5320_v27 = vpop.eup %5319 }
 0x943   :  { %v3629_v2 = vmul.f32 %v5320_v27, %v3624_v59  ;;  %vm3635_vm12 = vweird.f32 %v5320_v27  ;;  %v8974_v59 = vld [vmem:[#allocation61_spill] sm:$0xff] }
 0x944   :  { %v3613_v63 = vpop.xlane.xlu2 %3612  ;;  %vm3636_vm14 = vmor %vm3634_vm13, %vm3635_vm12 }
 0x945   :  { %v3621_v44 = vmul.f32 %v3613_v63, %v7352_v50  ;;  %v3630_v58 = vmul.f32 %v5320_v27, %v3629_v2 }
 0x947   :  { %v3625_v52 = vadd.f32 1e-05, %v3621_v44  ;;  %v3631_v7 = vmul.f32 0.5, %v3630_v58  ;;  %v8976_v44 = vld [vmem:[#allocation52_spill] sm:$0xff] }
 0x949   :  { %5321 = vrsqrt.f32 %v3625_v52  ;;  %v3632_v39 = vsub.f32 1.5, %v3631_v7  ;;  %vm3644_vm8 = vweird.f32 %v3625_v52 }
 0x94b   :  { %v3633_v3 = vmul.f32 %v5320_v27, %v3632_v39 }
 0x94c   :  { %v4483_v19 = vpop.permute.xlu2 %4482 }
 0x94d   :  { %v7991_v42 = vsel %vm3636_vm14, %v5320_v27, %v3633_v3  ;;  %v4520_v33 = vmul.f32 %v4483_v19, %v8846_v57  ;;  %v8979_v3 = vld [vmem:[#allocation65_spill] sm:$0xff] }
 0x94e   :  { %v3672_v6 = vrot.slane %v7991_v42, 1  ;;  %v3673_v25 = vrot.slane %v7991_v42, 2  ;;  %v3674_v56 = vrot.slane %v7991_v42, 3  ;;  %v3732_v18 = vmul.f32 %v7991_v42, %v7529_v15  ;;  %v8975_v15 = vld [vmem:[#allocation62_spill] sm:$0xff] }
 0x94f   :  { %v5322_v14 = vpop.eup %5321  ;;  %v3675_v31 = vrot.slane %v7991_v42, 4  ;;  %v3676_v32 = vrot.slane %v7991_v42, 5  ;;  %v8021_v39 = vsel %vm620_vm10, %v4520_v33, -inf }
 0x950   :  { %v3639_v26 = vmul.f32 %v5322_v14, %v3625_v52  ;;  %vm3645_vm7 = vweird.f32 %v5322_v14  ;;  %v3733_v4 = vmul.f32 %v3672_v6, %v8973_v62  ;;  %v3734_v30 = vmul.f32 %v3673_v25, %v8974_v59 }
 0x951   :  { %vm3646_vm15 = vmor %vm3644_vm8, %vm3645_vm7  ;;  %v3735_v63 = vmul.f32 %v3674_v56, %v8975_v15  ;;  %v8011_v52 = vmul.f32 %v8976_v44, %v3732_v18  ;;  %v8981_v56 = vld [vmem:[#allocation36_spill] sm:$0xff]  ;;  %v3677_v62 = vrot.slane %v7991_v42, 6  ;;  %vm8998_vm7 = vcmask 1046534  }
 0x952   :  { %v3640_v8 = vmul.f32 %v5322_v14, %v3639_v26  ;;  %v3770_v7 = vmul.f32 %v8976_v44, %v3733_v4  ;;  %vm8999_vm8 = vcmask 1047559  }
 0x954   :  { %v3641_v54 = vmul.f32 0.5, %v3640_v8 }
 0x956   :  { %v3642_v41 = vsub.f32 1.5, %v3641_v54 }
 0x958   :  { %v3643_v9 = vmul.f32 %v5322_v14, %v3642_v41 }
 0x959   :  { %v3616_v13 = vpop.xlane.xlu0 %3615 }
 0x95a   :  { %v3622_v37 = vmul.f32 %v3616_v13, %v7352_v50  ;;  %v7995_v29 = vsel %vm3646_vm15, %v5322_v14, %v3643_v9  ;;  %v8977_v14 = vld [vmem:[#allocation24_spill] sm:$0xff]  ;;  %v8978_v13 = vld [vmem:[#allocation17_spill] sm:$0xff]  ;;  %vm9000_vm15 = vmmov %vm8998_vm7 }
 0x95b   :  { %v3679_v5 = vrot.slane %v7995_v29, 1  ;;  %v3680_v49 = vrot.slane %v7995_v29, 2  ;;  %v3681_v27 = vrot.slane %v7995_v29, 3  ;;  %v3740_v58 = vmul.f32 %v7995_v29, %v8977_v14 }
 0x95c   :  { %v3626_v48 = vadd.f32 1e-05, %v3622_v37  ;;  %v3682_v8 = vrot.slane %v7995_v29, 4  ;;  %v3683_v54 = vrot.slane %v7995_v29, 5  ;;  %v3684_v15 = vrot.slane %v7995_v29, 6 }
 0x95d   :  { %v3741_v37 = vmul.f32 %v3679_v5, %v8978_v13  ;;  %v3742_v41 = vmul.f32 %v3680_v49, %v8979_v3  ;;  %v3777_v25 = vmul.f32 %v8976_v44, %v3740_v58  ;;  %v8982_v5 = vld [vmem:[#allocation39_spill] sm:$0xff]  ;;  %v3678_v49 = vrot.slane %v7991_v42, 7 }
 0x95e   :  { %5323 = vrsqrt.f32 %v3626_v48  ;;  %vm3654_vm1 = vweird.f32 %v3626_v48  ;;  %v8986_v13 = vld [vmem:[#allocation63_spill] sm:$0xff] }
 0x964   :  { %v5324_v1 = vpop.eup %5323 }
 0x965   :  { %v3649_v35 = vmul.f32 %v5324_v1, %v3626_v48  ;;  %vm3655_vm9 = vweird.f32 %v5324_v1 }
 0x966   :  { %vm3656_vm0 = vmor %vm3654_vm1, %vm3655_vm9 }
 0x967   :  { %v3650_v17 = vmul.f32 %v5324_v1, %v3649_v35  ;;  %v3743_v35 = vmul.f32 %v3681_v27, %v8980_v23  ;;  %v3685_v27 = vrot.slane %v7995_v29, 7  ;;  %v8987_v23 = vld [vmem:[#allocation79_spill] sm:$0xff]  ;;  %vm9001_vm9 = vmmov %vm8999_vm8 }
 0x969   :  { %v3651_v24 = vmul.f32 0.5, %v3650_v17 }
 0x96b   :  { %v3652_v28 = vsub.f32 1.5, %v3651_v24 }
 0x96c   :  { %v4385_v2 = vpop.permute.xlu0 %4384 }
 0x96d   :  { %v3653_v57 = vmul.f32 %v5324_v1, %v3652_v28  ;;  %v4505_v26 = vmul.f32 %v4385_v2, %v8845_v10  ;;  %v8983_v2 = vld [vmem:[#allocation66_spill] sm:$0xff] }
 0x96f   :  { %v8025_v9 = vsel %vm3656_vm0, %v5324_v1, %v3653_v57  ;;  %v4586_v48 = vsel %vm620_vm10, %v4505_v26, -inf  ;;  %v3778_v1 = vmul.f32 %v8976_v44, %v3741_v37  ;;  %v8985_v57 = vld [vmem:[#allocation78_spill] sm:$0xff]  ;;  %v3737_v37 = vmul.f32 %v3676_v32, %v8986_v13  ;;  %v8991_v32 = vld [vmem:[#allocation72_spill] sm:$0xff] }
 0x970   :  { %v3686_v6 = vrot.slane %v8025_v9, 1  ;;  %v3687_v19 = vrot.slane %v8025_v9, 2  ;;  %v3688_v17 = vrot.slane %v8025_v9, 3  ;;  %v3748_v18 = vmul.f32 %v8025_v9, %v8981_v56  ;;  %v8988_v56 = vld [vmem:[#allocation77_spill] sm:$0xff] }
 0x971   :  { %v4587_v24 = vmax.f32 %v4585_v60, %v4586_v48  ;;  %v8984_v60 = vld [vmem:[#allocation67_spill] sm:$0xff]  ;;  %v3736_v26 = vmul.f32 %v3675_v31, %v8985_v57  ;;  %v3619_v48 = vpop.xlane.xlu1 %3618  ;;  %v3746_v13 = vmul.f32 %v3684_v15, %v8991_v32  ;;  %v3780_v15 = vmul.f32 %v8976_v44, %v3743_v35 }
 0x972   :  { %v3749_v33 = vmul.f32 %v3686_v6, %v8982_v5  ;;  %v8044_v14 = vmul.f32 %v3687_v19, %v8983_v2  ;;  %v8047_v58 = vmul.f32 %v3688_v17, %v8984_v60  ;;  %v8052_v3 = vmul.f32 %v8976_v44, %v3748_v18  ;;  %v8989_v17 = vld [vmem:[#allocation15_spill] sm:$0xff]  ;;  %v8990_v60 = vld [vmem:[#allocation29_spill] sm:$0xff] }
 0x973   :  { %v4588_v59 = vrot.slane %v4587_v24, 4  ;;  %v3738_v6 = vmul.f32 %v3677_v62, %v8987_v23  ;;  %v3739_v5 = vmul.f32 %v3678_v49, %v8988_v56  ;;  %v3623_v19 = vmul.f32 %v3619_v48, %v7352_v50  ;;  %v8992_v18 = vld [vmem:[#allocation73_spill] sm:$0xff] }
 0x974   :  { %v8057_v29 = vmul.f32 %v8976_v44, %v3749_v33  ;;  %v3744_v2 = vmul.f32 %v3682_v8, %v8989_v17  ;;  %v3745_v31 = vmul.f32 %v3683_v54, %v8990_v60  ;;  %v3747_v28 = vmul.f32 %v3685_v27, %v8992_v18 }
 0x975   :  { %v4589_v42 = vmax.f32 %v4587_v24, %v4588_v59  ;;  %v3771_v24 = vmul.f32 %v8976_v44, %v3734_v30  ;;  %v8065_v59 = vadd.f32 1e-05, %v3623_v19  ;;  %v3772_v62 = vmul.f32 %v8976_v44, %v3735_v63 }
 0x976   :  { %v3773_v33 = vmul.f32 %v8976_v44, %v3736_v26  ;;  %v3774_v49 = vmul.f32 %v8976_v44, %v3737_v37  ;;  %v3775_v8 = vmul.f32 %v8976_v44, %v3738_v6  ;;  %v3776_v54 = vmul.f32 %v8976_v44, %v3739_v5 }
 0x977   :  { %v4590_v57 = vrot.slane %v4589_v42, 2  ;;  %v3779_v23 = vmul.f32 %v8976_v44, %v3742_v41  ;;  %5325 = vrsqrt.f32 %v8065_v59  ;;  %v3781_v30 = vmul.f32 %v8976_v44, %v3744_v2 }
 0x978   :  { %v3782_v27 = vmul.f32 %v8976_v44, %v3745_v31  ;;  %v3783_v26 = vmul.f32 %v8976_v44, %v3746_v13  ;;  %v3784_v37 = vmul.f32 %v8976_v44, %v3747_v28  ;;  %vm3664_vm12 = vweird.f32 %v8065_v59 }
 0x979   :  { %v4591_v48 = vmax.f32 %v4589_v42, %v4590_v57  ;;  %v8993_v42 = vld [vmem:[#allocation40_spill] sm:$0xff] }
 0x97a   :  { %v3806_v6 = vadd.f32 %v8993_v42, %v8011_v52  ;;  %v3807_v56 = vadd.f32 %v8993_v42, %v3770_v7  ;;  %v3808_v41 = vadd.f32 %v8993_v42, %v3771_v24  ;;  %v3809_v5 = vadd.f32 %v8993_v42, %v3772_v62 }
 0x97b   :  { %v4592_v63 = vrot.slane %v4591_v48, 1  ;;  %v3810_v35 = vadd.f32 %v8993_v42, %v3773_v33  ;;  %v3811_v17 = vadd.f32 %v8993_v42, %v3774_v49  ;;  %v3812_v2 = vadd.f32 %v8993_v42, %v3775_v8 }
 0x97c   :  { %v3813_v60 = vadd.f32 %v8993_v42, %v3776_v54  ;;  %v3814_v28 = vadd.f32 %v8993_v42, %v3777_v25  ;;  %v3815_v31 = vadd.f32 %v8993_v42, %v3778_v1  ;;  %v3816_v52 = vadd.f32 %v8993_v42, %v3779_v23 }
 0x97d   :  { %v4593_v19 = vmax.f32 %v4591_v48, %v4592_v63  ;;  %v3817_v7 = vadd.f32 %v8993_v42, %v3780_v15  ;;  %v3818_v32 = vadd.f32 %v8993_v42, %v3781_v30  ;;  %v3819_v13 = vadd.f32 %v8993_v42, %v3782_v27  ;;  %v5326_v24 = vpop.eup %5325 }
 0x97e   :  { %v3820_v18 = vadd.f32 %v8993_v42, %v3783_v26  ;;  %v3821_v62 = vadd.f32 %v8993_v42, %v3784_v37  ;;  %v3838_v33 = vmax.f32 %v3806_v6, 0.0  ;;  %v3839_v49 = vmax.f32 %v3807_v56, 0.0 }
 0x97f   :  { %v4677_v57 = vpack.c.bf16 %v4593_v19, %v4593_v19  ;;  %v3840_v48 = vmax.f32 %v3808_v41, 0.0  ;;  %v3659_v1 = vmul.f32 %v5326_v24, %v8065_v59  ;;  %v3841_v8 = vmax.f32 %v3809_v5, 0.0 }
 0x980   :  { %v3842_v54 = vmax.f32 %v3810_v35, 0.0  ;;  %vm3665_vm13 = vweird.f32 %v5326_v24  ;;  %v3843_v23 = vmax.f32 %v3811_v17, 0.0  ;;  %v3844_v15 = vmax.f32 %v3812_v2, 0.0 }
 0x981   :  { %v8096_v25 = vunpack.c.l.b16 %v4677_v57  ;;  %v3845_v30 = vmax.f32 %v3813_v60, 0.0  ;;  %v3660_v27 = vmul.f32 %v5326_v24, %v3659_v1  ;;  %v3846_v63 = vmax.f32 %v3814_v28, 0.0  ;;  %vm3666_vm14 = vmor %vm3664_vm12, %vm3665_vm13 }
 0x982   :  { %v3847_v26 = vmax.f32 %v3815_v31, 0.0  ;;  %v3848_v19 = vmax.f32 %v3816_v52, 0.0  ;;  %v3849_v37 = vmax.f32 %v3817_v7, 0.0  ;;  %v3850_v6 = vmax.f32 %v3818_v32, 0.0  ;;  %vm9013_vm13 = vmmov %vm8999_vm8 }
 0x983   :  { %v3851_v56 = vmax.f32 %v3819_v13, 0.0  ;;  %v3852_v41 = vmax.f32 %v3820_v18, 0.0  ;;  %v3661_v57 = vmul.f32 0.5, %v3660_v27  ;;  %v3853_v4 = vmax.f32 %v3821_v62, 0.0 }
 0x984   :  { %v3906_v34 = vpack.c.bf16 %v3838_v33, %v3838_v33  ;;  %v3907_v45 = vpack.c.bf16 %v3839_v49, %v3839_v49  ;;  %v3908_v12 = vpack.c.bf16 %v3840_v48, %v3840_v48  ;;  %v3909_v38 = vpack.c.bf16 %v3841_v8, %v3841_v8 }
 0x985   :  { %v3910_v5 = vpack.c.bf16 %v3842_v54, %v3842_v54  ;;  %v3911_v35 = vpack.c.bf16 %v3843_v23, %v3843_v23  ;;  %v3662_v55 = vsub.f32 1.5, %v3661_v57  ;;  %v3912_v17 = vpack.c.bf16 %v3844_v15, %v3844_v15 }
 0x986   :  { %v3913_v2 = vpack.c.bf16 %v3845_v30, %v3845_v30  ;;  %v3914_v60 = vpack.c.bf16 %v3846_v63, %v3846_v63  ;;  %v3915_v1 = vpack.c.bf16 %v3847_v26, %v3847_v26  ;;  %v3916_v28 = vpack.c.bf16 %v3848_v19, %v3848_v19  ;;  %v8996_v19 = vld [vmem:[#allocation55_spill] sm:$0xff] }
 0x987   :  { %v3917_v31 = vpack.c.bf16 %v3849_v37, %v3849_v37  ;;  %v3918_v52 = vpack.c.bf16 %v3850_v6, %v3850_v6  ;;  %v3663_v7 = vmul.f32 %v5326_v24, %v3662_v55  ;;  %v3919_v32 = vpack.c.bf16 %v3851_v56, %v3851_v56 }
 0x988   :  { %v3920_v13 = vpack.c.bf16 %v3852_v41, %v3852_v41  ;;  %v8100_v18 = vpack.c.bf16 %v3853_v4, %v3853_v4  ;;  %v3970_v62 = vunpack.c.l.b16 %v3906_v34  ;;  %v3971_v33 = vunpack.c.l.b16 %v3907_v45  ;;  %v8994_v34 = vld [vmem:[#allocation53_spill] sm:$0xff]  ;;  %v4895_v45 = vld [vmem:[#allocation2 + $0x40] sm:$0xff]  ;;  %v8997_v41 = vld [vmem:[#allocation51_spill] sm:$0xff] }
 0x989   :  { %v3972_v49 = vunpack.c.l.b16 %v3908_v12  ;;  %v3973_v48 = vunpack.c.l.b16 %v3909_v38  ;;  %v8105_v8 = vsel %vm3666_vm14, %v5326_v24, %v3663_v7  ;;  %v3974_v54 = vunpack.c.l.b16 %v3910_v5  ;;  %v8995_v24 = vld [vmem:[#allocation54_spill] sm:$0xff]  ;;  %4749 = vmatpush.bf16.msrb.mxu0 %v4895_v45  ;;  %vm9014_vm14 = vmmov %vm8999_vm8 }
 0x98a   :  { %v3975_v23 = vunpack.c.l.b16 %v3911_v35  ;;  %v3976_v15 = vunpack.c.l.b16 %v3912_v17  ;;  %v3693_v30 = vrot.slane %v8105_v8, 1  ;;  %v3694_v55 = vrot.slane %v8105_v8, 2 }
 0x98b   :  { %v3695_v4 = vrot.slane %v8105_v8, 3  ;;  %v3977_v27 = vunpack.c.l.b16 %v3913_v2  ;;  %v3696_v63 = vrot.slane %v8105_v8, 4  ;;  %v3756_v12 = vmul.f32 %v8105_v8, %v8994_v34 }
 0x98c   :  { %v3978_v38 = vunpack.c.l.b16 %v3914_v60  ;;  %v3757_v26 = vmul.f32 %v3693_v30, %v8995_v24  ;;  %v8116_v37 = vmul.f32 %v3694_v55, %v8996_v19  ;;  %v3979_v6 = vunpack.c.l.b16 %v3915_v1  ;;  %v3106_v59 = vpop.xlane.xlu2 %3105 }
 0x98d   :  { %v3980_v56 = vunpack.c.l.b16 %v3916_v28  ;;  %v8119_v57 = vmul.f32 %v3695_v4, %v8997_v41  ;;  %v8122_v5 = vmul.f32 %v8976_v44, %v3756_v12  ;;  %v3981_v35 = vunpack.c.l.b16 %v3917_v31  ;;  %v4489_v12 = vpop.permute.xlu1 %4488 }
 0x98e   :  { %v3982_v17 = vunpack.c.l.b16 %v3918_v52  ;;  %v3983_v2 = vunpack.c.l.b16 %v3919_v32  ;;  %v3984_v7 = vunpack.c.l.b16 %v3920_v13  ;;  %v4002_v60 = vrot.slane %v3971_v33, 7 }
 0x98f   :  { %v4004_v34 = vrot.slane %v3972_v49, 6  ;;  %v3985_v30 = vunpack.c.l.b16 %v8100_v18  ;;  %v4006_v24 = vrot.slane %v3973_v48, 5  ;;  %v4008_v55 = vrot.slane %v3974_v54, 4 }
 0x990   :  { %v4010_v19 = vrot.slane %v3975_v23, 3  ;;  %v4003_v1 = vsel %vm528_vm2, %v4002_v60, %v3970_v62  ;;  %v4012_v28 = vrot.slane %v3976_v15, 2  ;;  %v4016_v4 = vrot.slane %v3979_v6, 7 }
 0x991   :  { %v4018_v41 = vrot.slane %v3980_v56, 6  ;;  %v4005_v31 = vsel %vm530_vm3, %v4004_v34, %v4003_v1  ;;  %v4014_v52 = vrot.slane %v3977_v27, 1  ;;  %v4020_v45 = vrot.slane %v3981_v35, 5 }
 0x992   :  { %v4022_v32 = vrot.slane %v3982_v17, 4  ;;  %v4007_v13 = vsel %vm532_vm4, %v4006_v24, %v4005_v31  ;;  %v4017_v33 = vsel %vm528_vm2, %v4016_v4, %v3978_v38  ;;  %v4024_v18 = vrot.slane %v3983_v2, 3 }
 0x993   :  { %v4026_v49 = vrot.slane %v3984_v7, 2  ;;  %v4009_v48 = vsel %vm534_vm5, %v4008_v55, %v4007_v13  ;;  %v4019_v62 = vsel %vm530_vm3, %v4018_v41, %v4017_v33  ;;  %v3112_v54 = vmul.f32 %v3106_v59, %v7352_v50  ;;  %v9008_v33 = vld [vmem:[#allocation58_spill] sm:$0xff] }
 0x994   :  { %v4521_v23 = vmul.f32 %v4489_v12, %v8845_v10  ;;  %v4011_v15 = vsel %vm536_vm6, %v4010_v19, %v4009_v48  ;;  %v4021_v27 = vsel %vm532_vm4, %v4020_v45, %v4019_v62  ;;  %v3691_v6 = vrot.slane %v8025_v9, 6  ;;  %v9006_v45 = vld [vmem:[#allocation69_spill] sm:$0xff] }
 0x995   :  { %v3692_v56 = vrot.slane %v8025_v9, 7  ;;  %v4013_v38 = vsel %vm8998_vm7, %v4012_v28, %v4011_v15  ;;  %v4023_v35 = vsel %vm534_vm5, %v4022_v32, %v4021_v27  ;;  %v8139_v17 = vadd.f32 1e-05, %v3112_v54  ;;  %v9002_v28 = vld [vmem:[#allocation80_spill] sm:$0xff]  ;;  %v9009_v62 = vld [vmem:[#allocation33_spill] sm:$0xff]  ;;  %v9011_v15 = vld [vmem:[#allocation31_spill] sm:$0xff] }
 0x996   :  { %v4658_v2 = vsel %vm620_vm10, %v4521_v23, -inf  ;;  %v4025_v59 = vsel %vm536_vm6, %v4024_v18, %v4023_v35  ;;  %v4028_v7 = vrot.slane %v3985_v30, 1  ;;  %v3698_v60 = vrot.slane %v8105_v8, 6  ;;  %v9004_v30 = vld [vmem:[#allocation68_spill] sm:$0xff] }
 0x997   :  { %v4659_v10 = vmax.f32 %v8021_v39, %v4658_v2  ;;  %v4015_v34 = vsel %vm8999_vm8, %v4014_v52, %v4013_v38  ;;  %v4027_v24 = vsel %vm9000_vm15, %v4026_v49, %v4025_v59  ;;  %5327 = vrsqrt.f32 %v8139_v17  ;;  %v9007_v32 = vld [vmem:[#allocation60_spill] sm:$0xff]  ;;  %vm9015_vm8 = vmmov %vm8998_vm7 }
 0x998   :  { %v3699_v55 = vrot.slane %v8105_v8, 7  ;;  %v4029_v19 = vsel %vm9001_vm9, %v4028_v7, %v4027_v24  ;;  %v9003_v4 = vrot.slane %v8025_v9, 4  ;;  %v9005_v39 = vrot.slane %v8025_v9, 5  ;;  %v9012_v9 = vld [vmem:[#allocation30_spill] sm:$0xff]  ;;  %vm9016_vm15 = vmmov %vm9001_vm9 }
 0x999   :  { %v4660_v1 = vrot.slane %v4659_v10, 4  ;;  %v4058_v31 = vpack.c.b16 %v4029_v19, %v4015_v34  ;;  %v3754_v52 = vmul.f32 %v3691_v6, %v9006_v45  ;;  %v3755_v13 = vmul.f32 %v3692_v56, %v9007_v32 }
 0x99a   :  { %v3752_v41 = vmul.f32 %v9003_v4, %v9002_v28  ;;  %v3753_v12 = vmul.f32 %v9005_v39, %v9004_v30  ;;  %v3760_v18 = vmul.f32 %v3696_v63, %v9008_v33  ;;  %v3794_v49 = vmul.f32 %v8976_v44, %v3757_v26 }
 0x99b   :  { %v4661_v48 = vmax.f32 %v4659_v10, %v4660_v1  ;;  %v9010_v54 = vrot.slane %v8105_v8, 5  ;;  %v3762_v27 = vmul.f32 %v3698_v60, %v9011_v15  ;;  %4060 = vrot.lane.b32.xlu0 %v4058_v31, %s5383_s23  ;;  %v3763_v38 = vmul.f32 %v3699_v55, %v9012_v9 }
 0x99c   :  { %v3787_v6 = vmul.f32 %v8976_v44, %v8044_v14  ;;  %v3788_v56 = vmul.f32 %v8976_v44, %v8047_v58  ;;  %v3789_v63 = vmul.f32 %v8976_v44, %v3752_v41  ;;  %v3790_v35 = vmul.f32 %v8976_v44, %v3753_v12 }
 0x99d   :  { %v3761_v23 = vmul.f32 %v9010_v54, %v9009_v62  ;;  %v4662_v26 = vrot.slane %v4661_v48, 2  ;;  %v3791_v8 = vmul.f32 %v8976_v44, %v3754_v52  ;;  %v3792_v2 = vmul.f32 %v8976_v44, %v3755_v13  ;;  %v5328_v59 = vpop.eup %5327 }
 0x99e   :  { %v3795_v7 = vmul.f32 %v8976_v44, %v8116_v37  ;;  %v3796_v10 = vmul.f32 %v8976_v44, %v8119_v57  ;;  %v3797_v14 = vmul.f32 %v8976_v44, %v3760_v18  ;;  %v3139_v60 = vmul.f32 %v5328_v59, %v8139_v17 }
 0x99f   :  { %v3798_v58 = vmul.f32 %v8976_v44, %v3761_v23  ;;  %vm3144_vm1 = vweird.f32 %v8139_v17  ;;  %vm3145_vm0 = vweird.f32 %v5328_v59  ;;  %v4663_v34 = vmax.f32 %v4661_v48, %v4662_v26 }
 0x9a0   :  { %v3799_v24 = vmul.f32 %v8976_v44, %v3762_v27  ;;  %v3800_v55 = vmul.f32 %v8976_v44, %v3763_v38  ;;  %v3822_v37 = vadd.f32 %v8993_v42, %v8052_v3  ;;  %v3823_v57 = vadd.f32 %v8993_v42, %v8057_v29  ;;  %vm3146_vm12 = vmor %vm3144_vm1, %vm3145_vm0 }
 0x9a1   :  { %v3824_v19 = vadd.f32 %v8993_v42, %v3787_v6  ;;  %v3140_v1 = vmul.f32 %v5328_v59, %v3139_v60  ;;  %v4664_v28 = vrot.slane %v4663_v34, 1  ;;  %v3825_v4 = vadd.f32 %v8993_v42, %v3788_v56 }
 0x9a2   :  { %v3826_v41 = vadd.f32 %v8993_v42, %v3789_v63  ;;  %v3827_v30 = vadd.f32 %v8993_v42, %v3790_v35  ;;  %v3828_v39 = vadd.f32 %v8993_v42, %v3791_v8  ;;  %v3829_v44 = vadd.f32 %v8993_v42, %v3792_v2 }
 0x9a3   :  { %v3830_v3 = vadd.f32 %v8993_v42, %v8122_v5  ;;  %v3141_v12 = vmul.f32 0.5, %v3140_v1  ;;  %v4665_v31 = vmax.f32 %v4663_v34, %v4664_v28  ;;  %v3831_v29 = vadd.f32 %v8993_v42, %v3794_v49 }
 0x9a4   :  { %v3832_v45 = vadd.f32 %v8993_v42, %v3795_v7  ;;  %v3833_v52 = vadd.f32 %v8993_v42, %v3796_v10  ;;  %v3834_v32 = vadd.f32 %v8993_v42, %v3797_v14  ;;  %v3835_v13 = vadd.f32 %v8993_v42, %v3798_v58 }
 0x9a5   :  { %v3836_v33 = vadd.f32 %v8993_v42, %v3799_v24  ;;  %v3142_v18 = vsub.f32 1.5, %v3141_v12  ;;  %v4685_v48 = vpack.c.bf16 %v4665_v31, %v4665_v31  ;;  %v3837_v62 = vadd.f32 %v8993_v42, %v3800_v55 }
 0x9a6   :  { %v3854_v54 = vmax.f32 %v3822_v37, 0.0  ;;  %v3855_v5 = vmax.f32 %v3823_v57, 0.0  ;;  %v3856_v23 = vmax.f32 %v3824_v19, 0.0  ;;  %v3857_v15 = vmax.f32 %v3825_v4, 0.0 }
 0x9a7   :  { %v3858_v27 = vmax.f32 %v3826_v41, 0.0  ;;  %v3143_v49 = vmul.f32 %v5328_v59, %v3142_v18  ;;  %v8205_v9 = vunpack.c.l.b16 %v4685_v48  ;;  %v3859_v38 = vmax.f32 %v3827_v30, 0.0 }
 0x9a8   :  { %v3860_v6 = vmax.f32 %v3828_v39, 0.0  ;;  %v3861_v56 = vmax.f32 %v3829_v44, 0.0  ;;  %v3862_v63 = vmax.f32 %v3830_v3, 0.0  ;;  %v3863_v26 = vmax.f32 %v3831_v29, 0.0 }
 0x9a9   :  { %v3864_v35 = vmax.f32 %v3832_v45, 0.0  ;;  %v8210_v8 = vsel %vm3146_vm12, %v5328_v59, %v3143_v49  ;;  %v3865_v42 = vmax.f32 %v3833_v52, 0.0  ;;  %v3866_v2 = vmax.f32 %v3834_v32, 0.0 }
 0x9aa   :  { %v3867_v7 = vmax.f32 %v3835_v13, 0.0  ;;  %v3176_v10 = vrot.slane %v8210_v8, 1  ;;  %v3177_v14 = vrot.slane %v8210_v8, 2  ;;  %v3178_v58 = vrot.slane %v8210_v8, 3 }
 0x9ab   :  { %v3868_v60 = vmax.f32 %v3836_v33, 0.0  ;;  %v8217_v17 = vmul.f32 %v8210_v8, %v7886_v0  ;;  %v3869_v34 = vmax.f32 %v3837_v62, 0.0  ;;  %v3922_v24 = vpack.c.bf16 %v3854_v54, %v3854_v54 }
 0x9ac   :  { %v3923_v55 = vpack.c.bf16 %v3855_v5, %v3855_v5  ;;  %v3924_v37 = vpack.c.bf16 %v3856_v23, %v3856_v23  ;;  %v3925_v59 = vpack.c.bf16 %v3857_v15, %v3857_v15  ;;  %v3926_v57 = vpack.c.bf16 %v3858_v27, %v3858_v27 }
 0x9ad   :  { %v3927_v19 = vpack.c.bf16 %v3859_v38, %v3859_v38  ;;  %v8220_v1 = vmul.f32 %v3176_v10, %v7876_v53  ;;  %v3928_v28 = vpack.c.bf16 %v3860_v6, %v3860_v6  ;;  %v3929_v4 = vpack.c.bf16 %v3861_v56, %v3861_v56 }
 0x9ae   :  { %v3931_v41 = vpack.c.bf16 %v3863_v26, %v3863_v26  ;;  %v3930_v30 = vpack.c.bf16 %v3862_v63, %v3862_v63  ;;  %v3932_v39 = vpack.c.bf16 %v3864_v35, %v3864_v35  ;;  %v3933_v44 = vpack.c.bf16 %v3865_v42, %v3865_v42 }
 0x9af   :  { %v3934_v3 = vpack.c.bf16 %v3866_v2, %v3866_v2  ;;  %v3935_v12 = vpack.c.bf16 %v3867_v7, %v3867_v7  ;;  %v3936_v0 = vpack.c.bf16 %v3868_v60, %v3868_v60  ;;  %v3937_v31 = vpack.c.bf16 %v3869_v34, %v3869_v34 }
 0x9b0   :  { %v3987_v29 = vunpack.c.l.b16 %v3923_v55  ;;  %v3988_v45 = vunpack.c.l.b16 %v3924_v37  ;;  %v3989_v52 = vunpack.c.l.b16 %v3925_v59  ;;  %v3990_v32 = vunpack.c.l.b16 %v3926_v57 }
 0x9b1   :  { %v3991_v13 = vunpack.c.l.b16 %v3927_v19  ;;  %v3986_v33 = vunpack.c.l.b16 %v3922_v24  ;;  %v3992_v18 = vunpack.c.l.b16 %v3928_v28  ;;  %v3993_v48 = vunpack.c.l.b16 %v3929_v4 }
 0x9b2   :  { %v3995_v53 = vunpack.c.l.b16 %v3931_v41  ;;  %v3994_v62 = vunpack.c.l.b16 %v3930_v30  ;;  %v3996_v54 = vunpack.c.l.b16 %v3932_v39  ;;  %v3997_v5 = vunpack.c.l.b16 %v3933_v44 }
 0x9b3   :  { %v3998_v23 = vunpack.c.l.b16 %v3934_v3  ;;  %v3999_v15 = vunpack.c.l.b16 %v3935_v12  ;;  %v4000_v27 = vunpack.c.l.b16 %v3936_v0  ;;  %v4030_v49 = vrot.slane %v3987_v29, 7 }
 0x9b4   :  { %v4032_v38 = vrot.slane %v3988_v45, 6  ;;  %v4001_v6 = vunpack.c.l.b16 %v3937_v31  ;;  %v4034_v56 = vrot.slane %v3989_v52, 5  ;;  %v4036_v63 = vrot.slane %v3990_v32, 4  ;;  %v3109_v19 = vpop.xlane.xlu1 %3108 }
 0x9b5   :  { %v4038_v26 = vrot.slane %v3991_v13, 3  ;;  %v4031_v35 = vsel %vm528_vm2, %v4030_v49, %v3986_v33  ;;  %v4040_v42 = vrot.slane %v3992_v18, 2  ;;  %v4044_v2 = vrot.slane %v3995_v53, 7 }
 0x9b6   :  { %v4046_v7 = vrot.slane %v3996_v54, 6  ;;  %v4033_v10 = vsel %vm530_vm3, %v4032_v38, %v4031_v35  ;;  %v4042_v60 = vrot.slane %v3993_v48, 1  ;;  %v4048_v34 = vrot.slane %v3997_v5, 5 }
 0x9b7   :  { %v4050_v24 = vrot.slane %v3998_v23, 4  ;;  %v4035_v55 = vsel %vm532_vm4, %v4034_v56, %v4033_v10  ;;  %v4045_v37 = vsel %vm528_vm2, %v4044_v2, %v3994_v62  ;;  %v4052_v59 = vrot.slane %v3999_v15, 3 }
 0x9b8   :  { %v4054_v57 = vrot.slane %v4000_v27, 2  ;;  %v4037_v28 = vsel %vm534_vm5, %v4036_v63, %v4035_v55  ;;  %v4047_v4 = vsel %vm530_vm3, %v4046_v7, %v4045_v37  ;;  %v4724_v41 = vsel %vm9013_vm13, %v8096_v25, %v7987_v40  ;;  %vm9023_vm13 = vmmov %vm8998_vm7 }
 0x9b9   :  { %v4731_v30 = vsel %vm9014_vm14, %v8205_v9, %v7854_v22  ;;  %v4039_v39 = vsel %vm536_vm6, %v4038_v26, %v4037_v28  ;;  %v4049_v44 = vsel %vm532_vm4, %v4048_v34, %v4047_v4  ;;  %v3113_v12 = vmul.f32 %v3109_v19, %v7352_v50  ;;  %v4892_v4 = vld [vmem:[#allocation2 + $0x70] sm:$0xff]  ;;  %vm9024_vm14 = vmmov %vm8998_vm7 }
 0x9ba   :  { %v4732_v3 = vpack.c.b16 %v4731_v30, %v4724_v41  ;;  %v4041_v0 = vsel %vm8998_vm7, %v4040_v42, %v4039_v39  ;;  %v4051_v31 = vsel %vm534_vm5, %v4050_v24, %v4049_v44  ;;  %v3179_v29 = vrot.slane %v8210_v8, 4  ;;  %4083 = vmatpush.bf16.msrb.mxu2 %v4892_v4 }
 0x9bb   :  { %v3180_v45 = vrot.slane %v8210_v8, 5  ;;  %v4053_v40 = vsel %vm536_vm6, %v4052_v59, %v4051_v31  ;;  %v4056_v25 = vrot.slane %v4001_v6, 1  ;;  %v8243_v22 = vadd.f32 1e-05, %v3113_v12 }
 0x9bc   :  { %4877 = vmatmul.msk.bf16.vlgmr.msrb.gmra.mxu0 %vm620_vm10, %v4732_v3  ;;  %v3181_v9 = vrot.slane %v8210_v8, 6  ;;  %v4055_v52 = vsel %vm9015_vm8, %v4054_v57, %v4053_v40  ;;  %v3182_v50 = vrot.slane %v8210_v8, 7  ;;  %v3240_v32 = vmul.f32 %v3177_v14, %v7881_v11  ;;  %v9017_v11 = vld [vmem:[#allocation32_spill] sm:$0xff] }
 0x9bd   :  { %v3241_v13 = vmul.f32 %v3178_v58, %v7892_v51  ;;  %v4043_v33 = vsel %vm9016_vm15, %v4042_v60, %v4041_v0  ;;  %v4057_v18 = vsel %vm9001_vm9, %v4056_v25, %v4055_v52  ;;  %5329 = vrsqrt.f32 %v8243_v22 }
 0x9be   :  { %v3242_v48 = vmul.f32 %v3179_v29, %v7897_v20  ;;  %v4059_v53 = vpack.c.b16 %v4057_v18, %v4043_v33  ;;  %v3243_v62 = vmul.f32 %v3180_v45, %v7907_v36  ;;  %v3244_v54 = vmul.f32 %v3181_v9, %v7913_v21 }
 0x9bf   :  { %v3245_v5 = vmul.f32 %v3182_v50, %v7919_v46  ;;  %v3271_v14 = vmul.f32 %v9017_v11, %v8217_v17  ;;  %v3272_v51 = vmul.f32 %v9017_v11, %v8220_v1  ;;  %v3273_v8 = vmul.f32 %v9017_v11, %v3240_v32 }
 0x9c0   :  { %v3274_v58 = vmul.f32 %v9017_v11, %v3241_v13  ;;  %4062 = vrot.lane.b32.xlu0 %v4059_v53, %s5383_s23  ;;  %v3275_v20 = vmul.f32 %v9017_v11, %v3242_v48  ;;  %v3276_v36 = vmul.f32 %v9017_v11, %v3243_v62  ;;  %v3277_v21 = vmul.f32 %v9017_v11, %v3244_v54 }
 0x9c1   :  { %v3278_v46 = vmul.f32 %v9017_v11, %v3245_v5  ;;  %v3304_v23 = vadd.f32 %v7765_v16, %v3271_v14  ;;  %v3305_v17 = vadd.f32 %v7765_v16, %v3272_v51  ;;  %v3306_v1 = vadd.f32 %v7765_v16, %v3273_v8  ;;  %v9018_v8 = vld [vmem:[#allocation50_spill] sm:$0xff] }
 0x9c2   :  { %v3307_v15 = vadd.f32 %v7765_v16, %v3274_v58  ;;  %v3308_v27 = vadd.f32 %v7765_v16, %v3275_v20  ;;  %v3309_v49 = vadd.f32 %v7765_v16, %v3276_v36  ;;  %v3310_v42 = vadd.f32 %v7765_v16, %v3277_v21  ;;  %v9019_v36 = vld [vmem:[#allocation42_spill] sm:$0xff] }
 0x9c3   :  { %v5330_v38 = vpop.eup %5329  ;;  %v3336_v6 = vmax.f32 %v3304_v23, 0.0  ;;  %v3337_v56 = vmax.f32 %v3305_v17, 0.0  ;;  %v3338_v63 = vmax.f32 %v3306_v1, 0.0  ;;  %v3311_v2 = vadd.f32 %v7765_v16, %v3278_v46  ;;  %v9020_v46 = vld [vmem:[#allocation44_spill] sm:$0xff]  ;;  %v9021_v17 = vld [vmem:[#allocation47_spill] sm:$0xff] }
 0x9c4   :  { %v3339_v26 = vmax.f32 %v3307_v15, 0.0  ;;  %v3149_v35 = vmul.f32 %v5330_v38, %v8243_v22  ;;  %v3340_v7 = vmax.f32 %v3308_v27, 0.0  ;;  %v3341_v10 = vmax.f32 %v3309_v49, 0.0  ;;  %v9022_v15 = vld [vmem:[#allocation41_spill] sm:$0xff] }
 0x9c5   :  { %v3888_v60 = vpack.c.bf16 %v3336_v6, %v3336_v6  ;;  %v3889_v34 = vpack.c.bf16 %v3337_v56, %v3337_v56  ;;  %v3890_v55 = vpack.c.bf16 %v3338_v63, %v3338_v63  ;;  %vm3155_vm1 = vweird.f32 %v5330_v38 }
 0x9c6   :  { %v3150_v24 = vmul.f32 %v5330_v38, %v3149_v35  ;;  %v3891_v37 = vpack.c.bf16 %v3339_v26, %v3339_v26  ;;  %v3342_v57 = vmax.f32 %v3310_v42, 0.0  ;;  %v3343_v41 = vmax.f32 %v3311_v2, 0.0 }
 0x9c7   :  { %v4144_v19 = vunpack.c.l.b16 %v3889_v34  ;;  %v4145_v28 = vunpack.c.l.b16 %v3890_v55  ;;  %v8281_v30 = vpack.c.bf16 %v3340_v7, %v3340_v7  ;;  %v8283_v39 = vpack.c.bf16 %v3341_v10, %v3341_v10 }
 0x9c8   :  { %v3151_v59 = vmul.f32 0.5, %v3150_v24  ;;  %v4143_v44 = vunpack.c.l.b16 %v3888_v60  ;;  %v4146_v12 = vunpack.c.l.b16 %v3891_v37  ;;  %vm3154_vm0 = vweird.f32 %v8243_v22 }
 0x9c9   :  { %v4187_v0 = vrot.slane %v4144_v19, 7  ;;  %v4189_v31 = vrot.slane %v4145_v28, 6  ;;  %vm3156_vm12 = vmor %vm3154_vm0, %vm3155_vm1  ;;  %v8288_v40 = vpack.c.bf16 %v3342_v57, %v3342_v57  ;;  %v8290_v25 = vpack.c.bf16 %v3343_v41, %v3343_v41 }
 0x9ca   :  { %v3152_v3 = vsub.f32 1.5, %v3151_v59  ;;  %v4147_v9 = vunpack.c.l.b16 %v8281_v30  ;;  %v4148_v50 = vunpack.c.l.b16 %v8283_v39  ;;  %v4191_v13 = vrot.slane %v4146_v12, 5 }
 0x9cb   :  { %v4188_v45 = vsel %vm528_vm2, %v4187_v0, %v4143_v44  ;;  %vm4791_vm15 = vcmask 72704  }
 0x9cc   :  { %v3153_v29 = vmul.f32 %v5330_v38, %v3152_v3  ;;  %v4190_v32 = vsel %vm530_vm3, %v4189_v31, %v4188_v45  ;;  %v4193_v0 = vrot.slane %v4147_v9, 4 }
 0x9ce   :  { %v3157_v52 = vsel %vm3156_vm12, %v5330_v38, %v3153_v29 }
 0x9cf   :  { %v3183_v33 = vrot.slane %v3157_v52, 1  ;;  %v3184_v18 = vrot.slane %v3157_v52, 2  ;;  %v3185_v48 = vrot.slane %v3157_v52, 3  ;;  %v3246_v22 = vmul.f32 %v3157_v52, %v7944_v61 }
 0x9d0   :  { %v3186_v53 = vrot.slane %v3157_v52, 4  ;;  %v3187_v62 = vrot.slane %v3157_v52, 5  ;;  %v3188_v54 = vrot.slane %v3157_v52, 6  ;;  %v3189_v5 = vrot.slane %v3157_v52, 7 }
 0x9d1   :  { %v3247_v14 = vmul.f32 %v3183_v33, %v7935_v43  ;;  %v3248_v51 = vmul.f32 %v3184_v18, %v7939_v47  ;;  %v3249_v58 = vmul.f32 %v3185_v48, %v9018_v8  ;;  %v3279_v20 = vmul.f32 %v9017_v11, %v3246_v22 }
 0x9d2   :  { %v3250_v21 = vmul.f32 %v3186_v53, %v9019_v36  ;;  %v3251_v23 = vmul.f32 %v3187_v62, %v9020_v46  ;;  %v3252_v1 = vmul.f32 %v3188_v54, %v9021_v17  ;;  %v3253_v61 = vmul.f32 %v3189_v5, %v9022_v15 }
 0x9d3   :  { %v3280_v27 = vmul.f32 %v9017_v11, %v3247_v14  ;;  %v3281_v49 = vmul.f32 %v9017_v11, %v3248_v51  ;;  %v3282_v43 = vmul.f32 %v9017_v11, %v3249_v58  ;;  %v3312_v47 = vadd.f32 %v7765_v16, %v3279_v20 }
 0x9d4   :  { %v3283_v38 = vmul.f32 %v9017_v11, %v3250_v21  ;;  %v3284_v6 = vmul.f32 %v9017_v11, %v3251_v23  ;;  %v3285_v56 = vmul.f32 %v9017_v11, %v3252_v1  ;;  %v3286_v63 = vmul.f32 %v9017_v11, %v3253_v61 }
 0x9d5   :  { %v3313_v26 = vadd.f32 %v7765_v16, %v3280_v27  ;;  %v3314_v35 = vadd.f32 %v7765_v16, %v3281_v49  ;;  %v3315_v42 = vadd.f32 %v7765_v16, %v3282_v43  ;;  %v3344_v2 = vmax.f32 %v3312_v47, 0.0  ;;  %v4771_v47 = vpop.f32.mrf.mxu1 }
 0x9d6   :  { %v3316_v7 = vadd.f32 %v7765_v16, %v3283_v38  ;;  %v3317_v10 = vadd.f32 %v7765_v16, %v3284_v6  ;;  %v3318_v60 = vadd.f32 %v7765_v16, %v3285_v56  ;;  %v3319_v34 = vadd.f32 %v7765_v16, %v3286_v63  ;;  %v5342_v38 = vld [vmem:[%s8381_s5] sm:$0xff] }
 0x9d7   :  { %v3345_v24 = vmax.f32 %v3313_v26, 0.0  ;;  %v3346_v55 = vmax.f32 %v3314_v35, 0.0  ;;  %v3347_v37 = vmax.f32 %v3315_v42, 0.0  ;;  %v4192_v11 = vsel %vm532_vm4, %v4191_v13, %v4190_v32 }
 0x9d8   :  { %v3348_v59 = vmax.f32 %v3316_v7, 0.0  ;;  %v3349_v57 = vmax.f32 %v3317_v10, 0.0  ;;  %v3350_v19 = vmax.f32 %v3318_v60, 0.0  ;;  %v3351_v28 = vmax.f32 %v3319_v34, 0.0  ;;  %v9027_v34 = vld [vmem:[#allocation23_spill] sm:$0xff] }
 0x9d9   :  { %v3896_v4 = vpack.c.bf16 %v3344_v2, %v3344_v2  ;;  %v3897_v41 = vpack.c.bf16 %v3345_v24, %v3345_v24  ;;  %v3898_v30 = vpack.c.bf16 %v3346_v55, %v3346_v55  ;;  %v3899_v39 = vpack.c.bf16 %v3347_v37, %v3347_v37  ;;  %v9028_v24 = vld [vmem:[#allocation35_spill] sm:$0xff] }
 0x9da   :  { %v3900_v44 = vpack.c.bf16 %v3348_v59, %v3348_v59  ;;  %v3901_v3 = vpack.c.bf16 %v3349_v57, %v3349_v57  ;;  %v3902_v12 = vpack.c.bf16 %v3350_v19, %v3350_v19  ;;  %v3903_v31 = vpack.c.bf16 %v3351_v28, %v3351_v28 }
 0x9db   :  { %v4152_v29 = vunpack.c.l.b16 %v3897_v41  ;;  %v4153_v16 = vunpack.c.l.b16 %v3898_v30  ;;  %v4154_v45 = vunpack.c.l.b16 %v3899_v39  ;;  %v4149_v52 = vunpack.c.l.b16 %v8288_v40  ;;  %v5343_v41 = vld [vmem:[%s8381_s5 + $0x8] sm:$0x7f] }
 0x9dc   :  { %v4155_v33 = vunpack.c.l.b16 %v3900_v44  ;;  %v4194_v32 = vsel %vm534_vm5, %v4193_v0, %v4192_v11  ;;  %v4195_v13 = vrot.slane %v4148_v50, 3  ;;  %v4151_v18 = vunpack.c.l.b16 %v3896_v4  ;;  %v9029_v11 = vld [vmem:[#allocation34_spill] sm:$0xff]  ;;  %v4238_v4 = vpop.f32.mrf.mxu3 }
 0x9dd   :  { %v4156_v48 = vunpack.c.l.b16 %v3901_v3  ;;  %v4201_v22 = vrot.slane %v4152_v29, 7  ;;  %v4203_v53 = vrot.slane %v4153_v16, 6  ;;  %v4150_v62 = vunpack.c.l.b16 %v8290_v25  ;;  %v4773_v42 = vpop.f32.mrf.mxu1 }
 0x9de   :  { %v4157_v54 = vunpack.c.l.b16 %v3902_v12  ;;  %v4158_v5 = vunpack.c.l.b16 %v3903_v31  ;;  %v4196_v9 = vsel %vm536_vm6, %v4195_v13, %v4194_v32  ;;  %v4205_v51 = vrot.slane %v4154_v45, 5 }
 0x9df   :  { %v4202_v14 = vsel %vm528_vm2, %v4201_v22, %v4151_v18  ;;  %v4197_v8 = vrot.slane %v4149_v52, 2  ;;  %v4207_v58 = vrot.slane %v4155_v33, 4  ;;  %v4209_v50 = vrot.slane %v4156_v48, 3  ;;  %vm9025_vm2 = vmmov %vm9001_vm9 }
 0x9e0   :  { %v4204_v40 = vsel %vm530_vm3, %v4203_v53, %v4202_v14  ;;  %v4211_v46 = vrot.slane %v4157_v54, 2  ;;  %v4199_v25 = vrot.slane %v4150_v62, 1  ;;  %v4213_v17 = vrot.slane %v4158_v5, 1  ;;  %vm9026_vm7 = vmmov %vm9025_vm2  ;;  %v9030_v62 = vld [vmem:[#allocation25_spill] sm:$0xff] }
 0x9e1   :  { %v4206_v20 = vsel %vm532_vm4, %v4205_v51, %v4204_v40  ;;  %v4198_v36 = vsel %vm9023_vm13, %v4197_v8, %v4196_v9  ;;  %v4776_v6 = vperm.slane %v5342_v38, 3  ;;  %v738_v55 = vmul.f32 %v9028_v24, %v9027_v34  ;;  %v9031_v9 = vld [vmem:[#allocation7_spill] sm:$0xff]  ;;  %v9032_v8 = vld [vmem:[#allocation26_spill] sm:$0xff] }
 0x9e2   :  { %v4208_v21 = vsel %vm534_vm5, %v4207_v58, %v4206_v20  ;;  %v4200_v15 = vsel %vm9025_vm2, %v4199_v25, %v4198_v36  ;;  %v739_v59 = vmul.f32 %v9029_v11, %v9027_v34  ;;  %v4248_v30 = vperm.slane %v5343_v41, 6  ;;  %v9033_v58 = vld [vmem:[#allocation8_spill] sm:$0xff] }
 0x9e3   :  { %v4210_v23 = vsel %vm536_vm6, %v4209_v50, %v4208_v21  ;;  %v740_v37 = vadd.f32 1e-05, %v738_v55  ;;  %vm4794_vm9 = vcmask 334848   ;;  %v9034_v50 = vld [vmem:[#allocation27_spill] sm:$0xff] }
 0x9e4   :  { %v4212_v1 = vsel %vm9024_vm14, %v4211_v46, %v4210_v23  ;;  %v741_v57 = vadd.f32 1e-05, %v739_v59  ;;  %v4240_v52 = vpop.f32.mrf.mxu3 }
 0x9e5   :  { %v4214_v61 = vsel %vm9026_vm7, %v4213_v17, %v4212_v1  ;;  %5331 = vrsqrt.f32 %v740_v37  ;;  %vm748_vm4 = vweird.f32 %v740_v37 }
 0x9e6   :  { %v4216_v27 = vpack.c.b16 %v4214_v61, %v4200_v15  ;;  %5333 = vrsqrt.f32 %v741_v57 }
 0x9e8   :  { %4867 = vmatmul.msk.bf16.gmra.mxu3 %vm620_vm10, %v4216_v27 }
 0x9eb   :  { %v5332_v19 = vpop.eup %5331 }
 0x9ec   :  { %v743_v28 = vmul.f32 %v5332_v19, %v740_v37  ;;  %v5334_v3 = vpop.eup %5333  ;;  %vm749_vm3 = vweird.f32 %v5332_v19 }
 0x9ed   :  { %v753_v31 = vmul.f32 %v5334_v3, %v741_v57  ;;  %vm750_vm5 = vmor %vm748_vm4, %vm749_vm3  ;;  %vm759_vm6 = vweird.f32 %v5334_v3 }
 0x9ee   :  { %v744_v39 = vmul.f32 %v5332_v19, %v743_v28 }
 0x9ef   :  { %v754_v16 = vmul.f32 %v5334_v3, %v753_v31 }
 0x9f0   :  { %v745_v29 = vmul.f32 0.5, %v744_v39 }
 0x9f1   :  { %v755_v18 = vmul.f32 0.5, %v754_v16 }
 0x9f2   :  { %v746_v45 = vsub.f32 1.5, %v745_v29 }
 0x9f3   :  { %v756_v22 = vsub.f32 1.5, %v755_v18 }
 0x9f4   :  { %v747_v48 = vmul.f32 %v5332_v19, %v746_v45 }
 0x9f5   :  { %v757_v5 = vmul.f32 %v5334_v3, %v756_v22 }
 0x9f6   :  { %v751_v53 = vsel %vm750_vm5, %v5332_v19, %v747_v48 }
 0x9f7   :  { %v762_v54 = vmul.f32 %v751_v53, %v9030_v62 }
 0x9f9   :  { %v769_v14 = vmul.f32 %v9031_v9, %v762_v54 }
 0x9fb   :  { %v776_v20 = vadd.f32 %v9033_v58, %v769_v14 }
 0x9fd   :  { %v4789_v36 = vsel %vm638_vm11, %v9034_v50, %v776_v20 }
 0xa0d   :  { %v4061_v49 = vpop.permute.xlu0 %4060 }
 0xa0e   :  { %4860 = vmatmul.msk.bf16.vlgmr.msrb.gmra.mxu2 %vm620_vm10, %v4061_v49  ;;  %v9035_v49 = vld [vmem:[#allocation28_spill] sm:$0xff] }
 0xa32   :  { %v4063_v43 = vpop.permute.xlu0 %4062 }
 0xa33   :  { %4861 = vmatmul.msk.bf16.gmra.mxu2 %vm620_vm10, %v4063_v43  ;;  %vm758_vm10 = vweird.f32 %v741_v57 }
 0xa34   :  { %vm760_vm8 = vmor %vm758_vm10, %vm759_vm6 }
 0xa35   :  { %v761_v51 = vsel %vm760_vm8, %v5334_v3, %v757_v5 }
 0xa36   :  { %v763_v40 = vmul.f32 %v761_v51, %v9032_v8 }
 0xa38   :  { %v770_v46 = vmul.f32 %v9031_v9, %v763_v40 }
 0xa39   :  { %v4751_v56 = vpop.f32.mrf.mxu0 }
 0xa3a   :  { %v4772_v63 = vadd.f32 %v4771_v47, %v4751_v56  ;;  %v777_v1 = vadd.f32 %v9033_v58, %v770_v46 }
 0xa3c   :  { %v4777_v26 = vadd.f32 %v4776_v6, %v4772_v63  ;;  %v4790_v43 = vsel %vm638_vm11, %v9035_v49, %v777_v1 }
 0xa3e   :  { %v4779_v35 = vmax.f32 %v4777_v26, 0.0 }
 0xa40   :  { %4783 = vrot.lane.b32.xlu0 %v4779_v35, %s5385_s30 }
 0xa41   :  { %v4753_v2 = vpop.f32.mrf.mxu0 }
 0xa42   :  { %v4774_v7 = vadd.f32 %v4773_v42, %v4753_v2 }
 0xa44   :  { %v4778_v10 = vadd.f32 %v4776_v6, %v4774_v7 }
 0xa46   :  { %v4780_v60 = vmax.f32 %v4778_v10, 0.0 }
 0xa48   :  { %4785 = vrot.lane.b32.xlu0 %v4780_v60, %s5385_s30 }
 0xa6b   :  { %v4243_v17 = vpop.f32.mrf.mxu3 }
 0xa73   :  { %v4245_v56 = vpop.f32.mrf.mxu3 }
 0xa91   :  { %v4085_v44 = vpop.f32.mrf.mxu2 }
 0xa92   :  { %v4239_v12 = vadd.f32 %v4238_v4, %v4085_v44 }
 0xa94   :  { %v4249_v0 = vadd.f32 %v4248_v30, %v4239_v12 }
 0xa96   :  { %4253 = vst [vmem:[%s8383_s7] sm:$0xff] %v4249_v0 }
 0xa99   :  { %v4087_v33 = vpop.f32.mrf.mxu2 }
 0xa9a   :  { %v4241_v32 = vadd.f32 %v4240_v52, %v4087_v33 }
 0xa9c   :  { %v4250_v13 = vadd.f32 %v4248_v30, %v4241_v32 }
 0xa9e   :  { %4254 = vst [vmem:[%s8383_s7 + $0x8] sm:$0xff] %v4250_v13 }
 0xab2   :  { %v4784_v21 = vpop.permute.xlu0 %4783 }
 0xab3   :  { %v4792_v25 = vsel %vm4791_vm15, %v4789_v36, %v4784_v21 }
 0xab4   :  { %v4795_v23 = vsel %vm4794_vm9, %v4792_v25, 0.0 }
 0xab5   :  { %4797 = vst [vmem:[%s8382_s6] sm:$0xff] %v4795_v23 }
 0xab6   :  { %v4090_v15 = vpop.f32.mrf.mxu2 }
 0xab7   :  { %v4244_v61 = vadd.f32 %v4243_v17, %v4090_v15 }
 0xab9   :  { %v4251_v27 = vadd.f32 %v4248_v30, %v4244_v61 }
 0xaba   :  { %v4786_v47 = vpop.permute.xlu0 %4785 }
 0xabb   :  { %v4793_v38 = vsel %vm4791_vm15, %v4790_v43, %v4786_v47  ;;  %4255 = vst [vmem:[%s8383_s7 + $0x10] sm:$0xff] %v4251_v27 }
 0xabc   :  { %v4796_v6 = vsel %vm4794_vm9, %v4793_v38, 0.0 }
 0xabd   :  { %4798 = vst [vmem:[%s8382_s6 + $0x8] sm:$0xff] %v4796_v6 }
 0xabe   :  { %v4092_v63 = vpop.f32.mrf.mxu2 }
 0xabf   :  { %v4246_v26 = vadd.f32 %v4245_v56, %v4092_v63 }
 0xac1   :  { %v4252_v35 = vadd.f32 %v4248_v30, %v4246_v26 }
 0xac3   :  { %4256 = vst [vmem:[%s8383_s7 + $0x18] sm:$0xff] %v4252_v35 }
 0xac4   :  { %4807 = vsyncpa [#allocation3], 1 }

</bundles_post_ra>
